<compile_context>
chip_gen: v6e
topology: v6e:2x2x1
jax: 0.10.0
libtpu: 0.0.40
codegen_flags: <defaults>
</compile_context>

<pallas_src>
import functools
import math

import jax
import jax.numpy as jnp
from jax import lax
from jax.experimental import pallas as pl
from jax.experimental.pallas import tpu as pltpu

NHEAD = 4
EPS = 1e-5          # PyTorch LayerNorm default eps
NEG_INF = -1e30


def _layernorm(v, g, b):
    mu = jnp.mean(v, axis=-1, keepdims=True)
    var = jnp.mean((v - mu) ** 2, axis=-1, keepdims=True)
    return (v - mu) * lax.rsqrt(var + EPS) * g + b


# ----------------------------------------------------------------------------
# Fully fused forward kernel (one batch tile per grid step)
# ----------------------------------------------------------------------------
def _fused_kernel(tokens_ref, xnum_ref, numw_ref, wqkv_ref, wo_ref,
                  wf1_ref, wf2_ref, lvec_ref, hln_ref, hw1_ref, hw2_ref,
                  o_ref, tok_ref, *, s_real):
    B, S, D = tokens_ref.shape
    L, _, H, _, hd = wqkv_ref.shape
    HH = hw1_ref.shape[1]
    f32 = jnp.float32

    # --- numeric-feature projection (bias = last weight row, ones column in x) ---
    num_tok = jnp.dot(xnum_ref[...], numw_ref[...], preferred_element_type=f32)   # (B, D)

    # --- assemble tokens in VMEM scratch; slot 1 is the numeric token ---
    tok_ref[...] = tokens_ref[...]
    tok_ref[:, 1, :] = num_tok
    x = tok_ref[...].reshape(B * S, D)            # all dense math on the flat block

    # --- additive key-padding bias, hoisted once above the layer/head loops ---
    kidx = lax.broadcasted_iota(jnp.int32, (1, 1, S), 2)
    mask_bias = jnp.where(kidx < s_real, 0.0, NEG_INF).astype(f32)                 # (1,1,S)

    for l in range(L):        # static unroll is fine at L=2; use fori_loop if deeper
        bo = lvec_ref[l, 0:1, :]
        g1 = lvec_ref[l, 1:2, :]
        be1 = lvec_ref[l, 2:3, :]
        bf2 = lvec_ref[l, 3:4, :]
        g2 = lvec_ref[l, 4:5, :]
        be2 = lvec_ref[l, 5:6, :]

        # ---- multi-head self-attention (post-norm encoder layer) ----
        # Heads live only in leading weight-stack dims: no lane slicing of
        # activations, no concat.  Q weights/bias carry the 1/sqrt(hd) scale.
        attn = jnp.zeros((B * S, D), f32)
        for h in range(H):
            q = (jnp.dot(x, wqkv_ref[l, 0, h, :D, :], preferred_element_type=f32)
                 + wqkv_ref[l, 0, h, D:D + 1, :]).reshape(B, S, hd)
            k = (jnp.dot(x, wqkv_ref[l, 1, h, :D, :], preferred_element_type=f32)
                 + wqkv_ref[l, 1, h, D:D + 1, :]).reshape(B, S, hd)
            v = (jnp.dot(x, wqkv_ref[l, 2, h, :D, :], preferred_element_type=f32)
                 + wqkv_ref[l, 2, h, D:D + 1, :]).reshape(B, S, hd)

            s = jnp.einsum('bqd,bkd->bqk', q, k, preferred_element_type=f32) + mask_bias
            s = s - jnp.max(s, axis=-1, keepdims=True)
            p = jnp.exp(s)
            # EUP approximate reciprocal (~1e-4 rel); use approx=False for exact parity.
            p = p * pl.reciprocal(jnp.sum(p, axis=-1, keepdims=True), approx=True)

            ctx = jnp.einsum('bqk,bkd->bqd', p, v, preferred_element_type=f32)     # (B,S,hd)
            attn = attn + jnp.dot(ctx.reshape(B * S, hd), wo_ref[l, h],
                                  preferred_element_type=f32)
        attn = attn + bo

        # ---- LayerNorm 1 (post-norm). Padded rows are garbage-but-unused. ----
        x = _layernorm(x + attn, g1, be1)

        # ---- feed-forward (ReLU); dropout(0.1) is identity at inference ----
        h1 = jnp.maximum(
            jnp.dot(x, wf1_ref[l, :D, :], preferred_element_type=f32)
            + wf1_ref[l, D:D + 1, :], 0.0)
        ff = jnp.dot(h1, wf2_ref[l], preferred_element_type=f32) + bf2

        # ---- LayerNorm 2 ----
        x = _layernorm(x + ff, g2, be2)

    # ---- classification head on the CLS token (row 0 of every sequence) ----
    x_cls = x.reshape(B, S, D)[:, 0, :]                                            # (B, D)
    x_cls = _layernorm(x_cls, hln_ref[0:1, :], hln_ref[1:2, :])
    h1 = jnp.maximum(
        jnp.dot(x_cls, hw1_ref[:D, :], preferred_element_type=f32)
        + hw1_ref[D:D + 1, :], 0.0)
    # Dropout(0.2) is identity at inference.
    y = (jnp.dot(h1, hw2_ref[:HH, :], preferred_element_type=f32)
         + hw2_ref[HH:HH + 1, :])
    o_ref[...] = y.astype(o_ref.dtype)


def _pick_batch_tile(b):
    if b <= 8:
        return b
    for t in (512, 256, 128, 64, 32, 16, 8):
        if b % t == 0:
            return t
    return b


def _fused_forward(tokens_init, xnum_aug, params, s_real):
    B, S, D = tokens_init.shape
    C = params["hw2"].shape[1]
    L = params["wqkv"].shape[0]
    H = params["wqkv"].shape[2]
    hd = params["wqkv"].shape[4]
    F = params["wf2"].shape[1]
    HH = params["hw1"].shape[1]
    NC1 = xnum_aug.shape[1]

    b_tile = _pick_batch_tile(B)
    assert B % b_tile == 0
    grid = (B // b_tile,)

    weights = [params["numw_aug"], params["wqkv"], params["wo"], params["wf1"],
               params["wf2"], params["lvec"], params["head_ln"], params["hw1"],
               params["hw2"]]

    def batch_spec(shape):
        nd = len(shape)
        return pl.BlockSpec((b_tile,) + tuple(shape[1:]),
                            lambda i, nd=nd: (i,) + (0,) * (nd - 1))

    def weight_spec(shape):
        nd = len(shape)
        return pl.BlockSpec(tuple(shape), lambda i, nd=nd: (0,) * nd)

    in_specs = ([batch_spec(tokens_init.shape), batch_spec(xnum_aug.shape)]
                + [weight_spec(w.shape) for w in weights])

    # Advisory cost estimate so XLA schedules the call well vs. embedding glue.
    tokens_n = B * S
    flops = (2 * L * tokens_n * (4 * D * D + 2 * D * F)
             + 4 * L * B * H * S * S * hd
             + 2 * B * (D * HH + HH * C + NC1 * D))
    bytes_accessed = (sum(int(a.size) * a.dtype.itemsize
                          for a in [tokens_init, xnum_aug] + weights) + B * C * 4)
    cost = pl.CostEstimate(flops=int(flops),
                           transcendentals=int(L * H * B * S * S),
                           bytes_accessed=int(bytes_accessed))

    kernel = functools.partial(_fused_kernel, s_real=s_real)
    return pl.pallas_call(
        kernel,
        out_shape=jax.ShapeDtypeStruct((B, C), jnp.float32),
        grid=grid,
        in_specs=in_specs,
        out_specs=pl.BlockSpec((b_tile, C), lambda i: (i, 0)),
        scratch_shapes=[pltpu.VMEM((b_tile, S, D), jnp.float32)],
        compiler_params=pltpu.CompilerParams(dimension_semantics=("parallel",)),
        cost_estimate=cost,
    )(tokens_init, xnum_aug, *weights)


# ----------------------------------------------------------------------------
# Parameter init (deterministic, mirrors the PyTorch module's shapes, already
# packed into the kernel's fused/stacked layout).
# ----------------------------------------------------------------------------
def init_params(key, cat_dims, num_cont, emb_dim, n_layers, n_classes,
                ffn_dim=256, head_hidden=64):
    keys = iter(jax.random.split(key, 256))

    def nrm(shape, s=0.05):
        return jax.random.normal(next(keys), shape, jnp.float32) * s

    D = emb_dim
    H = NHEAD
    hd = D // H
    scale = 1.0 / math.sqrt(hd)

    emb_tables = [nrm((c, D), 1.0) for c in cat_dims]
    cls_token = nrm((1, 1, D), 1.0)

    # numeric projection: weight.T with bias as the last row (x gets a ones col)
    numw_aug = jnp.concatenate([nrm((num_cont, D)), nrm((1, D))], axis=0)  # (nc+1, D)

    wqkv_list, wo_list, wf1_list, wf2_list, lvec_list = [], [], [], [], []
    for _ in range(n_layers):
        ipw = nrm((3 * D, D))                     # in_proj_weight (3D, D)
        ipb = nrm((3 * D,))                       # in_proj_bias
        per_proj = []
        for i in range(3):                        # 0=q, 1=k, 2=v
            w_i = ipw[i * D:(i + 1) * D, :]
            b_i = ipb[i * D:(i + 1) * D]
            per_head = []
            for h in range(H):
                w_h = w_i[h * hd:(h + 1) * hd, :].T          # (D, hd)
                b_h = b_i[h * hd:(h + 1) * hd][None, :]      # (1, hd)
                w_aug = jnp.concatenate([w_h, b_h], axis=0)  # (D+1, hd)
                if i == 0:                                   # fold 1/sqrt(hd) into Q
                    w_aug = w_aug * scale
                per_head.append(w_aug)
            per_proj.append(jnp.stack(per_head))             # (H, D+1, hd)
        wqkv_list.append(jnp.stack(per_proj))                # (3, H, D+1, hd)

        wout_t = nrm((D, D)).T                               # out_proj.weight.T (ctx, out)
        bo = nrm((1, D))
        wo_list.append(jnp.stack([wout_t[h * hd:(h + 1) * hd, :]
                                  for h in range(H)]))       # (H, hd, D)

        wf1_t = nrm((ffn_dim, D)).T                          # linear1.weight.T (D, F)
        bf1 = nrm((1, ffn_dim))
        wf1_list.append(jnp.concatenate([wf1_t, bf1], axis=0))   # (D+1, F)
        wf2_t = nrm((D, ffn_dim)).T                          # linear2.weight.T (F, D)
        bf2 = nrm((1, D))
        wf2_list.append(wf2_t)

        g1 = jnp.ones((1, D), jnp.float32); be1 = jnp.zeros((1, D), jnp.float32)
        g2 = jnp.ones((1, D), jnp.float32); be2 = jnp.zeros((1, D), jnp.float32)
        lvec_list.append(jnp.concatenate([bo, g1, be1, bf2, g2, be2], axis=0))  # (6, D)

    head_ln = jnp.concatenate([jnp.ones((1, D), jnp.float32),
                               jnp.zeros((1, D), jnp.float32)], axis=0)         # (2, D)
    hw1_aug = jnp.concatenate([nrm((head_hidden, D)).T, nrm((1, head_hidden))],
                              axis=0)                                           # (D+1, HH)
    hw2_aug = jnp.concatenate([nrm((n_classes, head_hidden)).T, nrm((1, n_classes))],
                              axis=0)                                           # (HH+1, C)

    return {
        "emb_tables": emb_tables,
        "cls_token": cls_token,
        "numw_aug": numw_aug,
        "wqkv": jnp.stack(wqkv_list),   # (L, 3, H, D+1, hd)
        "wo": jnp.stack(wo_list),       # (L, H, hd, D)
        "wf1": jnp.stack(wf1_list),     # (L, D+1, F)
        "wf2": jnp.stack(wf2_list),     # (L, F, D)
        "lvec": jnp.stack(lvec_list),   # (L, 6, D): bo, g1, be1, bf2, g2, be2
        "head_ln": head_ln,             # (2, D)
        "hw1": hw1_aug,                 # (D+1, 64)
        "hw2": hw2_aug,                 # (65, C)
    }


# ----------------------------------------------------------------------------
# Forward pass
# ----------------------------------------------------------------------------
def ft_transformer_forward(params, x_cat, x_num):
    B = x_cat.shape[0]
    D = params["cls_token"].shape[-1]
    n_cat = x_cat.shape[1]
    s_real = 2 + n_cat                       # cls + num token + categorical tokens
    s_pad = max(8, ((s_real + 7) // 8) * 8)  # pad sequence to a sublane multiple

    # Categorical embedding lookups (gather glue, plain JAX).
    cat_tokens = jnp.stack(
        [params["emb_tables"][i][x_cat[:, i]] for i in range(n_cat)], axis=1
    ).astype(jnp.float32)                                      # (B, n_cat, D)

    cls_tok = jnp.broadcast_to(params["cls_token"], (B, 1, D)).astype(jnp.float32)
    pieces = [cls_tok, jnp.zeros((B, 1, D), jnp.float32), cat_tokens]  # slot 1: num token
    if s_pad > s_real:
        pieces.append(jnp.zeros((B, s_pad - s_real, D), jnp.float32))
    tokens_init = jnp.concatenate(pieces, axis=1)              # (B, S_pad, D)

    # ones column so the numeric-projection bias can live in the weight's last row
    xnum_aug = jnp.concatenate(
        [x_num.astype(jnp.float32), jnp.ones((B, 1), jnp.float32)], axis=1)

    return _fused_forward(tokens_init, xnum_aug, params, s_real)


if __name__ == "__main__":
    cat_dims = [5, 7, 3]
    num_cont = 6
    emb_dim = 32
    transformer_layers = 2
    n_classes = 3
    batch = 2

    key = jax.random.PRNGKey(0)
    kp, kc, kn = jax.random.split(key, 3)

    params = init_params(kp, cat_dims, num_cont, emb_dim, transformer_layers, n_classes)

    x_cat = jnp.stack(
        [jax.random.randint(jax.random.fold_in(kc, i), (batch,), 0, cat_dims[i])
         for i in range(len(cat_dims))], axis=1
    ).astype(jnp.int32)                                        # (B, n_cat)
    x_num = jax.random.normal(kn, (batch, num_cont), jnp.float32)

    fwd = jax.jit(ft_transformer_forward)
    logits = fwd(params, x_cat, x_num)
    jax.block_until_ready(logits)
    assert logits.shape == (batch, n_classes)
    print("KERNEL_OK")
</pallas_src>

<mosaic_0001>
module attributes {stable_mosaic.version = 11 : i64} {
  func.func @_fused_kernel(%arg0: i32, %arg1: memref<2x8x32xf32, #tpu.memory_space<vmem>>, %arg2: memref<2x7xf32, #tpu.memory_space<vmem>>, %arg3: memref<7x32xf32, #tpu.memory_space<vmem>>, %arg4: memref<2x3x4x33x8xf32, #tpu.memory_space<vmem>>, %arg5: memref<2x4x8x32xf32, #tpu.memory_space<vmem>>, %arg6: memref<2x33x256xf32, #tpu.memory_space<vmem>>, %arg7: memref<2x256x32xf32, #tpu.memory_space<vmem>>, %arg8: memref<2x6x32xf32, #tpu.memory_space<vmem>>, %arg9: memref<2x32xf32, #tpu.memory_space<vmem>>, %arg10: memref<33x64xf32, #tpu.memory_space<vmem>>, %arg11: memref<65x3xf32, #tpu.memory_space<vmem>>, %arg12: memref<2x3xf32, #tpu.memory_space<vmem>>, %arg13: memref<2x8x32xf32, #tpu.memory_space<vmem>>) attributes {dimension_semantics = [#tpu.dimension_semantics<parallel>], iteration_bounds = array<i64: 1>, scalar_prefetch = 0 : i64, scratch_operands = 1 : i64, tpu.core_type = #tpu.core_type<tc>, window_params = [{transform_indices = @transform_0, window_bounds = array<i64: 2, 8, 32>}, {transform_indices = @transform_1, window_bounds = array<i64: 2, 7>}, {pipeline_mode = #tpu.pipeline_mode<synchronous>, transform_indices = @transform_2, window_bounds = array<i64: 7, 32>}, {pipeline_mode = #tpu.pipeline_mode<synchronous>, transform_indices = @transform_3, window_bounds = array<i64: 2, 3, 4, 33, 8>}, {pipeline_mode = #tpu.pipeline_mode<synchronous>, transform_indices = @transform_4, window_bounds = array<i64: 2, 4, 8, 32>}, {pipeline_mode = #tpu.pipeline_mode<synchronous>, transform_indices = @transform_5, window_bounds = array<i64: 2, 33, 256>}, {pipeline_mode = #tpu.pipeline_mode<synchronous>, transform_indices = @transform_6, window_bounds = array<i64: 2, 256, 32>}, {pipeline_mode = #tpu.pipeline_mode<synchronous>, transform_indices = @transform_7, window_bounds = array<i64: 2, 6, 32>}, {pipeline_mode = #tpu.pipeline_mode<synchronous>, transform_indices = @transform_8, window_bounds = array<i64: 2, 32>}, {pipeline_mode = #tpu.pipeline_mode<synchronous>, transform_indices = @transform_9, window_bounds = array<i64: 33, 64>}, {pipeline_mode = #tpu.pipeline_mode<synchronous>, transform_indices = @transform_10, window_bounds = array<i64: 65, 3>}, {transform_indices = @transform_11, window_bounds = array<i64: 2, 3>}]} {
    %c0 = arith.constant 0 : index
    %c0_0 = arith.constant 0 : index
    %0 = vector.load %arg2[%c0, %c0_0] : memref<2x7xf32, #tpu.memory_space<vmem>>, vector<2x7xf32>
    %c0_1 = arith.constant 0 : index
    %c0_2 = arith.constant 0 : index
    %1 = vector.load %arg3[%c0_1, %c0_2] : memref<7x32xf32, #tpu.memory_space<vmem>>, vector<7x32xf32>
    %cst = arith.constant dense<0.000000e+00> : vector<2x32xf32>
    %2 = tpu.matmul %0, %1, %cst {dimension_numbers = #tpu.dot_dimension_numbers<[1], [0], [0], [1], [0, 0, 1, 1], [], []>} : vector<2x7xf32>, vector<7x32xf32>, vector<2x32xf32> -> vector<2x32xf32>
    %c0_3 = arith.constant 0 : index
    %c0_4 = arith.constant 0 : index
    %c0_5 = arith.constant 0 : index
    %3 = vector.load %arg1[%c0_3, %c0_4, %c0_5] : memref<2x8x32xf32, #tpu.memory_space<vmem>>, vector<2x8x32xf32>
    %c0_6 = arith.constant 0 : index
    %c0_7 = arith.constant 0 : index
    %c0_8 = arith.constant 0 : index
    %4 = vector.load %arg13[%c0_6, %c0_7, %c0_8] : memref<2x8x32xf32, #tpu.memory_space<vmem>>, vector<2x8x32xf32>
    tpu.vector_store %arg13[%c0_6, %c0_7, %c0_8], %3 {strides = array<i32>} : memref<2x8x32xf32, #tpu.memory_space<vmem>>, vector<2x8x32xf32>,
    %c0_9 = arith.constant 0 : index
    %c1 = arith.constant 1 : index
    %c0_10 = arith.constant 0 : index
    %5 = vector.load %arg13[%c0_9, %c1, %c0_10] : memref<2x8x32xf32, #tpu.memory_space<vmem>>, vector<2x1x32xf32>
    %6 = vector.shape_cast %5 : vector<2x1x32xf32> to vector<2x32xf32>
    %7 = vector.shape_cast %2 : vector<2x32xf32> to vector<2x1x32xf32>
    tpu.vector_store %arg13[%c0_9, %c1, %c0_10], %7 {strides = array<i32>} : memref<2x8x32xf32, #tpu.memory_space<vmem>>, vector<2x1x32xf32>,
    %c0_11 = arith.constant 0 : index
    %c0_12 = arith.constant 0 : index
    %c0_13 = arith.constant 0 : index
    %8 = vector.load %arg13[%c0_11, %c0_12, %c0_13] : memref<2x8x32xf32, #tpu.memory_space<vmem>>, vector<2x8x32xf32>
    %9 = vector.shape_cast %8 : vector<2x8x32xf32> to vector<16x32xf32>
    %10 = tpu.iota {dimensions = array<i32: 2>} : vector<1x1x8xi32>
    %c5_i32 = arith.constant 5 : i32
    %11 = vector.broadcast %c5_i32 : i32 to vector<1x1x8xi32>
    %12 = arith.cmpi slt, %10, %11 : vector<1x1x8xi32>
    %cst_14 = arith.constant 0.000000e+00 : f32
    %cst_15 = arith.constant -1.000000e+30 : f32
    %13 = vector.broadcast %cst_14 : f32 to vector<1x1x8xf32>
    %14 = vector.broadcast %cst_15 : f32 to vector<1x1x8xf32>
    %15 = arith.select %12, %13, %14 : vector<1x1x8xi1>, vector<1x1x8xf32>
    %c0_16 = arith.constant 0 : index
    %c0_17 = arith.constant 0 : index
    %c0_18 = arith.constant 0 : index
    %16 = vector.load %arg8[%c0_16, %c0_17, %c0_18] : memref<2x6x32xf32, #tpu.memory_space<vmem>>, vector<1x1x32xf32>
    %17 = vector.shape_cast %16 : vector<1x1x32xf32> to vector<1x32xf32>
    %c0_19 = arith.constant 0 : index
    %c1_20 = arith.constant 1 : index
    %c0_21 = arith.constant 0 : index
    %18 = vector.load %arg8[%c0_19, %c1_20, %c0_21] : memref<2x6x32xf32, #tpu.memory_space<vmem>>, vector<1x1x32xf32>
    %19 = vector.shape_cast %18 : vector<1x1x32xf32> to vector<1x32xf32>
    %c0_22 = arith.constant 0 : index
    %c2 = arith.constant 2 : index
    %c0_23 = arith.constant 0 : index
    %20 = vector.load %arg8[%c0_22, %c2, %c0_23] : memref<2x6x32xf32, #tpu.memory_space<vmem>>, vector<1x1x32xf32>
    %21 = vector.shape_cast %20 : vector<1x1x32xf32> to vector<1x32xf32>
    %c0_24 = arith.constant 0 : index
    %c3 = arith.constant 3 : index
    %c0_25 = arith.constant 0 : index
    %22 = vector.load %arg8[%c0_24, %c3, %c0_25] : memref<2x6x32xf32, #tpu.memory_space<vmem>>, vector<1x1x32xf32>
    %23 = vector.shape_cast %22 : vector<1x1x32xf32> to vector<1x32xf32>
    %c0_26 = arith.constant 0 : index
    %c4 = arith.constant 4 : index
    %c0_27 = arith.constant 0 : index
    %24 = vector.load %arg8[%c0_26, %c4, %c0_27] : memref<2x6x32xf32, #tpu.memory_space<vmem>>, vector<1x1x32xf32>
    %25 = vector.shape_cast %24 : vector<1x1x32xf32> to vector<1x32xf32>
    %c0_28 = arith.constant 0 : index
    %c5 = arith.constant 5 : index
    %c0_29 = arith.constant 0 : index
    %26 = vector.load %arg8[%c0_28, %c5, %c0_29] : memref<2x6x32xf32, #tpu.memory_space<vmem>>, vector<1x1x32xf32>
    %27 = vector.shape_cast %26 : vector<1x1x32xf32> to vector<1x32xf32>
    %cst_30 = arith.constant 0.000000e+00 : f32
    %28 = vector.broadcast %cst_30 : f32 to vector<16x32xf32>
    %c0_31 = arith.constant 0 : index
    %c0_32 = arith.constant 0 : index
    %c0_33 = arith.constant 0 : index
    %c0_34 = arith.constant 0 : index
    %c0_35 = arith.constant 0 : index
    %29 = vector.load %arg4[%c0_31, %c0_32, %c0_33, %c0_34, %c0_35] : memref<2x3x4x33x8xf32, #tpu.memory_space<vmem>>, vector<1x1x1x32x8xf32>
    %30 = vector.shape_cast %29 : vector<1x1x1x32x8xf32> to vector<32x8xf32>
    %cst_36 = arith.constant dense<0.000000e+00> : vector<16x8xf32>
    %31 = tpu.matmul %9, %30, %cst_36 {dimension_numbers = #tpu.dot_dimension_numbers<[1], [0], [0], [1], [0, 0, 1, 1], [], []>} : vector<16x32xf32>, vector<32x8xf32>, vector<16x8xf32> -> vector<16x8xf32>
    %c0_37 = arith.constant 0 : index
    %c0_38 = arith.constant 0 : index
    %c0_39 = arith.constant 0 : index
    %c32 = arith.constant 32 : index
    %c0_40 = arith.constant 0 : index
    %32 = vector.load %arg4[%c0_37, %c0_38, %c0_39, %c32, %c0_40] : memref<2x3x4x33x8xf32, #tpu.memory_space<vmem>>, vector<1x1x1x1x8xf32>
    %33 = vector.shape_cast %32 : vector<1x1x1x1x8xf32> to vector<1x8xf32>
    %34 = vector.broadcast %33 : vector<1x8xf32> to vector<16x8xf32>
    %35 = arith.addf %31, %34 : vector<16x8xf32>
    %36 = vector.shape_cast %35 : vector<16x8xf32> to vector<2x8x8xf32>
    %c0_41 = arith.constant 0 : index
    %c1_42 = arith.constant 1 : index
    %c0_43 = arith.constant 0 : index
    %c0_44 = arith.constant 0 : index
    %c0_45 = arith.constant 0 : index
    %37 = vector.load %arg4[%c0_41, %c1_42, %c0_43, %c0_44, %c0_45] : memref<2x3x4x33x8xf32, #tpu.memory_space<vmem>>, vector<1x1x1x32x8xf32>
    %38 = vector.shape_cast %37 : vector<1x1x1x32x8xf32> to vector<32x8xf32>
    %cst_46 = arith.constant dense<0.000000e+00> : vector<16x8xf32>
    %39 = tpu.matmul %9, %38, %cst_46 {dimension_numbers = #tpu.dot_dimension_numbers<[1], [0], [0], [1], [0, 0, 1, 1], [], []>} : vector<16x32xf32>, vector<32x8xf32>, vector<16x8xf32> -> vector<16x8xf32>
    %c0_47 = arith.constant 0 : index
    %c1_48 = arith.constant 1 : index
    %c0_49 = arith.constant 0 : index
    %c32_50 = arith.constant 32 : index
    %c0_51 = arith.constant 0 : index
    %40 = vector.load %arg4[%c0_47, %c1_48, %c0_49, %c32_50, %c0_51] : memref<2x3x4x33x8xf32, #tpu.memory_space<vmem>>, vector<1x1x1x1x8xf32>
    %41 = vector.shape_cast %40 : vector<1x1x1x1x8xf32> to vector<1x8xf32>
    %42 = vector.broadcast %41 : vector<1x8xf32> to vector<16x8xf32>
    %43 = arith.addf %39, %42 : vector<16x8xf32>
    %44 = vector.shape_cast %43 : vector<16x8xf32> to vector<2x8x8xf32>
    %c0_52 = arith.constant 0 : index
    %c2_53 = arith.constant 2 : index
    %c0_54 = arith.constant 0 : index
    %c0_55 = arith.constant 0 : index
    %c0_56 = arith.constant 0 : index
    %45 = vector.load %arg4[%c0_52, %c2_53, %c0_54, %c0_55, %c0_56] : memref<2x3x4x33x8xf32, #tpu.memory_space<vmem>>, vector<1x1x1x32x8xf32>
    %46 = vector.shape_cast %45 : vector<1x1x1x32x8xf32> to vector<32x8xf32>
    %cst_57 = arith.constant dense<0.000000e+00> : vector<16x8xf32>
    %47 = tpu.matmul %9, %46, %cst_57 {dimension_numbers = #tpu.dot_dimension_numbers<[1], [0], [0], [1], [0, 0, 1, 1], [], []>} : vector<16x32xf32>, vector<32x8xf32>, vector<16x8xf32> -> vector<16x8xf32>
    %c0_58 = arith.constant 0 : index
    %c2_59 = arith.constant 2 : index
    %c0_60 = arith.constant 0 : index
    %c32_61 = arith.constant 32 : index
    %c0_62 = arith.constant 0 : index
    %48 = vector.load %arg4[%c0_58, %c2_59, %c0_60, %c32_61, %c0_62] : memref<2x3x4x33x8xf32, #tpu.memory_space<vmem>>, vector<1x1x1x1x8xf32>
    %49 = vector.shape_cast %48 : vector<1x1x1x1x8xf32> to vector<1x8xf32>
    %50 = vector.broadcast %49 : vector<1x8xf32> to vector<16x8xf32>
    %51 = arith.addf %47, %50 : vector<16x8xf32>
    %52 = vector.shape_cast %51 : vector<16x8xf32> to vector<2x8x8xf32>
    "tpu.trace_start"() <{level = 10 : i32, message = "bqd,bkd->bqk"}> : () -> ()
    %cst_63 = arith.constant dense<0.000000e+00> : vector<2x8x8xf32>
    %53 = tpu.matmul %36, %44, %cst_63 {dimension_numbers = #tpu.dot_dimension_numbers<[2], [2], [1], [1], [0, 0, 0, 1, 1, 1], [0], [0]>} : vector<2x8x8xf32>, vector<2x8x8xf32>, vector<2x8x8xf32> -> vector<2x8x8xf32>
    "tpu.trace_stop"() : () -> ()
    %54 = vector.broadcast %15 : vector<1x1x8xf32> to vector<2x8x8xf32>
    %55 = arith.addf %53, %54 : vector<2x8x8xf32>
    %cst_64 = arith.constant dense<0xFF800000> : vector<2x8xf32>
    %56 = vector.multi_reduction <maximumf>, %55, %cst_64 [2] : vector<2x8x8xf32> to vector<2x8xf32>
    %57 = vector.shape_cast %56 : vector<2x8xf32> to vector<2x8x1xf32>
    %58 = vector.broadcast %57 : vector<2x8x1xf32> to vector<2x8x8xf32>
    %59 = arith.subf %55, %58 : vector<2x8x8xf32>
    %60 = math.exp %59 : vector<2x8x8xf32>
    %cst_65 = arith.constant dense<0.000000e+00> : vector<2x8xf32>
    %61 = vector.multi_reduction <add>, %60, %cst_65 [2] : vector<2x8x8xf32> to vector<2x8xf32>
    %62 = vector.shape_cast %61 : vector<2x8xf32> to vector<2x8x1xf32>
    %63 = tpu.reciprocal %62 {approx = true} : vector<2x8x1xf32> -> vector<2x8x1xf32>
    %64 = vector.broadcast %63 : vector<2x8x1xf32> to vector<2x8x8xf32>
    %65 = arith.mulf %60, %64 : vector<2x8x8xf32>
    "tpu.trace_start"() <{level = 10 : i32, message = "bqk,bkd->bqd"}> : () -> ()
    %cst_66 = arith.constant dense<0.000000e+00> : vector<2x8x8xf32>
    %66 = tpu.matmul %65, %52, %cst_66 {dimension_numbers = #tpu.dot_dimension_numbers<[2], [1], [1], [2], [0, 0, 0, 1, 1, 2], [0], [0]>} : vector<2x8x8xf32>, vector<2x8x8xf32>, vector<2x8x8xf32> -> vector<2x8x8xf32>
    "tpu.trace_stop"() : () -> ()
    %67 = vector.shape_cast %66 : vector<2x8x8xf32> to vector<16x8xf32>
    %c0_67 = arith.constant 0 : index
    %c0_68 = arith.constant 0 : index
    %c0_69 = arith.constant 0 : index
    %c0_70 = arith.constant 0 : index
    %68 = vector.load %arg5[%c0_67, %c0_68, %c0_69, %c0_70] : memref<2x4x8x32xf32, #tpu.memory_space<vmem>>, vector<1x1x8x32xf32>
    %69 = vector.shape_cast %68 : vector<1x1x8x32xf32> to vector<8x32xf32>
    %cst_71 = arith.constant dense<0.000000e+00> : vector<16x32xf32>
    %70 = tpu.matmul %67, %69, %cst_71 {dimension_numbers = #tpu.dot_dimension_numbers<[1], [0], [0], [1], [0, 0, 1, 1], [], []>} : vector<16x8xf32>, vector<8x32xf32>, vector<16x32xf32> -> vector<16x32xf32>
    %71 = arith.addf %28, %70 : vector<16x32xf32>
    %c0_72 = arith.constant 0 : index
    %c0_73 = arith.constant 0 : index
    %c1_74 = arith.constant 1 : index
    %c0_75 = arith.constant 0 : index
    %c0_76 = arith.constant 0 : index
    %72 = vector.load %arg4[%c0_72, %c0_73, %c1_74, %c0_75, %c0_76] : memref<2x3x4x33x8xf32, #tpu.memory_space<vmem>>, vector<1x1x1x32x8xf32>
    %73 = vector.shape_cast %72 : vector<1x1x1x32x8xf32> to vector<32x8xf32>
    %cst_77 = arith.constant dense<0.000000e+00> : vector<16x8xf32>
    %74 = tpu.matmul %9, %73, %cst_77 {dimension_numbers = #tpu.dot_dimension_numbers<[1], [0], [0], [1], [0, 0, 1, 1], [], []>} : vector<16x32xf32>, vector<32x8xf32>, vector<16x8xf32> -> vector<16x8xf32>
    %c0_78 = arith.constant 0 : index
    %c0_79 = arith.constant 0 : index
    %c1_80 = arith.constant 1 : index
    %c32_81 = arith.constant 32 : index
    %c0_82 = arith.constant 0 : index
    %75 = vector.load %arg4[%c0_78, %c0_79, %c1_80, %c32_81, %c0_82] : memref<2x3x4x33x8xf32, #tpu.memory_space<vmem>>, vector<1x1x1x1x8xf32>
    %76 = vector.shape_cast %75 : vector<1x1x1x1x8xf32> to vector<1x8xf32>
    %77 = vector.broadcast %76 : vector<1x8xf32> to vector<16x8xf32>
    %78 = arith.addf %74, %77 : vector<16x8xf32>
    %79 = vector.shape_cast %78 : vector<16x8xf32> to vector<2x8x8xf32>
    %c0_83 = arith.constant 0 : index
    %c1_84 = arith.constant 1 : index
    %c1_85 = arith.constant 1 : index
    %c0_86 = arith.constant 0 : index
    %c0_87 = arith.constant 0 : index
    %80 = vector.load %arg4[%c0_83, %c1_84, %c1_85, %c0_86, %c0_87] : memref<2x3x4x33x8xf32, #tpu.memory_space<vmem>>, vector<1x1x1x32x8xf32>
    %81 = vector.shape_cast %80 : vector<1x1x1x32x8xf32> to vector<32x8xf32>
    %cst_88 = arith.constant dense<0.000000e+00> : vector<16x8xf32>
    %82 = tpu.matmul %9, %81, %cst_88 {dimension_numbers = #tpu.dot_dimension_numbers<[1], [0], [0], [1], [0, 0, 1, 1], [], []>} : vector<16x32xf32>, vector<32x8xf32>, vector<16x8xf32> -> vector<16x8xf32>
    %c0_89 = arith.constant 0 : index
    %c1_90 = arith.constant 1 : index
    %c1_91 = arith.constant 1 : index
    %c32_92 = arith.constant 32 : index
    %c0_93 = arith.constant 0 : index
    %83 = vector.load %arg4[%c0_89, %c1_90, %c1_91, %c32_92, %c0_93] : memref<2x3x4x33x8xf32, #tpu.memory_space<vmem>>, vector<1x1x1x1x8xf32>
    %84 = vector.shape_cast %83 : vector<1x1x1x1x8xf32> to vector<1x8xf32>
    %85 = vector.broadcast %84 : vector<1x8xf32> to vector<16x8xf32>
    %86 = arith.addf %82, %85 : vector<16x8xf32>
    %87 = vector.shape_cast %86 : vector<16x8xf32> to vector<2x8x8xf32>
    %c0_94 = arith.constant 0 : index
    %c2_95 = arith.constant 2 : index
    %c1_96 = arith.constant 1 : index
    %c0_97 = arith.constant 0 : index
    %c0_98 = arith.constant 0 : index
    %88 = vector.load %arg4[%c0_94, %c2_95, %c1_96, %c0_97, %c0_98] : memref<2x3x4x33x8xf32, #tpu.memory_space<vmem>>, vector<1x1x1x32x8xf32>
    %89 = vector.shape_cast %88 : vector<1x1x1x32x8xf32> to vector<32x8xf32>
    %cst_99 = arith.constant dense<0.000000e+00> : vector<16x8xf32>
    %90 = tpu.matmul %9, %89, %cst_99 {dimension_numbers = #tpu.dot_dimension_numbers<[1], [0], [0], [1], [0, 0, 1, 1], [], []>} : vector<16x32xf32>, vector<32x8xf32>, vector<16x8xf32> -> vector<16x8xf32>
    %c0_100 = arith.constant 0 : index
    %c2_101 = arith.constant 2 : index
    %c1_102 = arith.constant 1 : index
    %c32_103 = arith.constant 32 : index
    %c0_104 = arith.constant 0 : index
    %91 = vector.load %arg4[%c0_100, %c2_101, %c1_102, %c32_103, %c0_104] : memref<2x3x4x33x8xf32, #tpu.memory_space<vmem>>, vector<1x1x1x1x8xf32>
    %92 = vector.shape_cast %91 : vector<1x1x1x1x8xf32> to vector<1x8xf32>
    %93 = vector.broadcast %92 : vector<1x8xf32> to vector<16x8xf32>
    %94 = arith.addf %90, %93 : vector<16x8xf32>
    %95 = vector.shape_cast %94 : vector<16x8xf32> to vector<2x8x8xf32>
    "tpu.trace_start"() <{level = 10 : i32, message = "bqd,bkd->bqk"}> : () -> ()
    %cst_105 = arith.constant dense<0.000000e+00> : vector<2x8x8xf32>
    %96 = tpu.matmul %79, %87, %cst_105 {dimension_numbers = #tpu.dot_dimension_numbers<[2], [2], [1], [1], [0, 0, 0, 1, 1, 1], [0], [0]>} : vector<2x8x8xf32>, vector<2x8x8xf32>, vector<2x8x8xf32> -> vector<2x8x8xf32>
    "tpu.trace_stop"() : () -> ()
    %97 = vector.broadcast %15 : vector<1x1x8xf32> to vector<2x8x8xf32>
    %98 = arith.addf %96, %97 : vector<2x8x8xf32>
    %cst_106 = arith.constant dense<0xFF800000> : vector<2x8xf32>
    %99 = vector.multi_reduction <maximumf>, %98, %cst_106 [2] : vector<2x8x8xf32> to vector<2x8xf32>
    %100 = vector.shape_cast %99 : vector<2x8xf32> to vector<2x8x1xf32>
    %101 = vector.broadcast %100 : vector<2x8x1xf32> to vector<2x8x8xf32>
    %102 = arith.subf %98, %101 : vector<2x8x8xf32>
    %103 = math.exp %102 : vector<2x8x8xf32>
    %cst_107 = arith.constant dense<0.000000e+00> : vector<2x8xf32>
    %104 = vector.multi_reduction <add>, %103, %cst_107 [2] : vector<2x8x8xf32> to vector<2x8xf32>
    %105 = vector.shape_cast %104 : vector<2x8xf32> to vector<2x8x1xf32>
    %106 = tpu.reciprocal %105 {approx = true} : vector<2x8x1xf32> -> vector<2x8x1xf32>
    %107 = vector.broadcast %106 : vector<2x8x1xf32> to vector<2x8x8xf32>
    %108 = arith.mulf %103, %107 : vector<2x8x8xf32>
    "tpu.trace_start"() <{level = 10 : i32, message = "bqk,bkd->bqd"}> : () -> ()
    %cst_108 = arith.constant dense<0.000000e+00> : vector<2x8x8xf32>
    %109 = tpu.matmul %108, %95, %cst_108 {dimension_numbers = #tpu.dot_dimension_numbers<[2], [1], [1], [2], [0, 0, 0, 1, 1, 2], [0], [0]>} : vector<2x8x8xf32>, vector<2x8x8xf32>, vector<2x8x8xf32> -> vector<2x8x8xf32>
    "tpu.trace_stop"() : () -> ()
    %110 = vector.shape_cast %109 : vector<2x8x8xf32> to vector<16x8xf32>
    %c0_109 = arith.constant 0 : index
    %c1_110 = arith.constant 1 : index
    %c0_111 = arith.constant 0 : index
    %c0_112 = arith.constant 0 : index
    %111 = vector.load %arg5[%c0_109, %c1_110, %c0_111, %c0_112] : memref<2x4x8x32xf32, #tpu.memory_space<vmem>>, vector<1x1x8x32xf32>
    %112 = vector.shape_cast %111 : vector<1x1x8x32xf32> to vector<8x32xf32>
    %cst_113 = arith.constant dense<0.000000e+00> : vector<16x32xf32>
    %113 = tpu.matmul %110, %112, %cst_113 {dimension_numbers = #tpu.dot_dimension_numbers<[1], [0], [0], [1], [0, 0, 1, 1], [], []>} : vector<16x8xf32>, vector<8x32xf32>, vector<16x32xf32> -> vector<16x32xf32>
    %114 = arith.addf %71, %113 : vector<16x32xf32>
    %c0_114 = arith.constant 0 : index
    %c0_115 = arith.constant 0 : index
    %c2_116 = arith.constant 2 : index
    %c0_117 = arith.constant 0 : index
    %c0_118 = arith.constant 0 : index
    %115 = vector.load %arg4[%c0_114, %c0_115, %c2_116, %c0_117, %c0_118] : memref<2x3x4x33x8xf32, #tpu.memory_space<vmem>>, vector<1x1x1x32x8xf32>
    %116 = vector.shape_cast %115 : vector<1x1x1x32x8xf32> to vector<32x8xf32>
    %cst_119 = arith.constant dense<0.000000e+00> : vector<16x8xf32>
    %117 = tpu.matmul %9, %116, %cst_119 {dimension_numbers = #tpu.dot_dimension_numbers<[1], [0], [0], [1], [0, 0, 1, 1], [], []>} : vector<16x32xf32>, vector<32x8xf32>, vector<16x8xf32> -> vector<16x8xf32>
    %c0_120 = arith.constant 0 : index
    %c0_121 = arith.constant 0 : index
    %c2_122 = arith.constant 2 : index
    %c32_123 = arith.constant 32 : index
    %c0_124 = arith.constant 0 : index
    %118 = vector.load %arg4[%c0_120, %c0_121, %c2_122, %c32_123, %c0_124] : memref<2x3x4x33x8xf32, #tpu.memory_space<vmem>>, vector<1x1x1x1x8xf32>
    %119 = vector.shape_cast %118 : vector<1x1x1x1x8xf32> to vector<1x8xf32>
    %120 = vector.broadcast %119 : vector<1x8xf32> to vector<16x8xf32>
    %121 = arith.addf %117, %120 : vector<16x8xf32>
    %122 = vector.shape_cast %121 : vector<16x8xf32> to vector<2x8x8xf32>
    %c0_125 = arith.constant 0 : index
    %c1_126 = arith.constant 1 : index
    %c2_127 = arith.constant 2 : index
    %c0_128 = arith.constant 0 : index
    %c0_129 = arith.constant 0 : index
    %123 = vector.load %arg4[%c0_125, %c1_126, %c2_127, %c0_128, %c0_129] : memref<2x3x4x33x8xf32, #tpu.memory_space<vmem>>, vector<1x1x1x32x8xf32>
    %124 = vector.shape_cast %123 : vector<1x1x1x32x8xf32> to vector<32x8xf32>
    %cst_130 = arith.constant dense<0.000000e+00> : vector<16x8xf32>
    %125 = tpu.matmul %9, %124, %cst_130 {dimension_numbers = #tpu.dot_dimension_numbers<[1], [0], [0], [1], [0, 0, 1, 1], [], []>} : vector<16x32xf32>, vector<32x8xf32>, vector<16x8xf32> -> vector<16x8xf32>
    %c0_131 = arith.constant 0 : index
    %c1_132 = arith.constant 1 : index
    %c2_133 = arith.constant 2 : index
    %c32_134 = arith.constant 32 : index
    %c0_135 = arith.constant 0 : index
    %126 = vector.load %arg4[%c0_131, %c1_132, %c2_133, %c32_134, %c0_135] : memref<2x3x4x33x8xf32, #tpu.memory_space<vmem>>, vector<1x1x1x1x8xf32>
    %127 = vector.shape_cast %126 : vector<1x1x1x1x8xf32> to vector<1x8xf32>
    %128 = vector.broadcast %127 : vector<1x8xf32> to vector<16x8xf32>
    %129 = arith.addf %125, %128 : vector<16x8xf32>
    %130 = vector.shape_cast %129 : vector<16x8xf32> to vector<2x8x8xf32>
    %c0_136 = arith.constant 0 : index
    %c2_137 = arith.constant 2 : index
    %c2_138 = arith.constant 2 : index
    %c0_139 = arith.constant 0 : index
    %c0_140 = arith.constant 0 : index
    %131 = vector.load %arg4[%c0_136, %c2_137, %c2_138, %c0_139, %c0_140] : memref<2x3x4x33x8xf32, #tpu.memory_space<vmem>>, vector<1x1x1x32x8xf32>
    %132 = vector.shape_cast %131 : vector<1x1x1x32x8xf32> to vector<32x8xf32>
    %cst_141 = arith.constant dense<0.000000e+00> : vector<16x8xf32>
    %133 = tpu.matmul %9, %132, %cst_141 {dimension_numbers = #tpu.dot_dimension_numbers<[1], [0], [0], [1], [0, 0, 1, 1], [], []>} : vector<16x32xf32>, vector<32x8xf32>, vector<16x8xf32> -> vector<16x8xf32>
    %c0_142 = arith.constant 0 : index
    %c2_143 = arith.constant 2 : index
    %c2_144 = arith.constant 2 : index
    %c32_145 = arith.constant 32 : index
    %c0_146 = arith.constant 0 : index
    %134 = vector.load %arg4[%c0_142, %c2_143, %c2_144, %c32_145, %c0_146] : memref<2x3x4x33x8xf32, #tpu.memory_space<vmem>>, vector<1x1x1x1x8xf32>
    %135 = vector.shape_cast %134 : vector<1x1x1x1x8xf32> to vector<1x8xf32>
    %136 = vector.broadcast %135 : vector<1x8xf32> to vector<16x8xf32>
    %137 = arith.addf %133, %136 : vector<16x8xf32>
    %138 = vector.shape_cast %137 : vector<16x8xf32> to vector<2x8x8xf32>
    "tpu.trace_start"() <{level = 10 : i32, message = "bqd,bkd->bqk"}> : () -> ()
    %cst_147 = arith.constant dense<0.000000e+00> : vector<2x8x8xf32>
    %139 = tpu.matmul %122, %130, %cst_147 {dimension_numbers = #tpu.dot_dimension_numbers<[2], [2], [1], [1], [0, 0, 0, 1, 1, 1], [0], [0]>} : vector<2x8x8xf32>, vector<2x8x8xf32>, vector<2x8x8xf32> -> vector<2x8x8xf32>
    "tpu.trace_stop"() : () -> ()
    %140 = vector.broadcast %15 : vector<1x1x8xf32> to vector<2x8x8xf32>
    %141 = arith.addf %139, %140 : vector<2x8x8xf32>
    %cst_148 = arith.constant dense<0xFF800000> : vector<2x8xf32>
    %142 = vector.multi_reduction <maximumf>, %141, %cst_148 [2] : vector<2x8x8xf32> to vector<2x8xf32>
    %143 = vector.shape_cast %142 : vector<2x8xf32> to vector<2x8x1xf32>
    %144 = vector.broadcast %143 : vector<2x8x1xf32> to vector<2x8x8xf32>
    %145 = arith.subf %141, %144 : vector<2x8x8xf32>
    %146 = math.exp %145 : vector<2x8x8xf32>
    %cst_149 = arith.constant dense<0.000000e+00> : vector<2x8xf32>
    %147 = vector.multi_reduction <add>, %146, %cst_149 [2] : vector<2x8x8xf32> to vector<2x8xf32>
    %148 = vector.shape_cast %147 : vector<2x8xf32> to vector<2x8x1xf32>
    %149 = tpu.reciprocal %148 {approx = true} : vector<2x8x1xf32> -> vector<2x8x1xf32>
    %150 = vector.broadcast %149 : vector<2x8x1xf32> to vector<2x8x8xf32>
    %151 = arith.mulf %146, %150 : vector<2x8x8xf32>
    "tpu.trace_start"() <{level = 10 : i32, message = "bqk,bkd->bqd"}> : () -> ()
    %cst_150 = arith.constant dense<0.000000e+00> : vector<2x8x8xf32>
    %152 = tpu.matmul %151, %138, %cst_150 {dimension_numbers = #tpu.dot_dimension_numbers<[2], [1], [1], [2], [0, 0, 0, 1, 1, 2], [0], [0]>} : vector<2x8x8xf32>, vector<2x8x8xf32>, vector<2x8x8xf32> -> vector<2x8x8xf32>
    "tpu.trace_stop"() : () -> ()
    %153 = vector.shape_cast %152 : vector<2x8x8xf32> to vector<16x8xf32>
    %c0_151 = arith.constant 0 : index
    %c2_152 = arith.constant 2 : index
    %c0_153 = arith.constant 0 : index
    %c0_154 = arith.constant 0 : index
    %154 = vector.load %arg5[%c0_151, %c2_152, %c0_153, %c0_154] : memref<2x4x8x32xf32, #tpu.memory_space<vmem>>, vector<1x1x8x32xf32>
    %155 = vector.shape_cast %154 : vector<1x1x8x32xf32> to vector<8x32xf32>
    %cst_155 = arith.constant dense<0.000000e+00> : vector<16x32xf32>
    %156 = tpu.matmul %153, %155, %cst_155 {dimension_numbers = #tpu.dot_dimension_numbers<[1], [0], [0], [1], [0, 0, 1, 1], [], []>} : vector<16x8xf32>, vector<8x32xf32>, vector<16x32xf32> -> vector<16x32xf32>
    %157 = arith.addf %114, %156 : vector<16x32xf32>
    %c0_156 = arith.constant 0 : index
    %c0_157 = arith.constant 0 : index
    %c3_158 = arith.constant 3 : index
    %c0_159 = arith.constant 0 : index
    %c0_160 = arith.constant 0 : index
    %158 = vector.load %arg4[%c0_156, %c0_157, %c3_158, %c0_159, %c0_160] : memref<2x3x4x33x8xf32, #tpu.memory_space<vmem>>, vector<1x1x1x32x8xf32>
    %159 = vector.shape_cast %158 : vector<1x1x1x32x8xf32> to vector<32x8xf32>
    %cst_161 = arith.constant dense<0.000000e+00> : vector<16x8xf32>
    %160 = tpu.matmul %9, %159, %cst_161 {dimension_numbers = #tpu.dot_dimension_numbers<[1], [0], [0], [1], [0, 0, 1, 1], [], []>} : vector<16x32xf32>, vector<32x8xf32>, vector<16x8xf32> -> vector<16x8xf32>
    %c0_162 = arith.constant 0 : index
    %c0_163 = arith.constant 0 : index
    %c3_164 = arith.constant 3 : index
    %c32_165 = arith.constant 32 : index
    %c0_166 = arith.constant 0 : index
    %161 = vector.load %arg4[%c0_162, %c0_163, %c3_164, %c32_165, %c0_166] : memref<2x3x4x33x8xf32, #tpu.memory_space<vmem>>, vector<1x1x1x1x8xf32>
    %162 = vector.shape_cast %161 : vector<1x1x1x1x8xf32> to vector<1x8xf32>
    %163 = vector.broadcast %162 : vector<1x8xf32> to vector<16x8xf32>
    %164 = arith.addf %160, %163 : vector<16x8xf32>
    %165 = vector.shape_cast %164 : vector<16x8xf32> to vector<2x8x8xf32>
    %c0_167 = arith.constant 0 : index
    %c1_168 = arith.constant 1 : index
    %c3_169 = arith.constant 3 : index
    %c0_170 = arith.constant 0 : index
    %c0_171 = arith.constant 0 : index
    %166 = vector.load %arg4[%c0_167, %c1_168, %c3_169, %c0_170, %c0_171] : memref<2x3x4x33x8xf32, #tpu.memory_space<vmem>>, vector<1x1x1x32x8xf32>
    %167 = vector.shape_cast %166 : vector<1x1x1x32x8xf32> to vector<32x8xf32>
    %cst_172 = arith.constant dense<0.000000e+00> : vector<16x8xf32>
    %168 = tpu.matmul %9, %167, %cst_172 {dimension_numbers = #tpu.dot_dimension_numbers<[1], [0], [0], [1], [0, 0, 1, 1], [], []>} : vector<16x32xf32>, vector<32x8xf32>, vector<16x8xf32> -> vector<16x8xf32>
    %c0_173 = arith.constant 0 : index
    %c1_174 = arith.constant 1 : index
    %c3_175 = arith.constant 3 : index
    %c32_176 = arith.constant 32 : index
    %c0_177 = arith.constant 0 : index
    %169 = vector.load %arg4[%c0_173, %c1_174, %c3_175, %c32_176, %c0_177] : memref<2x3x4x33x8xf32, #tpu.memory_space<vmem>>, vector<1x1x1x1x8xf32>
    %170 = vector.shape_cast %169 : vector<1x1x1x1x8xf32> to vector<1x8xf32>
    %171 = vector.broadcast %170 : vector<1x8xf32> to vector<16x8xf32>
    %172 = arith.addf %168, %171 : vector<16x8xf32>
    %173 = vector.shape_cast %172 : vector<16x8xf32> to vector<2x8x8xf32>
    %c0_178 = arith.constant 0 : index
    %c2_179 = arith.constant 2 : index
    %c3_180 = arith.constant 3 : index
    %c0_181 = arith.constant 0 : index
    %c0_182 = arith.constant 0 : index
    %174 = vector.load %arg4[%c0_178, %c2_179, %c3_180, %c0_181, %c0_182] : memref<2x3x4x33x8xf32, #tpu.memory_space<vmem>>, vector<1x1x1x32x8xf32>
    %175 = vector.shape_cast %174 : vector<1x1x1x32x8xf32> to vector<32x8xf32>
    %cst_183 = arith.constant dense<0.000000e+00> : vector<16x8xf32>
    %176 = tpu.matmul %9, %175, %cst_183 {dimension_numbers = #tpu.dot_dimension_numbers<[1], [0], [0], [1], [0, 0, 1, 1], [], []>} : vector<16x32xf32>, vector<32x8xf32>, vector<16x8xf32> -> vector<16x8xf32>
    %c0_184 = arith.constant 0 : index
    %c2_185 = arith.constant 2 : index
    %c3_186 = arith.constant 3 : index
    %c32_187 = arith.constant 32 : index
    %c0_188 = arith.constant 0 : index
    %177 = vector.load %arg4[%c0_184, %c2_185, %c3_186, %c32_187, %c0_188] : memref<2x3x4x33x8xf32, #tpu.memory_space<vmem>>, vector<1x1x1x1x8xf32>
    %178 = vector.shape_cast %177 : vector<1x1x1x1x8xf32> to vector<1x8xf32>
    %179 = vector.broadcast %178 : vector<1x8xf32> to vector<16x8xf32>
    %180 = arith.addf %176, %179 : vector<16x8xf32>
    %181 = vector.shape_cast %180 : vector<16x8xf32> to vector<2x8x8xf32>
    "tpu.trace_start"() <{level = 10 : i32, message = "bqd,bkd->bqk"}> : () -> ()
    %cst_189 = arith.constant dense<0.000000e+00> : vector<2x8x8xf32>
    %182 = tpu.matmul %165, %173, %cst_189 {dimension_numbers = #tpu.dot_dimension_numbers<[2], [2], [1], [1], [0, 0, 0, 1, 1, 1], [0], [0]>} : vector<2x8x8xf32>, vector<2x8x8xf32>, vector<2x8x8xf32> -> vector<2x8x8xf32>
    "tpu.trace_stop"() : () -> ()
    %183 = vector.broadcast %15 : vector<1x1x8xf32> to vector<2x8x8xf32>
    %184 = arith.addf %182, %183 : vector<2x8x8xf32>
    %cst_190 = arith.constant dense<0xFF800000> : vector<2x8xf32>
    %185 = vector.multi_reduction <maximumf>, %184, %cst_190 [2] : vector<2x8x8xf32> to vector<2x8xf32>
    %186 = vector.shape_cast %185 : vector<2x8xf32> to vector<2x8x1xf32>
    %187 = vector.broadcast %186 : vector<2x8x1xf32> to vector<2x8x8xf32>
    %188 = arith.subf %184, %187 : vector<2x8x8xf32>
    %189 = math.exp %188 : vector<2x8x8xf32>
    %cst_191 = arith.constant dense<0.000000e+00> : vector<2x8xf32>
    %190 = vector.multi_reduction <add>, %189, %cst_191 [2] : vector<2x8x8xf32> to vector<2x8xf32>
    %191 = vector.shape_cast %190 : vector<2x8xf32> to vector<2x8x1xf32>
    %192 = tpu.reciprocal %191 {approx = true} : vector<2x8x1xf32> -> vector<2x8x1xf32>
    %193 = vector.broadcast %192 : vector<2x8x1xf32> to vector<2x8x8xf32>
    %194 = arith.mulf %189, %193 : vector<2x8x8xf32>
    "tpu.trace_start"() <{level = 10 : i32, message = "bqk,bkd->bqd"}> : () -> ()
    %cst_192 = arith.constant dense<0.000000e+00> : vector<2x8x8xf32>
    %195 = tpu.matmul %194, %181, %cst_192 {dimension_numbers = #tpu.dot_dimension_numbers<[2], [1], [1], [2], [0, 0, 0, 1, 1, 2], [0], [0]>} : vector<2x8x8xf32>, vector<2x8x8xf32>, vector<2x8x8xf32> -> vector<2x8x8xf32>
    "tpu.trace_stop"() : () -> ()
    %196 = vector.shape_cast %195 : vector<2x8x8xf32> to vector<16x8xf32>
    %c0_193 = arith.constant 0 : index
    %c3_194 = arith.constant 3 : index
    %c0_195 = arith.constant 0 : index
    %c0_196 = arith.constant 0 : index
    %197 = vector.load %arg5[%c0_193, %c3_194, %c0_195, %c0_196] : memref<2x4x8x32xf32, #tpu.memory_space<vmem>>, vector<1x1x8x32xf32>
    %198 = vector.shape_cast %197 : vector<1x1x8x32xf32> to vector<8x32xf32>
    %cst_197 = arith.constant dense<0.000000e+00> : vector<16x32xf32>
    %199 = tpu.matmul %196, %198, %cst_197 {dimension_numbers = #tpu.dot_dimension_numbers<[1], [0], [0], [1], [0, 0, 1, 1], [], []>} : vector<16x8xf32>, vector<8x32xf32>, vector<16x32xf32> -> vector<16x32xf32>
    %200 = arith.addf %157, %199 : vector<16x32xf32>
    %201 = vector.broadcast %17 : vector<1x32xf32> to vector<16x32xf32>
    %202 = arith.addf %200, %201 : vector<16x32xf32>
    %203 = arith.addf %9, %202 : vector<16x32xf32>
    %cst_198 = arith.constant dense<0.000000e+00> : vector<16xf32>
    %204 = vector.multi_reduction <add>, %203, %cst_198 [1] : vector<16x32xf32> to vector<16xf32>
    %205 = vector.shape_cast %204 : vector<16xf32> to vector<16x1xf32>
    %cst_199 = arith.constant 3.200000e+01 : f32
    %206 = vector.broadcast %cst_199 : f32 to vector<16x1xf32>
    %207 = arith.divf %205, %206 : vector<16x1xf32>
    %208 = vector.broadcast %207 : vector<16x1xf32> to vector<16x32xf32>
    %209 = arith.subf %203, %208 : vector<16x32xf32>
    %210 = arith.mulf %209, %209 : vector<16x32xf32>
    %cst_200 = arith.constant dense<0.000000e+00> : vector<16xf32>
    %211 = vector.multi_reduction <add>, %210, %cst_200 [1] : vector<16x32xf32> to vector<16xf32>
    %212 = vector.shape_cast %211 : vector<16xf32> to vector<16x1xf32>
    %cst_201 = arith.constant 3.200000e+01 : f32
    %213 = vector.broadcast %cst_201 : f32 to vector<16x1xf32>
    %214 = arith.divf %212, %213 : vector<16x1xf32>
    %215 = vector.broadcast %207 : vector<16x1xf32> to vector<16x32xf32>
    %216 = arith.subf %203, %215 : vector<16x32xf32>
    %cst_202 = arith.constant 9.99999974E-6 : f32
    %217 = vector.broadcast %cst_202 : f32 to vector<16x1xf32>
    %218 = arith.addf %214, %217 : vector<16x1xf32>
    %219 = math.rsqrt %218 : vector<16x1xf32>
    %220 = vector.broadcast %219 : vector<16x1xf32> to vector<16x32xf32>
    %221 = arith.mulf %216, %220 : vector<16x32xf32>
    %222 = vector.broadcast %19 : vector<1x32xf32> to vector<16x32xf32>
    %223 = arith.mulf %221, %222 : vector<16x32xf32>
    %224 = vector.broadcast %21 : vector<1x32xf32> to vector<16x32xf32>
    %225 = arith.addf %223, %224 : vector<16x32xf32>
    %c0_203 = arith.constant 0 : index
    %c0_204 = arith.constant 0 : index
    %c0_205 = arith.constant 0 : index
    %226 = vector.load %arg6[%c0_203, %c0_204, %c0_205] : memref<2x33x256xf32, #tpu.memory_space<vmem>>, vector<1x32x256xf32>
    %227 = vector.shape_cast %226 : vector<1x32x256xf32> to vector<32x256xf32>
    %cst_206 = arith.constant dense<0.000000e+00> : vector<16x256xf32>
    %228 = tpu.matmul %225, %227, %cst_206 {dimension_numbers = #tpu.dot_dimension_numbers<[1], [0], [0], [1], [0, 0, 1, 1], [], []>} : vector<16x32xf32>, vector<32x256xf32>, vector<16x256xf32> -> vector<16x256xf32>
    %c0_207 = arith.constant 0 : index
    %c32_208 = arith.constant 32 : index
    %c0_209 = arith.constant 0 : index
    %229 = vector.load %arg6[%c0_207, %c32_208, %c0_209] : memref<2x33x256xf32, #tpu.memory_space<vmem>>, vector<1x1x256xf32>
    %230 = vector.shape_cast %229 : vector<1x1x256xf32> to vector<1x256xf32>
    %231 = vector.broadcast %230 : vector<1x256xf32> to vector<16x256xf32>
    %232 = arith.addf %228, %231 : vector<16x256xf32>
    %cst_210 = arith.constant 0.000000e+00 : f32
    %233 = vector.broadcast %cst_210 : f32 to vector<16x256xf32>
    %234 = arith.maximumf %232, %233 : vector<16x256xf32>
    %c0_211 = arith.constant 0 : index
    %c0_212 = arith.constant 0 : index
    %c0_213 = arith.constant 0 : index
    %235 = vector.load %arg7[%c0_211, %c0_212, %c0_213] : memref<2x256x32xf32, #tpu.memory_space<vmem>>, vector<1x256x32xf32>
    %236 = vector.shape_cast %235 : vector<1x256x32xf32> to vector<256x32xf32>
    %cst_214 = arith.constant dense<0.000000e+00> : vector<16x32xf32>
    %237 = tpu.matmul %234, %236, %cst_214 {dimension_numbers = #tpu.dot_dimension_numbers<[1], [0], [0], [1], [0, 0, 1, 1], [], []>} : vector<16x256xf32>, vector<256x32xf32>, vector<16x32xf32> -> vector<16x32xf32>
    %238 = vector.broadcast %23 : vector<1x32xf32> to vector<16x32xf32>
    %239 = arith.addf %237, %238 : vector<16x32xf32>
    %240 = arith.addf %225, %239 : vector<16x32xf32>
    %cst_215 = arith.constant dense<0.000000e+00> : vector<16xf32>
    %241 = vector.multi_reduction <add>, %240, %cst_215 [1] : vector<16x32xf32> to vector<16xf32>
    %242 = vector.shape_cast %241 : vector<16xf32> to vector<16x1xf32>
    %cst_216 = arith.constant 3.200000e+01 : f32
    %243 = vector.broadcast %cst_216 : f32 to vector<16x1xf32>
    %244 = arith.divf %242, %243 : vector<16x1xf32>
    %245 = vector.broadcast %244 : vector<16x1xf32> to vector<16x32xf32>
    %246 = arith.subf %240, %245 : vector<16x32xf32>
    %247 = arith.mulf %246, %246 : vector<16x32xf32>
    %cst_217 = arith.constant dense<0.000000e+00> : vector<16xf32>
    %248 = vector.multi_reduction <add>, %247, %cst_217 [1] : vector<16x32xf32> to vector<16xf32>
    %249 = vector.shape_cast %248 : vector<16xf32> to vector<16x1xf32>
    %cst_218 = arith.constant 3.200000e+01 : f32
    %250 = vector.broadcast %cst_218 : f32 to vector<16x1xf32>
    %251 = arith.divf %249, %250 : vector<16x1xf32>
    %252 = vector.broadcast %244 : vector<16x1xf32> to vector<16x32xf32>
    %253 = arith.subf %240, %252 : vector<16x32xf32>
    %cst_219 = arith.constant 9.99999974E-6 : f32
    %254 = vector.broadcast %cst_219 : f32 to vector<16x1xf32>
    %255 = arith.addf %251, %254 : vector<16x1xf32>
    %256 = math.rsqrt %255 : vector<16x1xf32>
    %257 = vector.broadcast %256 : vector<16x1xf32> to vector<16x32xf32>
    %258 = arith.mulf %253, %257 : vector<16x32xf32>
    %259 = vector.broadcast %25 : vector<1x32xf32> to vector<16x32xf32>
    %260 = arith.mulf %258, %259 : vector<16x32xf32>
    %261 = vector.broadcast %27 : vector<1x32xf32> to vector<16x32xf32>
    %262 = arith.addf %260, %261 : vector<16x32xf32>
    %c1_220 = arith.constant 1 : index
    %c0_221 = arith.constant 0 : index
    %c0_222 = arith.constant 0 : index
    %263 = vector.load %arg8[%c1_220, %c0_221, %c0_222] : memref<2x6x32xf32, #tpu.memory_space<vmem>>, vector<1x1x32xf32>
    %264 = vector.shape_cast %263 : vector<1x1x32xf32> to vector<1x32xf32>
    %c1_223 = arith.constant 1 : index
    %c1_224 = arith.constant 1 : index
    %c0_225 = arith.constant 0 : index
    %265 = vector.load %arg8[%c1_223, %c1_224, %c0_225] : memref<2x6x32xf32, #tpu.memory_space<vmem>>, vector<1x1x32xf32>
    %266 = vector.shape_cast %265 : vector<1x1x32xf32> to vector<1x32xf32>
    %c1_226 = arith.constant 1 : index
    %c2_227 = arith.constant 2 : index
    %c0_228 = arith.constant 0 : index
    %267 = vector.load %arg8[%c1_226, %c2_227, %c0_228] : memref<2x6x32xf32, #tpu.memory_space<vmem>>, vector<1x1x32xf32>
    %268 = vector.shape_cast %267 : vector<1x1x32xf32> to vector<1x32xf32>
    %c1_229 = arith.constant 1 : index
    %c3_230 = arith.constant 3 : index
    %c0_231 = arith.constant 0 : index
    %269 = vector.load %arg8[%c1_229, %c3_230, %c0_231] : memref<2x6x32xf32, #tpu.memory_space<vmem>>, vector<1x1x32xf32>
    %270 = vector.shape_cast %269 : vector<1x1x32xf32> to vector<1x32xf32>
    %c1_232 = arith.constant 1 : index
    %c4_233 = arith.constant 4 : index
    %c0_234 = arith.constant 0 : index
    %271 = vector.load %arg8[%c1_232, %c4_233, %c0_234] : memref<2x6x32xf32, #tpu.memory_space<vmem>>, vector<1x1x32xf32>
    %272 = vector.shape_cast %271 : vector<1x1x32xf32> to vector<1x32xf32>
    %c1_235 = arith.constant 1 : index
    %c5_236 = arith.constant 5 : index
    %c0_237 = arith.constant 0 : index
    %273 = vector.load %arg8[%c1_235, %c5_236, %c0_237] : memref<2x6x32xf32, #tpu.memory_space<vmem>>, vector<1x1x32xf32>
    %274 = vector.shape_cast %273 : vector<1x1x32xf32> to vector<1x32xf32>
    %cst_238 = arith.constant 0.000000e+00 : f32
    %275 = vector.broadcast %cst_238 : f32 to vector<16x32xf32>
    %c1_239 = arith.constant 1 : index
    %c0_240 = arith.constant 0 : index
    %c0_241 = arith.constant 0 : index
    %c0_242 = arith.constant 0 : index
    %c0_243 = arith.constant 0 : index
    %276 = vector.load %arg4[%c1_239, %c0_240, %c0_241, %c0_242, %c0_243] : memref<2x3x4x33x8xf32, #tpu.memory_space<vmem>>, vector<1x1x1x32x8xf32>
    %277 = vector.shape_cast %276 : vector<1x1x1x32x8xf32> to vector<32x8xf32>
    %cst_244 = arith.constant dense<0.000000e+00> : vector<16x8xf32>
    %278 = tpu.matmul %262, %277, %cst_244 {dimension_numbers = #tpu.dot_dimension_numbers<[1], [0], [0], [1], [0, 0, 1, 1], [], []>} : vector<16x32xf32>, vector<32x8xf32>, vector<16x8xf32> -> vector<16x8xf32>
    %c1_245 = arith.constant 1 : index
    %c0_246 = arith.constant 0 : index
    %c0_247 = arith.constant 0 : index
    %c32_248 = arith.constant 32 : index
    %c0_249 = arith.constant 0 : index
    %279 = vector.load %arg4[%c1_245, %c0_246, %c0_247, %c32_248, %c0_249] : memref<2x3x4x33x8xf32, #tpu.memory_space<vmem>>, vector<1x1x1x1x8xf32>
    %280 = vector.shape_cast %279 : vector<1x1x1x1x8xf32> to vector<1x8xf32>
    %281 = vector.broadcast %280 : vector<1x8xf32> to vector<16x8xf32>
    %282 = arith.addf %278, %281 : vector<16x8xf32>
    %283 = vector.shape_cast %282 : vector<16x8xf32> to vector<2x8x8xf32>
    %c1_250 = arith.constant 1 : index
    %c1_251 = arith.constant 1 : index
    %c0_252 = arith.constant 0 : index
    %c0_253 = arith.constant 0 : index
    %c0_254 = arith.constant 0 : index
    %284 = vector.load %arg4[%c1_250, %c1_251, %c0_252, %c0_253, %c0_254] : memref<2x3x4x33x8xf32, #tpu.memory_space<vmem>>, vector<1x1x1x32x8xf32>
    %285 = vector.shape_cast %284 : vector<1x1x1x32x8xf32> to vector<32x8xf32>
    %cst_255 = arith.constant dense<0.000000e+00> : vector<16x8xf32>
    %286 = tpu.matmul %262, %285, %cst_255 {dimension_numbers = #tpu.dot_dimension_numbers<[1], [0], [0], [1], [0, 0, 1, 1], [], []>} : vector<16x32xf32>, vector<32x8xf32>, vector<16x8xf32> -> vector<16x8xf32>
    %c1_256 = arith.constant 1 : index
    %c1_257 = arith.constant 1 : index
    %c0_258 = arith.constant 0 : index
    %c32_259 = arith.constant 32 : index
    %c0_260 = arith.constant 0 : index
    %287 = vector.load %arg4[%c1_256, %c1_257, %c0_258, %c32_259, %c0_260] : memref<2x3x4x33x8xf32, #tpu.memory_space<vmem>>, vector<1x1x1x1x8xf32>
    %288 = vector.shape_cast %287 : vector<1x1x1x1x8xf32> to vector<1x8xf32>
    %289 = vector.broadcast %288 : vector<1x8xf32> to vector<16x8xf32>
    %290 = arith.addf %286, %289 : vector<16x8xf32>
    %291 = vector.shape_cast %290 : vector<16x8xf32> to vector<2x8x8xf32>
    %c1_261 = arith.constant 1 : index
    %c2_262 = arith.constant 2 : index
    %c0_263 = arith.constant 0 : index
    %c0_264 = arith.constant 0 : index
    %c0_265 = arith.constant 0 : index
    %292 = vector.load %arg4[%c1_261, %c2_262, %c0_263, %c0_264, %c0_265] : memref<2x3x4x33x8xf32, #tpu.memory_space<vmem>>, vector<1x1x1x32x8xf32>
    %293 = vector.shape_cast %292 : vector<1x1x1x32x8xf32> to vector<32x8xf32>
    %cst_266 = arith.constant dense<0.000000e+00> : vector<16x8xf32>
    %294 = tpu.matmul %262, %293, %cst_266 {dimension_numbers = #tpu.dot_dimension_numbers<[1], [0], [0], [1], [0, 0, 1, 1], [], []>} : vector<16x32xf32>, vector<32x8xf32>, vector<16x8xf32> -> vector<16x8xf32>
    %c1_267 = arith.constant 1 : index
    %c2_268 = arith.constant 2 : index
    %c0_269 = arith.constant 0 : index
    %c32_270 = arith.constant 32 : index
    %c0_271 = arith.constant 0 : index
    %295 = vector.load %arg4[%c1_267, %c2_268, %c0_269, %c32_270, %c0_271] : memref<2x3x4x33x8xf32, #tpu.memory_space<vmem>>, vector<1x1x1x1x8xf32>
    %296 = vector.shape_cast %295 : vector<1x1x1x1x8xf32> to vector<1x8xf32>
    %297 = vector.broadcast %296 : vector<1x8xf32> to vector<16x8xf32>
    %298 = arith.addf %294, %297 : vector<16x8xf32>
    %299 = vector.shape_cast %298 : vector<16x8xf32> to vector<2x8x8xf32>
    "tpu.trace_start"() <{level = 10 : i32, message = "bqd,bkd->bqk"}> : () -> ()
    %cst_272 = arith.constant dense<0.000000e+00> : vector<2x8x8xf32>
    %300 = tpu.matmul %283, %291, %cst_272 {dimension_numbers = #tpu.dot_dimension_numbers<[2], [2], [1], [1], [0, 0, 0, 1, 1, 1], [0], [0]>} : vector<2x8x8xf32>, vector<2x8x8xf32>, vector<2x8x8xf32> -> vector<2x8x8xf32>
    "tpu.trace_stop"() : () -> ()
    %301 = vector.broadcast %15 : vector<1x1x8xf32> to vector<2x8x8xf32>
    %302 = arith.addf %300, %301 : vector<2x8x8xf32>
    %cst_273 = arith.constant dense<0xFF800000> : vector<2x8xf32>
    %303 = vector.multi_reduction <maximumf>, %302, %cst_273 [2] : vector<2x8x8xf32> to vector<2x8xf32>
    %304 = vector.shape_cast %303 : vector<2x8xf32> to vector<2x8x1xf32>
    %305 = vector.broadcast %304 : vector<2x8x1xf32> to vector<2x8x8xf32>
    %306 = arith.subf %302, %305 : vector<2x8x8xf32>
    %307 = math.exp %306 : vector<2x8x8xf32>
    %cst_274 = arith.constant dense<0.000000e+00> : vector<2x8xf32>
    %308 = vector.multi_reduction <add>, %307, %cst_274 [2] : vector<2x8x8xf32> to vector<2x8xf32>
    %309 = vector.shape_cast %308 : vector<2x8xf32> to vector<2x8x1xf32>
    %310 = tpu.reciprocal %309 {approx = true} : vector<2x8x1xf32> -> vector<2x8x1xf32>
    %311 = vector.broadcast %310 : vector<2x8x1xf32> to vector<2x8x8xf32>
    %312 = arith.mulf %307, %311 : vector<2x8x8xf32>
    "tpu.trace_start"() <{level = 10 : i32, message = "bqk,bkd->bqd"}> : () -> ()
    %cst_275 = arith.constant dense<0.000000e+00> : vector<2x8x8xf32>
    %313 = tpu.matmul %312, %299, %cst_275 {dimension_numbers = #tpu.dot_dimension_numbers<[2], [1], [1], [2], [0, 0, 0, 1, 1, 2], [0], [0]>} : vector<2x8x8xf32>, vector<2x8x8xf32>, vector<2x8x8xf32> -> vector<2x8x8xf32>
    "tpu.trace_stop"() : () -> ()
    %314 = vector.shape_cast %313 : vector<2x8x8xf32> to vector<16x8xf32>
    %c1_276 = arith.constant 1 : index
    %c0_277 = arith.constant 0 : index
    %c0_278 = arith.constant 0 : index
    %c0_279 = arith.constant 0 : index
    %315 = vector.load %arg5[%c1_276, %c0_277, %c0_278, %c0_279] : memref<2x4x8x32xf32, #tpu.memory_space<vmem>>, vector<1x1x8x32xf32>
    %316 = vector.shape_cast %315 : vector<1x1x8x32xf32> to vector<8x32xf32>
    %cst_280 = arith.constant dense<0.000000e+00> : vector<16x32xf32>
    %317 = tpu.matmul %314, %316, %cst_280 {dimension_numbers = #tpu.dot_dimension_numbers<[1], [0], [0], [1], [0, 0, 1, 1], [], []>} : vector<16x8xf32>, vector<8x32xf32>, vector<16x32xf32> -> vector<16x32xf32>
    %318 = arith.addf %275, %317 : vector<16x32xf32>
    %c1_281 = arith.constant 1 : index
    %c0_282 = arith.constant 0 : index
    %c1_283 = arith.constant 1 : index
    %c0_284 = arith.constant 0 : index
    %c0_285 = arith.constant 0 : index
    %319 = vector.load %arg4[%c1_281, %c0_282, %c1_283, %c0_284, %c0_285] : memref<2x3x4x33x8xf32, #tpu.memory_space<vmem>>, vector<1x1x1x32x8xf32>
    %320 = vector.shape_cast %319 : vector<1x1x1x32x8xf32> to vector<32x8xf32>
    %cst_286 = arith.constant dense<0.000000e+00> : vector<16x8xf32>
    %321 = tpu.matmul %262, %320, %cst_286 {dimension_numbers = #tpu.dot_dimension_numbers<[1], [0], [0], [1], [0, 0, 1, 1], [], []>} : vector<16x32xf32>, vector<32x8xf32>, vector<16x8xf32> -> vector<16x8xf32>
    %c1_287 = arith.constant 1 : index
    %c0_288 = arith.constant 0 : index
    %c1_289 = arith.constant 1 : index
    %c32_290 = arith.constant 32 : index
    %c0_291 = arith.constant 0 : index
    %322 = vector.load %arg4[%c1_287, %c0_288, %c1_289, %c32_290, %c0_291] : memref<2x3x4x33x8xf32, #tpu.memory_space<vmem>>, vector<1x1x1x1x8xf32>
    %323 = vector.shape_cast %322 : vector<1x1x1x1x8xf32> to vector<1x8xf32>
    %324 = vector.broadcast %323 : vector<1x8xf32> to vector<16x8xf32>
    %325 = arith.addf %321, %324 : vector<16x8xf32>
    %326 = vector.shape_cast %325 : vector<16x8xf32> to vector<2x8x8xf32>
    %c1_292 = arith.constant 1 : index
    %c1_293 = arith.constant 1 : index
    %c1_294 = arith.constant 1 : index
    %c0_295 = arith.constant 0 : index
    %c0_296 = arith.constant 0 : index
    %327 = vector.load %arg4[%c1_292, %c1_293, %c1_294, %c0_295, %c0_296] : memref<2x3x4x33x8xf32, #tpu.memory_space<vmem>>, vector<1x1x1x32x8xf32>
    %328 = vector.shape_cast %327 : vector<1x1x1x32x8xf32> to vector<32x8xf32>
    %cst_297 = arith.constant dense<0.000000e+00> : vector<16x8xf32>
    %329 = tpu.matmul %262, %328, %cst_297 {dimension_numbers = #tpu.dot_dimension_numbers<[1], [0], [0], [1], [0, 0, 1, 1], [], []>} : vector<16x32xf32>, vector<32x8xf32>, vector<16x8xf32> -> vector<16x8xf32>
    %c1_298 = arith.constant 1 : index
    %c1_299 = arith.constant 1 : index
    %c1_300 = arith.constant 1 : index
    %c32_301 = arith.constant 32 : index
    %c0_302 = arith.constant 0 : index
    %330 = vector.load %arg4[%c1_298, %c1_299, %c1_300, %c32_301, %c0_302] : memref<2x3x4x33x8xf32, #tpu.memory_space<vmem>>, vector<1x1x1x1x8xf32>
    %331 = vector.shape_cast %330 : vector<1x1x1x1x8xf32> to vector<1x8xf32>
    %332 = vector.broadcast %331 : vector<1x8xf32> to vector<16x8xf32>
    %333 = arith.addf %329, %332 : vector<16x8xf32>
    %334 = vector.shape_cast %333 : vector<16x8xf32> to vector<2x8x8xf32>
    %c1_303 = arith.constant 1 : index
    %c2_304 = arith.constant 2 : index
    %c1_305 = arith.constant 1 : index
    %c0_306 = arith.constant 0 : index
    %c0_307 = arith.constant 0 : index
    %335 = vector.load %arg4[%c1_303, %c2_304, %c1_305, %c0_306, %c0_307] : memref<2x3x4x33x8xf32, #tpu.memory_space<vmem>>, vector<1x1x1x32x8xf32>
    %336 = vector.shape_cast %335 : vector<1x1x1x32x8xf32> to vector<32x8xf32>
    %cst_308 = arith.constant dense<0.000000e+00> : vector<16x8xf32>
    %337 = tpu.matmul %262, %336, %cst_308 {dimension_numbers = #tpu.dot_dimension_numbers<[1], [0], [0], [1], [0, 0, 1, 1], [], []>} : vector<16x32xf32>, vector<32x8xf32>, vector<16x8xf32> -> vector<16x8xf32>
    %c1_309 = arith.constant 1 : index
    %c2_310 = arith.constant 2 : index
    %c1_311 = arith.constant 1 : index
    %c32_312 = arith.constant 32 : index
    %c0_313 = arith.constant 0 : index
    %338 = vector.load %arg4[%c1_309, %c2_310, %c1_311, %c32_312, %c0_313] : memref<2x3x4x33x8xf32, #tpu.memory_space<vmem>>, vector<1x1x1x1x8xf32>
    %339 = vector.shape_cast %338 : vector<1x1x1x1x8xf32> to vector<1x8xf32>
    %340 = vector.broadcast %339 : vector<1x8xf32> to vector<16x8xf32>
    %341 = arith.addf %337, %340 : vector<16x8xf32>
    %342 = vector.shape_cast %341 : vector<16x8xf32> to vector<2x8x8xf32>
    "tpu.trace_start"() <{level = 10 : i32, message = "bqd,bkd->bqk"}> : () -> ()
    %cst_314 = arith.constant dense<0.000000e+00> : vector<2x8x8xf32>
    %343 = tpu.matmul %326, %334, %cst_314 {dimension_numbers = #tpu.dot_dimension_numbers<[2], [2], [1], [1], [0, 0, 0, 1, 1, 1], [0], [0]>} : vector<2x8x8xf32>, vector<2x8x8xf32>, vector<2x8x8xf32> -> vector<2x8x8xf32>
    "tpu.trace_stop"() : () -> ()
    %344 = vector.broadcast %15 : vector<1x1x8xf32> to vector<2x8x8xf32>
    %345 = arith.addf %343, %344 : vector<2x8x8xf32>
    %cst_315 = arith.constant dense<0xFF800000> : vector<2x8xf32>
    %346 = vector.multi_reduction <maximumf>, %345, %cst_315 [2] : vector<2x8x8xf32> to vector<2x8xf32>
    %347 = vector.shape_cast %346 : vector<2x8xf32> to vector<2x8x1xf32>
    %348 = vector.broadcast %347 : vector<2x8x1xf32> to vector<2x8x8xf32>
    %349 = arith.subf %345, %348 : vector<2x8x8xf32>
    %350 = math.exp %349 : vector<2x8x8xf32>
    %cst_316 = arith.constant dense<0.000000e+00> : vector<2x8xf32>
    %351 = vector.multi_reduction <add>, %350, %cst_316 [2] : vector<2x8x8xf32> to vector<2x8xf32>
    %352 = vector.shape_cast %351 : vector<2x8xf32> to vector<2x8x1xf32>
    %353 = tpu.reciprocal %352 {approx = true} : vector<2x8x1xf32> -> vector<2x8x1xf32>
    %354 = vector.broadcast %353 : vector<2x8x1xf32> to vector<2x8x8xf32>
    %355 = arith.mulf %350, %354 : vector<2x8x8xf32>
    "tpu.trace_start"() <{level = 10 : i32, message = "bqk,bkd->bqd"}> : () -> ()
    %cst_317 = arith.constant dense<0.000000e+00> : vector<2x8x8xf32>
    %356 = tpu.matmul %355, %342, %cst_317 {dimension_numbers = #tpu.dot_dimension_numbers<[2], [1], [1], [2], [0, 0, 0, 1, 1, 2], [0], [0]>} : vector<2x8x8xf32>, vector<2x8x8xf32>, vector<2x8x8xf32> -> vector<2x8x8xf32>
    "tpu.trace_stop"() : () -> ()
    %357 = vector.shape_cast %356 : vector<2x8x8xf32> to vector<16x8xf32>
    %c1_318 = arith.constant 1 : index
    %c1_319 = arith.constant 1 : index
    %c0_320 = arith.constant 0 : index
    %c0_321 = arith.constant 0 : index
    %358 = vector.load %arg5[%c1_318, %c1_319, %c0_320, %c0_321] : memref<2x4x8x32xf32, #tpu.memory_space<vmem>>, vector<1x1x8x32xf32>
    %359 = vector.shape_cast %358 : vector<1x1x8x32xf32> to vector<8x32xf32>
    %cst_322 = arith.constant dense<0.000000e+00> : vector<16x32xf32>
    %360 = tpu.matmul %357, %359, %cst_322 {dimension_numbers = #tpu.dot_dimension_numbers<[1], [0], [0], [1], [0, 0, 1, 1], [], []>} : vector<16x8xf32>, vector<8x32xf32>, vector<16x32xf32> -> vector<16x32xf32>
    %361 = arith.addf %318, %360 : vector<16x32xf32>
    %c1_323 = arith.constant 1 : index
    %c0_324 = arith.constant 0 : index
    %c2_325 = arith.constant 2 : index
    %c0_326 = arith.constant 0 : index
    %c0_327 = arith.constant 0 : index
    %362 = vector.load %arg4[%c1_323, %c0_324, %c2_325, %c0_326, %c0_327] : memref<2x3x4x33x8xf32, #tpu.memory_space<vmem>>, vector<1x1x1x32x8xf32>
    %363 = vector.shape_cast %362 : vector<1x1x1x32x8xf32> to vector<32x8xf32>
    %cst_328 = arith.constant dense<0.000000e+00> : vector<16x8xf32>
    %364 = tpu.matmul %262, %363, %cst_328 {dimension_numbers = #tpu.dot_dimension_numbers<[1], [0], [0], [1], [0, 0, 1, 1], [], []>} : vector<16x32xf32>, vector<32x8xf32>, vector<16x8xf32> -> vector<16x8xf32>
    %c1_329 = arith.constant 1 : index
    %c0_330 = arith.constant 0 : index
    %c2_331 = arith.constant 2 : index
    %c32_332 = arith.constant 32 : index
    %c0_333 = arith.constant 0 : index
    %365 = vector.load %arg4[%c1_329, %c0_330, %c2_331, %c32_332, %c0_333] : memref<2x3x4x33x8xf32, #tpu.memory_space<vmem>>, vector<1x1x1x1x8xf32>
    %366 = vector.shape_cast %365 : vector<1x1x1x1x8xf32> to vector<1x8xf32>
    %367 = vector.broadcast %366 : vector<1x8xf32> to vector<16x8xf32>
    %368 = arith.addf %364, %367 : vector<16x8xf32>
    %369 = vector.shape_cast %368 : vector<16x8xf32> to vector<2x8x8xf32>
    %c1_334 = arith.constant 1 : index
    %c1_335 = arith.constant 1 : index
    %c2_336 = arith.constant 2 : index
    %c0_337 = arith.constant 0 : index
    %c0_338 = arith.constant 0 : index
    %370 = vector.load %arg4[%c1_334, %c1_335, %c2_336, %c0_337, %c0_338] : memref<2x3x4x33x8xf32, #tpu.memory_space<vmem>>, vector<1x1x1x32x8xf32>
    %371 = vector.shape_cast %370 : vector<1x1x1x32x8xf32> to vector<32x8xf32>
    %cst_339 = arith.constant dense<0.000000e+00> : vector<16x8xf32>
    %372 = tpu.matmul %262, %371, %cst_339 {dimension_numbers = #tpu.dot_dimension_numbers<[1], [0], [0], [1], [0, 0, 1, 1], [], []>} : vector<16x32xf32>, vector<32x8xf32>, vector<16x8xf32> -> vector<16x8xf32>
    %c1_340 = arith.constant 1 : index
    %c1_341 = arith.constant 1 : index
    %c2_342 = arith.constant 2 : index
    %c32_343 = arith.constant 32 : index
    %c0_344 = arith.constant 0 : index
    %373 = vector.load %arg4[%c1_340, %c1_341, %c2_342, %c32_343, %c0_344] : memref<2x3x4x33x8xf32, #tpu.memory_space<vmem>>, vector<1x1x1x1x8xf32>
    %374 = vector.shape_cast %373 : vector<1x1x1x1x8xf32> to vector<1x8xf32>
    %375 = vector.broadcast %374 : vector<1x8xf32> to vector<16x8xf32>
    %376 = arith.addf %372, %375 : vector<16x8xf32>
    %377 = vector.shape_cast %376 : vector<16x8xf32> to vector<2x8x8xf32>
    %c1_345 = arith.constant 1 : index
    %c2_346 = arith.constant 2 : index
    %c2_347 = arith.constant 2 : index
    %c0_348 = arith.constant 0 : index
    %c0_349 = arith.constant 0 : index
    %378 = vector.load %arg4[%c1_345, %c2_346, %c2_347, %c0_348, %c0_349] : memref<2x3x4x33x8xf32, #tpu.memory_space<vmem>>, vector<1x1x1x32x8xf32>
    %379 = vector.shape_cast %378 : vector<1x1x1x32x8xf32> to vector<32x8xf32>
    %cst_350 = arith.constant dense<0.000000e+00> : vector<16x8xf32>
    %380 = tpu.matmul %262, %379, %cst_350 {dimension_numbers = #tpu.dot_dimension_numbers<[1], [0], [0], [1], [0, 0, 1, 1], [], []>} : vector<16x32xf32>, vector<32x8xf32>, vector<16x8xf32> -> vector<16x8xf32>
    %c1_351 = arith.constant 1 : index
    %c2_352 = arith.constant 2 : index
    %c2_353 = arith.constant 2 : index
    %c32_354 = arith.constant 32 : index
    %c0_355 = arith.constant 0 : index
    %381 = vector.load %arg4[%c1_351, %c2_352, %c2_353, %c32_354, %c0_355] : memref<2x3x4x33x8xf32, #tpu.memory_space<vmem>>, vector<1x1x1x1x8xf32>
    %382 = vector.shape_cast %381 : vector<1x1x1x1x8xf32> to vector<1x8xf32>
    %383 = vector.broadcast %382 : vector<1x8xf32> to vector<16x8xf32>
    %384 = arith.addf %380, %383 : vector<16x8xf32>
    %385 = vector.shape_cast %384 : vector<16x8xf32> to vector<2x8x8xf32>
    "tpu.trace_start"() <{level = 10 : i32, message = "bqd,bkd->bqk"}> : () -> ()
    %cst_356 = arith.constant dense<0.000000e+00> : vector<2x8x8xf32>
    %386 = tpu.matmul %369, %377, %cst_356 {dimension_numbers = #tpu.dot_dimension_numbers<[2], [2], [1], [1], [0, 0, 0, 1, 1, 1], [0], [0]>} : vector<2x8x8xf32>, vector<2x8x8xf32>, vector<2x8x8xf32> -> vector<2x8x8xf32>
    "tpu.trace_stop"() : () -> ()
    %387 = vector.broadcast %15 : vector<1x1x8xf32> to vector<2x8x8xf32>
    %388 = arith.addf %386, %387 : vector<2x8x8xf32>
    %cst_357 = arith.constant dense<0xFF800000> : vector<2x8xf32>
    %389 = vector.multi_reduction <maximumf>, %388, %cst_357 [2] : vector<2x8x8xf32> to vector<2x8xf32>
    %390 = vector.shape_cast %389 : vector<2x8xf32> to vector<2x8x1xf32>
    %391 = vector.broadcast %390 : vector<2x8x1xf32> to vector<2x8x8xf32>
    %392 = arith.subf %388, %391 : vector<2x8x8xf32>
    %393 = math.exp %392 : vector<2x8x8xf32>
    %cst_358 = arith.constant dense<0.000000e+00> : vector<2x8xf32>
    %394 = vector.multi_reduction <add>, %393, %cst_358 [2] : vector<2x8x8xf32> to vector<2x8xf32>
    %395 = vector.shape_cast %394 : vector<2x8xf32> to vector<2x8x1xf32>
    %396 = tpu.reciprocal %395 {approx = true} : vector<2x8x1xf32> -> vector<2x8x1xf32>
    %397 = vector.broadcast %396 : vector<2x8x1xf32> to vector<2x8x8xf32>
    %398 = arith.mulf %393, %397 : vector<2x8x8xf32>
    "tpu.trace_start"() <{level = 10 : i32, message = "bqk,bkd->bqd"}> : () -> ()
    %cst_359 = arith.constant dense<0.000000e+00> : vector<2x8x8xf32>
    %399 = tpu.matmul %398, %385, %cst_359 {dimension_numbers = #tpu.dot_dimension_numbers<[2], [1], [1], [2], [0, 0, 0, 1, 1, 2], [0], [0]>} : vector<2x8x8xf32>, vector<2x8x8xf32>, vector<2x8x8xf32> -> vector<2x8x8xf32>
    "tpu.trace_stop"() : () -> ()
    %400 = vector.shape_cast %399 : vector<2x8x8xf32> to vector<16x8xf32>
    %c1_360 = arith.constant 1 : index
    %c2_361 = arith.constant 2 : index
    %c0_362 = arith.constant 0 : index
    %c0_363 = arith.constant 0 : index
    %401 = vector.load %arg5[%c1_360, %c2_361, %c0_362, %c0_363] : memref<2x4x8x32xf32, #tpu.memory_space<vmem>>, vector<1x1x8x32xf32>
    %402 = vector.shape_cast %401 : vector<1x1x8x32xf32> to vector<8x32xf32>
    %cst_364 = arith.constant dense<0.000000e+00> : vector<16x32xf32>
    %403 = tpu.matmul %400, %402, %cst_364 {dimension_numbers = #tpu.dot_dimension_numbers<[1], [0], [0], [1], [0, 0, 1, 1], [], []>} : vector<16x8xf32>, vector<8x32xf32>, vector<16x32xf32> -> vector<16x32xf32>
    %404 = arith.addf %361, %403 : vector<16x32xf32>
    %c1_365 = arith.constant 1 : index
    %c0_366 = arith.constant 0 : index
    %c3_367 = arith.constant 3 : index
    %c0_368 = arith.constant 0 : index
    %c0_369 = arith.constant 0 : index
    %405 = vector.load %arg4[%c1_365, %c0_366, %c3_367, %c0_368, %c0_369] : memref<2x3x4x33x8xf32, #tpu.memory_space<vmem>>, vector<1x1x1x32x8xf32>
    %406 = vector.shape_cast %405 : vector<1x1x1x32x8xf32> to vector<32x8xf32>
    %cst_370 = arith.constant dense<0.000000e+00> : vector<16x8xf32>
    %407 = tpu.matmul %262, %406, %cst_370 {dimension_numbers = #tpu.dot_dimension_numbers<[1], [0], [0], [1], [0, 0, 1, 1], [], []>} : vector<16x32xf32>, vector<32x8xf32>, vector<16x8xf32> -> vector<16x8xf32>
    %c1_371 = arith.constant 1 : index
    %c0_372 = arith.constant 0 : index
    %c3_373 = arith.constant 3 : index
    %c32_374 = arith.constant 32 : index
    %c0_375 = arith.constant 0 : index
    %408 = vector.load %arg4[%c1_371, %c0_372, %c3_373, %c32_374, %c0_375] : memref<2x3x4x33x8xf32, #tpu.memory_space<vmem>>, vector<1x1x1x1x8xf32>
    %409 = vector.shape_cast %408 : vector<1x1x1x1x8xf32> to vector<1x8xf32>
    %410 = vector.broadcast %409 : vector<1x8xf32> to vector<16x8xf32>
    %411 = arith.addf %407, %410 : vector<16x8xf32>
    %412 = vector.shape_cast %411 : vector<16x8xf32> to vector<2x8x8xf32>
    %c1_376 = arith.constant 1 : index
    %c1_377 = arith.constant 1 : index
    %c3_378 = arith.constant 3 : index
    %c0_379 = arith.constant 0 : index
    %c0_380 = arith.constant 0 : index
    %413 = vector.load %arg4[%c1_376, %c1_377, %c3_378, %c0_379, %c0_380] : memref<2x3x4x33x8xf32, #tpu.memory_space<vmem>>, vector<1x1x1x32x8xf32>
    %414 = vector.shape_cast %413 : vector<1x1x1x32x8xf32> to vector<32x8xf32>
    %cst_381 = arith.constant dense<0.000000e+00> : vector<16x8xf32>
    %415 = tpu.matmul %262, %414, %cst_381 {dimension_numbers = #tpu.dot_dimension_numbers<[1], [0], [0], [1], [0, 0, 1, 1], [], []>} : vector<16x32xf32>, vector<32x8xf32>, vector<16x8xf32> -> vector<16x8xf32>
    %c1_382 = arith.constant 1 : index
    %c1_383 = arith.constant 1 : index
    %c3_384 = arith.constant 3 : index
    %c32_385 = arith.constant 32 : index
    %c0_386 = arith.constant 0 : index
    %416 = vector.load %arg4[%c1_382, %c1_383, %c3_384, %c32_385, %c0_386] : memref<2x3x4x33x8xf32, #tpu.memory_space<vmem>>, vector<1x1x1x1x8xf32>
    %417 = vector.shape_cast %416 : vector<1x1x1x1x8xf32> to vector<1x8xf32>
    %418 = vector.broadcast %417 : vector<1x8xf32> to vector<16x8xf32>
    %419 = arith.addf %415, %418 : vector<16x8xf32>
    %420 = vector.shape_cast %419 : vector<16x8xf32> to vector<2x8x8xf32>
    %c1_387 = arith.constant 1 : index
    %c2_388 = arith.constant 2 : index
    %c3_389 = arith.constant 3 : index
    %c0_390 = arith.constant 0 : index
    %c0_391 = arith.constant 0 : index
    %421 = vector.load %arg4[%c1_387, %c2_388, %c3_389, %c0_390, %c0_391] : memref<2x3x4x33x8xf32, #tpu.memory_space<vmem>>, vector<1x1x1x32x8xf32>
    %422 = vector.shape_cast %421 : vector<1x1x1x32x8xf32> to vector<32x8xf32>
    %cst_392 = arith.constant dense<0.000000e+00> : vector<16x8xf32>
    %423 = tpu.matmul %262, %422, %cst_392 {dimension_numbers = #tpu.dot_dimension_numbers<[1], [0], [0], [1], [0, 0, 1, 1], [], []>} : vector<16x32xf32>, vector<32x8xf32>, vector<16x8xf32> -> vector<16x8xf32>
    %c1_393 = arith.constant 1 : index
    %c2_394 = arith.constant 2 : index
    %c3_395 = arith.constant 3 : index
    %c32_396 = arith.constant 32 : index
    %c0_397 = arith.constant 0 : index
    %424 = vector.load %arg4[%c1_393, %c2_394, %c3_395, %c32_396, %c0_397] : memref<2x3x4x33x8xf32, #tpu.memory_space<vmem>>, vector<1x1x1x1x8xf32>
    %425 = vector.shape_cast %424 : vector<1x1x1x1x8xf32> to vector<1x8xf32>
    %426 = vector.broadcast %425 : vector<1x8xf32> to vector<16x8xf32>
    %427 = arith.addf %423, %426 : vector<16x8xf32>
    %428 = vector.shape_cast %427 : vector<16x8xf32> to vector<2x8x8xf32>
    "tpu.trace_start"() <{level = 10 : i32, message = "bqd,bkd->bqk"}> : () -> ()
    %cst_398 = arith.constant dense<0.000000e+00> : vector<2x8x8xf32>
    %429 = tpu.matmul %412, %420, %cst_398 {dimension_numbers = #tpu.dot_dimension_numbers<[2], [2], [1], [1], [0, 0, 0, 1, 1, 1], [0], [0]>} : vector<2x8x8xf32>, vector<2x8x8xf32>, vector<2x8x8xf32> -> vector<2x8x8xf32>
    "tpu.trace_stop"() : () -> ()
    %430 = vector.broadcast %15 : vector<1x1x8xf32> to vector<2x8x8xf32>
    %431 = arith.addf %429, %430 : vector<2x8x8xf32>
    %cst_399 = arith.constant dense<0xFF800000> : vector<2x8xf32>
    %432 = vector.multi_reduction <maximumf>, %431, %cst_399 [2] : vector<2x8x8xf32> to vector<2x8xf32>
    %433 = vector.shape_cast %432 : vector<2x8xf32> to vector<2x8x1xf32>
    %434 = vector.broadcast %433 : vector<2x8x1xf32> to vector<2x8x8xf32>
    %435 = arith.subf %431, %434 : vector<2x8x8xf32>
    %436 = math.exp %435 : vector<2x8x8xf32>
    %cst_400 = arith.constant dense<0.000000e+00> : vector<2x8xf32>
    %437 = vector.multi_reduction <add>, %436, %cst_400 [2] : vector<2x8x8xf32> to vector<2x8xf32>
    %438 = vector.shape_cast %437 : vector<2x8xf32> to vector<2x8x1xf32>
    %439 = tpu.reciprocal %438 {approx = true} : vector<2x8x1xf32> -> vector<2x8x1xf32>
    %440 = vector.broadcast %439 : vector<2x8x1xf32> to vector<2x8x8xf32>
    %441 = arith.mulf %436, %440 : vector<2x8x8xf32>
    "tpu.trace_start"() <{level = 10 : i32, message = "bqk,bkd->bqd"}> : () -> ()
    %cst_401 = arith.constant dense<0.000000e+00> : vector<2x8x8xf32>
    %442 = tpu.matmul %441, %428, %cst_401 {dimension_numbers = #tpu.dot_dimension_numbers<[2], [1], [1], [2], [0, 0, 0, 1, 1, 2], [0], [0]>} : vector<2x8x8xf32>, vector<2x8x8xf32>, vector<2x8x8xf32> -> vector<2x8x8xf32>
    "tpu.trace_stop"() : () -> ()
    %443 = vector.shape_cast %442 : vector<2x8x8xf32> to vector<16x8xf32>
    %c1_402 = arith.constant 1 : index
    %c3_403 = arith.constant 3 : index
    %c0_404 = arith.constant 0 : index
    %c0_405 = arith.constant 0 : index
    %444 = vector.load %arg5[%c1_402, %c3_403, %c0_404, %c0_405] : memref<2x4x8x32xf32, #tpu.memory_space<vmem>>, vector<1x1x8x32xf32>
    %445 = vector.shape_cast %444 : vector<1x1x8x32xf32> to vector<8x32xf32>
    %cst_406 = arith.constant dense<0.000000e+00> : vector<16x32xf32>
    %446 = tpu.matmul %443, %445, %cst_406 {dimension_numbers = #tpu.dot_dimension_numbers<[1], [0], [0], [1], [0, 0, 1, 1], [], []>} : vector<16x8xf32>, vector<8x32xf32>, vector<16x32xf32> -> vector<16x32xf32>
    %447 = arith.addf %404, %446 : vector<16x32xf32>
    %448 = vector.broadcast %264 : vector<1x32xf32> to vector<16x32xf32>
    %449 = arith.addf %447, %448 : vector<16x32xf32>
    %450 = arith.addf %262, %449 : vector<16x32xf32>
    %cst_407 = arith.constant dense<0.000000e+00> : vector<16xf32>
    %451 = vector.multi_reduction <add>, %450, %cst_407 [1] : vector<16x32xf32> to vector<16xf32>
    %452 = vector.shape_cast %451 : vector<16xf32> to vector<16x1xf32>
    %cst_408 = arith.constant 3.200000e+01 : f32
    %453 = vector.broadcast %cst_408 : f32 to vector<16x1xf32>
    %454 = arith.divf %452, %453 : vector<16x1xf32>
    %455 = vector.broadcast %454 : vector<16x1xf32> to vector<16x32xf32>
    %456 = arith.subf %450, %455 : vector<16x32xf32>
    %457 = arith.mulf %456, %456 : vector<16x32xf32>
    %cst_409 = arith.constant dense<0.000000e+00> : vector<16xf32>
    %458 = vector.multi_reduction <add>, %457, %cst_409 [1] : vector<16x32xf32> to vector<16xf32>
    %459 = vector.shape_cast %458 : vector<16xf32> to vector<16x1xf32>
    %cst_410 = arith.constant 3.200000e+01 : f32
    %460 = vector.broadcast %cst_410 : f32 to vector<16x1xf32>
    %461 = arith.divf %459, %460 : vector<16x1xf32>
    %462 = vector.broadcast %454 : vector<16x1xf32> to vector<16x32xf32>
    %463 = arith.subf %450, %462 : vector<16x32xf32>
    %cst_411 = arith.constant 9.99999974E-6 : f32
    %464 = vector.broadcast %cst_411 : f32 to vector<16x1xf32>
    %465 = arith.addf %461, %464 : vector<16x1xf32>
    %466 = math.rsqrt %465 : vector<16x1xf32>
    %467 = vector.broadcast %466 : vector<16x1xf32> to vector<16x32xf32>
    %468 = arith.mulf %463, %467 : vector<16x32xf32>
    %469 = vector.broadcast %266 : vector<1x32xf32> to vector<16x32xf32>
    %470 = arith.mulf %468, %469 : vector<16x32xf32>
    %471 = vector.broadcast %268 : vector<1x32xf32> to vector<16x32xf32>
    %472 = arith.addf %470, %471 : vector<16x32xf32>
    %c1_412 = arith.constant 1 : index
    %c0_413 = arith.constant 0 : index
    %c0_414 = arith.constant 0 : index
    %473 = vector.load %arg6[%c1_412, %c0_413, %c0_414] : memref<2x33x256xf32, #tpu.memory_space<vmem>>, vector<1x32x256xf32>
    %474 = vector.shape_cast %473 : vector<1x32x256xf32> to vector<32x256xf32>
    %cst_415 = arith.constant dense<0.000000e+00> : vector<16x256xf32>
    %475 = tpu.matmul %472, %474, %cst_415 {dimension_numbers = #tpu.dot_dimension_numbers<[1], [0], [0], [1], [0, 0, 1, 1], [], []>} : vector<16x32xf32>, vector<32x256xf32>, vector<16x256xf32> -> vector<16x256xf32>
    %c1_416 = arith.constant 1 : index
    %c32_417 = arith.constant 32 : index
    %c0_418 = arith.constant 0 : index
    %476 = vector.load %arg6[%c1_416, %c32_417, %c0_418] : memref<2x33x256xf32, #tpu.memory_space<vmem>>, vector<1x1x256xf32>
    %477 = vector.shape_cast %476 : vector<1x1x256xf32> to vector<1x256xf32>
    %478 = vector.broadcast %477 : vector<1x256xf32> to vector<16x256xf32>
    %479 = arith.addf %475, %478 : vector<16x256xf32>
    %cst_419 = arith.constant 0.000000e+00 : f32
    %480 = vector.broadcast %cst_419 : f32 to vector<16x256xf32>
    %481 = arith.maximumf %479, %480 : vector<16x256xf32>
    %c1_420 = arith.constant 1 : index
    %c0_421 = arith.constant 0 : index
    %c0_422 = arith.constant 0 : index
    %482 = vector.load %arg7[%c1_420, %c0_421, %c0_422] : memref<2x256x32xf32, #tpu.memory_space<vmem>>, vector<1x256x32xf32>
    %483 = vector.shape_cast %482 : vector<1x256x32xf32> to vector<256x32xf32>
    %cst_423 = arith.constant dense<0.000000e+00> : vector<16x32xf32>
    %484 = tpu.matmul %481, %483, %cst_423 {dimension_numbers = #tpu.dot_dimension_numbers<[1], [0], [0], [1], [0, 0, 1, 1], [], []>} : vector<16x256xf32>, vector<256x32xf32>, vector<16x32xf32> -> vector<16x32xf32>
    %485 = vector.broadcast %270 : vector<1x32xf32> to vector<16x32xf32>
    %486 = arith.addf %484, %485 : vector<16x32xf32>
    %487 = arith.addf %472, %486 : vector<16x32xf32>
    %cst_424 = arith.constant dense<0.000000e+00> : vector<16xf32>
    %488 = vector.multi_reduction <add>, %487, %cst_424 [1] : vector<16x32xf32> to vector<16xf32>
    %489 = vector.shape_cast %488 : vector<16xf32> to vector<16x1xf32>
    %cst_425 = arith.constant 3.200000e+01 : f32
    %490 = vector.broadcast %cst_425 : f32 to vector<16x1xf32>
    %491 = arith.divf %489, %490 : vector<16x1xf32>
    %492 = vector.broadcast %491 : vector<16x1xf32> to vector<16x32xf32>
    %493 = arith.subf %487, %492 : vector<16x32xf32>
    %494 = arith.mulf %493, %493 : vector<16x32xf32>
    %cst_426 = arith.constant dense<0.000000e+00> : vector<16xf32>
    %495 = vector.multi_reduction <add>, %494, %cst_426 [1] : vector<16x32xf32> to vector<16xf32>
    %496 = vector.shape_cast %495 : vector<16xf32> to vector<16x1xf32>
    %cst_427 = arith.constant 3.200000e+01 : f32
    %497 = vector.broadcast %cst_427 : f32 to vector<16x1xf32>
    %498 = arith.divf %496, %497 : vector<16x1xf32>
    %499 = vector.broadcast %491 : vector<16x1xf32> to vector<16x32xf32>
    %500 = arith.subf %487, %499 : vector<16x32xf32>
    %cst_428 = arith.constant 9.99999974E-6 : f32
    %501 = vector.broadcast %cst_428 : f32 to vector<16x1xf32>
    %502 = arith.addf %498, %501 : vector<16x1xf32>
    %503 = math.rsqrt %502 : vector<16x1xf32>
    %504 = vector.broadcast %503 : vector<16x1xf32> to vector<16x32xf32>
    %505 = arith.mulf %500, %504 : vector<16x32xf32>
    %506 = vector.broadcast %272 : vector<1x32xf32> to vector<16x32xf32>
    %507 = arith.mulf %505, %506 : vector<16x32xf32>
    %508 = vector.broadcast %274 : vector<1x32xf32> to vector<16x32xf32>
    %509 = arith.addf %507, %508 : vector<16x32xf32>
    %510 = vector.shape_cast %509 : vector<16x32xf32> to vector<2x8x32xf32>
    %511 = vector.extract_strided_slice %510 {offsets = [0, 0, 0], sizes = [2, 1, 32], strides = [1, 1, 1]} : vector<2x8x32xf32> to vector<2x1x32xf32>
    %512 = vector.shape_cast %511 : vector<2x1x32xf32> to vector<2x32xf32>
    %c0_429 = arith.constant 0 : index
    %c0_430 = arith.constant 0 : index
    %513 = vector.load %arg9[%c0_429, %c0_430] : memref<2x32xf32, #tpu.memory_space<vmem>>, vector<1x32xf32>
    %c1_431 = arith.constant 1 : index
    %c0_432 = arith.constant 0 : index
    %514 = vector.load %arg9[%c1_431, %c0_432] : memref<2x32xf32, #tpu.memory_space<vmem>>, vector<1x32xf32>
    %cst_433 = arith.constant dense<0.000000e+00> : vector<2xf32>
    %515 = vector.multi_reduction <add>, %512, %cst_433 [1] : vector<2x32xf32> to vector<2xf32>
    %516 = vector.shape_cast %515 : vector<2xf32> to vector<2x1xf32>
    %cst_434 = arith.constant 3.200000e+01 : f32
    %517 = vector.broadcast %cst_434 : f32 to vector<2x1xf32>
    %518 = arith.divf %516, %517 : vector<2x1xf32>
    %519 = vector.broadcast %518 : vector<2x1xf32> to vector<2x32xf32>
    %520 = arith.subf %512, %519 : vector<2x32xf32>
    %521 = arith.mulf %520, %520 : vector<2x32xf32>
    %cst_435 = arith.constant dense<0.000000e+00> : vector<2xf32>
    %522 = vector.multi_reduction <add>, %521, %cst_435 [1] : vector<2x32xf32> to vector<2xf32>
    %523 = vector.shape_cast %522 : vector<2xf32> to vector<2x1xf32>
    %cst_436 = arith.constant 3.200000e+01 : f32
    %524 = vector.broadcast %cst_436 : f32 to vector<2x1xf32>
    %525 = arith.divf %523, %524 : vector<2x1xf32>
    %526 = vector.broadcast %518 : vector<2x1xf32> to vector<2x32xf32>
    %527 = arith.subf %512, %526 : vector<2x32xf32>
    %cst_437 = arith.constant 9.99999974E-6 : f32
    %528 = vector.broadcast %cst_437 : f32 to vector<2x1xf32>
    %529 = arith.addf %525, %528 : vector<2x1xf32>
    %530 = math.rsqrt %529 : vector<2x1xf32>
    %531 = vector.broadcast %530 : vector<2x1xf32> to vector<2x32xf32>
    %532 = arith.mulf %527, %531 : vector<2x32xf32>
    %533 = vector.broadcast %513 : vector<1x32xf32> to vector<2x32xf32>
    %534 = arith.mulf %532, %533 : vector<2x32xf32>
    %535 = vector.broadcast %514 : vector<1x32xf32> to vector<2x32xf32>
    %536 = arith.addf %534, %535 : vector<2x32xf32>
    %c0_438 = arith.constant 0 : index
    %c0_439 = arith.constant 0 : index
    %537 = vector.load %arg10[%c0_438, %c0_439] : memref<33x64xf32, #tpu.memory_space<vmem>>, vector<32x64xf32>
    %cst_440 = arith.constant dense<0.000000e+00> : vector<2x64xf32>
    %538 = tpu.matmul %536, %537, %cst_440 {dimension_numbers = #tpu.dot_dimension_numbers<[1], [0], [0], [1], [0, 0, 1, 1], [], []>} : vector<2x32xf32>, vector<32x64xf32>, vector<2x64xf32> -> vector<2x64xf32>
    %c32_441 = arith.constant 32 : index
    %c0_442 = arith.constant 0 : index
    %539 = vector.load %arg10[%c32_441, %c0_442] : memref<33x64xf32, #tpu.memory_space<vmem>>, vector<1x64xf32>
    %540 = vector.broadcast %539 : vector<1x64xf32> to vector<2x64xf32>
    %541 = arith.addf %538, %540 : vector<2x64xf32>
    %cst_443 = arith.constant 0.000000e+00 : f32
    %542 = vector.broadcast %cst_443 : f32 to vector<2x64xf32>
    %543 = arith.maximumf %541, %542 : vector<2x64xf32>
    %c0_444 = arith.constant 0 : index
    %c0_445 = arith.constant 0 : index
    %544 = vector.load %arg11[%c0_444, %c0_445] : memref<65x3xf32, #tpu.memory_space<vmem>>, vector<64x3xf32>
    %cst_446 = arith.constant dense<0.000000e+00> : vector<2x3xf32>
    %545 = tpu.matmul %543, %544, %cst_446 {dimension_numbers = #tpu.dot_dimension_numbers<[1], [0], [0], [1], [0, 0, 1, 1], [], []>} : vector<2x64xf32>, vector<64x3xf32>, vector<2x3xf32> -> vector<2x3xf32>
    %c64 = arith.constant 64 : index
    %c0_447 = arith.constant 0 : index
    %546 = vector.load %arg11[%c64, %c0_447] : memref<65x3xf32, #tpu.memory_space<vmem>>, vector<1x3xf32>
    %547 = vector.broadcast %546 : vector<1x3xf32> to vector<2x3xf32>
    %548 = arith.addf %545, %547 : vector<2x3xf32>
    %c0_448 = arith.constant 0 : index
    %c0_449 = arith.constant 0 : index
    %549 = vector.load %arg12[%c0_448, %c0_449] : memref<2x3xf32, #tpu.memory_space<vmem>>, vector<2x3xf32>
    tpu.vector_store %arg12[%c0_448, %c0_449], %548 {strides = array<i32>} : memref<2x3xf32, #tpu.memory_space<vmem>>, vector<2x3xf32>,
    return
  }
  func.func @transform_0(%arg0: i32) -> (i32, i32, i32) {
    %c0_i32 = arith.constant 0 : i32
    %c0_i32_0 = arith.constant 0 : i32
    %c0_i32_1 = arith.constant 0 : i32
    return %arg0, %c0_i32, %c0_i32_0 : i32, i32, i32
  }
  func.func @transform_1(%arg0: i32) -> (i32, i32) {
    %c0_i32 = arith.constant 0 : i32
    %c0_i32_0 = arith.constant 0 : i32
    return %arg0, %c0_i32 : i32, i32
  }
  func.func @transform_2(%arg0: i32) -> (i32, i32) {
    %c0_i32 = arith.constant 0 : i32
    %c0_i32_0 = arith.constant 0 : i32
    %c0_i32_1 = arith.constant 0 : i32
    return %c0_i32, %c0_i32_0 : i32, i32
  }
  func.func @transform_3(%arg0: i32) -> (i32, i32, i32, i32, i32) {
    %c0_i32 = arith.constant 0 : i32
    %c0_i32_0 = arith.constant 0 : i32
    %c0_i32_1 = arith.constant 0 : i32
    %c0_i32_2 = arith.constant 0 : i32
    %c0_i32_3 = arith.constant 0 : i32
    %c0_i32_4 = arith.constant 0 : i32
    return %c0_i32, %c0_i32_0, %c0_i32_1, %c0_i32_2, %c0_i32_3 : i32, i32, i32, i32, i32
  }
  func.func @transform_4(%arg0: i32) -> (i32, i32, i32, i32) {
    %c0_i32 = arith.constant 0 : i32
    %c0_i32_0 = arith.constant 0 : i32
    %c0_i32_1 = arith.constant 0 : i32
    %c0_i32_2 = arith.constant 0 : i32
    %c0_i32_3 = arith.constant 0 : i32
    return %c0_i32, %c0_i32_0, %c0_i32_1, %c0_i32_2 : i32, i32, i32, i32
  }
  func.func @transform_5(%arg0: i32) -> (i32, i32, i32) {
    %c0_i32 = arith.constant 0 : i32
    %c0_i32_0 = arith.constant 0 : i32
    %c0_i32_1 = arith.constant 0 : i32
    %c0_i32_2 = arith.constant 0 : i32
    return %c0_i32, %c0_i32_0, %c0_i32_1 : i32, i32, i32
  }
  func.func @transform_6(%arg0: i32) -> (i32, i32, i32) {
    %c0_i32 = arith.constant 0 : i32
    %c0_i32_0 = arith.constant 0 : i32
    %c0_i32_1 = arith.constant 0 : i32
    %c0_i32_2 = arith.constant 0 : i32
    return %c0_i32, %c0_i32_0, %c0_i32_1 : i32, i32, i32
  }
  func.func @transform_7(%arg0: i32) -> (i32, i32, i32) {
    %c0_i32 = arith.constant 0 : i32
    %c0_i32_0 = arith.constant 0 : i32
    %c0_i32_1 = arith.constant 0 : i32
    %c0_i32_2 = arith.constant 0 : i32
    return %c0_i32, %c0_i32_0, %c0_i32_1 : i32, i32, i32
  }
  func.func @transform_8(%arg0: i32) -> (i32, i32) {
    %c0_i32 = arith.constant 0 : i32
    %c0_i32_0 = arith.constant 0 : i32
    %c0_i32_1 = arith.constant 0 : i32
    return %c0_i32, %c0_i32_0 : i32, i32
  }
  func.func @transform_9(%arg0: i32) -> (i32, i32) {
    %c0_i32 = arith.constant 0 : i32
    %c0_i32_0 = arith.constant 0 : i32
    %c0_i32_1 = arith.constant 0 : i32
    return %c0_i32, %c0_i32_0 : i32, i32
  }
  func.func @transform_10(%arg0: i32) -> (i32, i32) {
    %c0_i32 = arith.constant 0 : i32
    %c0_i32_0 = arith.constant 0 : i32
    %c0_i32_1 = arith.constant 0 : i32
    return %c0_i32, %c0_i32_0 : i32, i32
  }
  func.func @transform_11(%arg0: i32) -> (i32, i32) {
    %c0_i32 = arith.constant 0 : i32
    %c0_i32_0 = arith.constant 0 : i32
    return %arg0, %c0_i32 : i32, i32
  }
}

</mosaic_0001>

<bundles_post_ra>
// kernel: ft_transformer_forward.1
= control target key start
LH: loop header
LB: loop body
LE: loop exit
PB: predicated region body
PF: predicated region fallthrough
CT: control target
= control target key end

     0   :  { %vm45_vm0 = vcmask 1046528   ;;  %vm41_vm1 = vcmask 56320   ;;  %v7569_v1 = vmov 0.0   ;;  %vm7570_vm2 = vmmov 0   ;;  %s8816_s0 = inlined_call_operand.vmem [shape: f32[2,8,32], index: 0, kind: input, shape index: {}]   ;;  %s8817_s1 = inlined_call_operand.vmem [shape: f32[2,7], index: 1, kind: input, shape index: {}]   ;;  %s8818_s2 = inlined_call_operand.vmem [shape: f32[7,32], index: 2, kind: input, shape index: {}]   ;;  %s8819_s3 = inlined_call_operand.vmem [shape: f32[2,3,4,33,8], index: 3, kind: input, shape index: {}]   ;;  %s8820_s4 = inlined_call_operand.vmem [shape: f32[2,4,8,32], index: 4, kind: input, shape index: {}]   ;;  %s8821_s5 = inlined_call_operand.vmem [shape: f32[2,33,256], index: 5, kind: input, shape index: {}]   ;;  %s8822_s6 = inlined_call_operand.vmem [shape: f32[2,256,32], index: 6, kind: input, shape index: {}]   ;;  %s8823_s7 = inlined_call_operand.vmem [shape: f32[2,6,32], index: 7, kind: input, shape index: {}]   ;;  %s8824_s8 = inlined_call_operand.vmem [shape: f32[2,32], index: 8, kind: input, shape index: {}]   ;;  %s8825_s9 = inlined_call_operand.vmem [shape: f32[33,64], index: 9, kind: input, shape index: {}]   ;;  %s8826_s10 = inlined_call_operand.vmem [shape: f32[65,3], index: 10, kind: input, shape index: {}]   ;;  %s8827_s11 = inlined_call_operand.hbm [shape: f32[2,3], index: 11, kind: output, shape index: {}]  }
   0x1   :  { %v40_v0 = vld [vmem:[%s8818_s2] sm:$0x7f]  ;;  %6961 = vmatprep.subr.mxu0 %v7569_v1  ;;  %6963 = vmatprep.mubr.msk.f32.mxu0 %vm7570_vm2, %v7569_v1 }
   0x2   :  { %v39_v2 = vld [vmem:[%s8817_s1] sm:$0x3] }
   0x3   :  { %16 = vsyncpa [#allocation4], 0  ;;  %6962 = vmatpush3.msk.msra.mxu0 %vm45_vm0, %v40_v0  ;;  %v119_v3 = vld [vmem:[%s8816_s0] sm:$0xff]  ;;  %v120_v4 = vld [vmem:[%s8816_s0 + $0x8] sm:$0xff]  ;;  %vm121_vm3 = vcmask 261120   ;;  %v128_v16 = vlaneseq  ;;  %vm149_vm4 = vcmask 253952  }
   0x4   :  { %6964 = vmatmul.mubr.msk.f32.vlgmr.msra.gmra.mxu0 %vm41_vm1, %v39_v2  ;;  %122 = vst.msk [vmem:[#allocation2] sm:$0xff] %vm121_vm3, %v119_v3  ;;  %123 = vst.msk [vmem:[#allocation2 + $0x8] sm:$0xff] %vm121_vm3, %v120_v4  ;;  %v167_v5 = vld [vmem:[%s8819_s3 + $0x18] sm:$0xff]  ;;  %v166_v7 = vld [vmem:[%s8819_s3 + $0x10] sm:$0xff]  ;;  %v7571_v14 = vmov 1966171168  }
   0x5   :  { %6966 = vmatprep.subr.mxu1 %v167_v5  ;;  %v6315_v6 = vld [vmem:[%s8819_s3 + $0xb8] sm:$0xff]  ;;  %v6314_v8 = vld [vmem:[%s8819_s3 + $0xb0] sm:$0xff]  ;;  %v165_v9 = vld [vmem:[%s8819_s3 + $0x8] sm:$0xff]  ;;  %v126_v15 = vunpack.c.l.s4 %v7571_v14  ;;  %v7680_v18 = vshrl.u32 %v128_v16, 7  ;;  %vm424_vm5 = vcmask 64512   ;;  %v155_v61 = vand.u32 127, %v128_v16 }
   0x6   :  { %6967 = vmatpush3.msra.mxu1 %v167_v5  ;;  %6977 = vmatprep.subr.mxu0 %v6315_v6  ;;  %v6313_v10 = vld [vmem:[%s8819_s3 + $0xa8] sm:$0xff]  ;;  %v164_v11 = vld [vmem:[%s8819_s3] sm:$0xff]  ;;  %v6323_v13 = vld [vmem:[%s8819_s3 + $0x158] sm:$0xff]  ;;  %v7572_v62 = vmov -1e+30   ;;  %vm6072_vm7 = vcmask 1041409  }
   0x7   :  { %6968 = vmatprep.subr.mxu1 %v166_v7  ;;  %6978 = vmatpush3.msra.mxu0 %v6315_v6  ;;  %v6312_v12 = vld [vmem:[%s8819_s3 + $0xa0] sm:$0xff]  ;;  %v127_v17 = vunpack.c.0.s8 %v126_v15  ;;  %v6322_v28 = vld [vmem:[%s8819_s3 + $0x150] sm:$0xff]  ;;  %v6321_v29 = vld [vmem:[%s8819_s3 + $0x148] sm:$0xff]  ;;  %vm156_vm6 = vcmp.lt.s32.totalorder %v155_v61, 5  ;;  %vm6075_vm8 = vcmask 254976   ;;  %vm6216_vm9 = vcmask 523264  }
   0x8   :  { %6969 = vmatpush3.msra.mxu1 %v166_v7  ;;  %6979 = vmatprep.subr.mxu0 %v6314_v8  ;;  %v6320_v30 = vld [vmem:[%s8819_s3 + $0x140] sm:$0xff]  ;;  %v6336_v32 = vld [vmem:[%s8819_s3 + $0x38] sm:$0xff]  ;;  %v6335_v33 = vld [vmem:[%s8819_s3 + $0x30] sm:$0xff]  ;;  %v7775_v63 = vsel %vm156_vm6, 0.0, %v7572_v62  ;;  %s7573_s21 = smov [#allocation3]   ;;  %vm6290_vm10 = vcmask 17408  }
   0x9   :  { %6970 = vmatprep.subr.mxu1 %v165_v9  ;;  %6980 = vmatpush3.msra.mxu0 %v6314_v8  ;;  %v130_v19 = vsub.s32 %v127_v17, %v7680_v18  ;;  %v6337_v31 = vld [vmem:[%s8819_s3 + $0x40] sm:$0xff]  ;;  %v6334_v34 = vld [vmem:[%s8819_s3 + $0x28] sm:$0xff]  ;;  %v6352_v36 = vld [vmem:[%s8819_s3 + $0x178] sm:$0xff]  ;;  %s6298_s22 = sshll.u32 %s7573_s21, 4  ;;  %s6299_s22 = int_to_ptr.vmem [resolvable:$true] %s6298_s22 }
   0xa   :  { %6971 = vmatpush3.msra.mxu1 %v165_v9  ;;  %6981 = vmatprep.subr.mxu0 %v6313_v10  ;;  %v6353_v35 = vld [vmem:[%s8819_s3 + $0x180] sm:$0xff]  ;;  %v6351_v37 = vld [vmem:[%s8819_s3 + $0x170] sm:$0xff]  ;;  %v6350_v38 = vld [vmem:[%s8819_s3 + $0x168] sm:$0xff]  ;;  %s7547_s2 = scalar_lea.vmem %s6299_s22, 32  ;;  %p7552_p1 = scmp.lt.s32.totalorder %s6299_s22, %s6299_s22 }
   0xb   :  { %6972 = vmatprep.subr.mxu1 %v164_v11  ;;  %6982 = vmatpush3.msra.mxu0 %v6313_v10  ;;  %v6317_v41 = vld [vmem:[%s8819_s3 + $0xc0] ss:$0 sm:$0xff]  ;;  %v6355_v56 = vld [vmem:[%s8819_s3 + $0x188] ss:$0 sm:$0xff]  ;;  %p7548_p0 = scmp.ne.s32.totalorder %s6299_s22, %s7547_s2  ;;  %p7553_p2 = scmp.lt.s32.totalorder %s7547_s2, %s7547_s2 }
   0xc   :  { %6973 = vmatpush3.msra.mxu1 %v164_v11  ;;  %6983 = vmatprep.subr.mxu0 %v6312_v12  ;;  %v6309_v45 = vld [vmem:[%s8819_s3 + $0x20] ss:$0 sm:$0xff] }
   0xd   :  { %6984 = vmatpush3.msra.mxu0 %v6312_v12  ;;  %6988 = vmatprep.subr.mxu1 %v6323_v13  ;;  %v6325_v47 = vld [vmem:[%s8819_s3 + $0x160] ss:$0 sm:$0xff]  ;;  %p7554_p3 = por %p7553_p2, %p7552_p1 }
   0xe   :  { %6999 = vmatprep.subr.mxu0 %v7569_v1  ;;  %v745_v62 = vld [vmem:[%s8820_s4] sm:$0xff] }
   0xf   :  { %p7555_p4 = pnand %p7554_p3, %p7548_p0 }
  0xc4   :  { %v115_v20 = vpop.f32.mrf.mxu0 }
  0xc5   :  { %v131_v21 = vrot.slane %v115_v20, %v130_v19 }
  0xc6   :  { %v6965_v22 = vpop.f32.mrf.mxu0 }
  0xc7   :  { %v132_v23 = vcombine.high %v131_v21, %v131_v21  ;;  %v139_v24 = vrot.slane %v131_v21, %v130_v19 }
  0xc9   :  { %v146_v25 = vrot.slane %v132_v23, %v130_v19  ;;  %150 = vst.msk [vmem:[#allocation2 + $0x1] sm:$0x1] %vm149_vm4, %v139_v24  ;;  %v6345_v24 = vld [vmem:[%s8819_s3 + $0xe0] sm:$0xff] }
  0xcb   :  { %151 = vst.msk [vmem:[#allocation2 + $0x9] sm:$0x1] %vm149_vm4, %v146_v25 }
  0xd0   :  { %v7683_v26 = vld [vmem:[#allocation2] sm:$0xff] }
  0xd1   :  { %6974 = vmatprep.mubr.msk.f32.mxu1 %vm121_vm3, %v7683_v26  ;;  %6985 = vmatprep.mubr.msk.f32.mxu0 %vm121_vm3, %v7683_v26 }
  0xd2   :  { %v7689_v27 = vld [vmem:[#allocation2 + $0x8] sm:$0xff] }
  0xd3   :  { %6975 = vmatmul.mubr.msk.f32.vlgmr.msra.gmra.mxu1 %vm121_vm3, %v7689_v27  ;;  %6986 = vmatmul.mubr.msk.f32.vlgmr.msra.gmra.mxu0 %vm121_vm3, %v7689_v27 }
  0xd4   :  { %6989 = vmatpush3.msra.mxu1 %v6323_v13  ;;  %6996 = vmatprep.mubr.msk.f32.mxu1 %vm121_vm3, %v7683_v26 }
  0xd5   :  { %6990 = vmatprep.subr.mxu1 %v6322_v28  ;;  %7001 = vmatprep.mubr.msk.f32.mxu0 %vm7570_vm2, %v7569_v1 }
  0xd6   :  { %6991 = vmatpush3.msra.mxu1 %v6322_v28 }
  0xd7   :  { %6992 = vmatprep.subr.mxu1 %v6321_v29 }
  0xd8   :  { %6993 = vmatpush3.msra.mxu1 %v6321_v29  ;;  %v6344_v29 = vld [vmem:[%s8819_s3 + $0xd8] sm:$0xff] }
  0xd9   :  { %6994 = vmatprep.subr.mxu1 %v6320_v30 }
  0xda   :  { %6995 = vmatpush3.msra.mxu1 %v6320_v30  ;;  %v6343_v30 = vld [vmem:[%s8819_s3 + $0xd0] sm:$0xff] }
  0xdb   :  { %6997 = vmatmul.mubr.msk.f32.vlgmr.msra.gmra.mxu1 %vm121_vm3, %v7689_v27  ;;  %7019 = vmatprep.subr.mxu1 %v6337_v31 }
  0xdc   :  { %7020 = vmatpush3.msra.mxu1 %v6337_v31  ;;  %7027 = vmatprep.mubr.msk.f32.mxu1 %vm121_vm3, %v7683_v26  ;;  %v6342_v31 = vld [vmem:[%s8819_s3 + $0xc8] sm:$0xff] }
  0xdd   :  { %7021 = vmatprep.subr.mxu1 %v6336_v32 }
  0xde   :  { %7022 = vmatpush3.msra.mxu1 %v6336_v32 }
  0xdf   :  { %7023 = vmatprep.subr.mxu1 %v6335_v33 }
  0xe0   :  { %7024 = vmatpush3.msra.mxu1 %v6335_v33 }
  0xe1   :  { %7025 = vmatprep.subr.mxu1 %v6334_v34 }
  0xe2   :  { %7026 = vmatpush3.msra.mxu1 %v6334_v34 }
  0xe3   :  { %7028 = vmatmul.mubr.msk.f32.vlgmr.msra.gmra.mxu1 %vm121_vm3, %v7689_v27  ;;  %7041 = vmatprep.subr.mxu1 %v6353_v35 }
  0xe4   :  { %7042 = vmatpush3.msra.mxu1 %v6353_v35  ;;  %7049 = vmatprep.mubr.msk.f32.mxu1 %vm121_vm3, %v7683_v26 }
  0xe5   :  { %7043 = vmatprep.subr.mxu1 %v6352_v36 }
  0xe6   :  { %7044 = vmatpush3.msra.mxu1 %v6352_v36 }
  0xe7   :  { %7045 = vmatprep.subr.mxu1 %v6351_v37 }
  0xe8   :  { %7046 = vmatpush3.msra.mxu1 %v6351_v37  ;;  %v6347_v37 = vld [vmem:[%s8819_s3 + $0xe8] ss:$0 sm:$0xff] }
  0xe9   :  { %7047 = vmatprep.subr.mxu1 %v6350_v38 }
  0xea   :  { %7048 = vmatpush3.msra.mxu1 %v6350_v38 }
  0xeb   :  { %7050 = vmatmul.mubr.msk.f32.vlgmr.msra.gmra.mxu1 %vm121_vm3, %v7689_v27  ;;  %7062 = vmatprep.subr.mxu1 %v7569_v1 }
  0xec   :  { %7064 = vmatprep.mubr.msk.f32.mxu1 %vm7570_vm2, %v7569_v1 }
 0x193   :  { %v6976_v39 = vpop.f32.mrf.mxu1  ;;  %v6987_v40 = vpop.f32.mrf.mxu0 }
 0x194   :  { %v336_v48 = vadd.f32 %v6987_v40, %v6317_v41  ;;  %v251_v51 = vadd.f32 %v6976_v39, %v6309_v45  ;;  %v6339_v40 = vld [vmem:[%s8819_s3 + $0x48] ss:$0 sm:$0xff] }
 0x195   :  { %v330_v42 = vpop.f32.mrf.mxu0  ;;  %v245_v43 = vpop.f32.mrf.mxu1 }
 0x196   :  { %v331_v44 = vadd.f32 %v6317_v41, %v330_v42  ;;  %v246_v46 = vadd.f32 %v6309_v45, %v245_v43 }
 0x198   :  { %7000 = vmatpush3.xpose.msk.msra.mxu0 %vm424_vm5, %v331_v44 }
 0x199   :  { %7004 = vmatprep.subr.mxu0 %v7569_v1 }
 0x19b   :  { %v6998_v49 = vpop.f32.mrf.mxu1  ;;  %7002 = vmatmul.mubr.msk.f32.vlgmr.msra.gmra.mxu0 %vm424_vm5, %v246_v46 }
 0x19c   :  { %v421_v50 = vadd.f32 %v6998_v49, %v6325_v47  ;;  %7005 = vmatpush3.xpose.msk.msra.mxu0 %vm424_vm5, %v336_v48  ;;  %7006 = vmatprep.mubr.msk.f32.mxu0 %vm7570_vm2, %v7569_v1 }
 0x19d   :  { %v415_v52 = vpop.f32.mrf.mxu1  ;;  %7009 = vmatprep.subr.mxu0 %v7569_v1 }
 0x19e   :  { %v416_v53 = vadd.f32 %v6325_v47, %v415_v52 }
 0x19f   :  { %7007 = vmatmul.mubr.msk.f32.vlgmr.msra.gmra.mxu0 %vm424_vm5, %v251_v51 }
 0x1a0   :  { %7010 = vmatpush3.msra.mxu0 %v416_v53  ;;  %7011 = vmatprep.mubr.msk.f32.mxu0 %vm7570_vm2, %v7569_v1 }
 0x1a1   :  { %7014 = vmatprep.subr.mxu0 %v7569_v1 }
 0x1a3   :  { %v7765_v54 = vpop.f32.mrf.mxu1 }
 0x1a4   :  { %v828_v43 = vadd.f32 %v7765_v54, %v6339_v40 }
 0x1a5   :  { %v7767_v55 = vpop.f32.mrf.mxu1 }
 0x1a6   :  { %v823_v41 = vadd.f32 %v6339_v40, %v7767_v55  ;;  %v6390_v40 = vld [vmem:[%s8819_s3 + $0x1b0] ss:$0 sm:$0xff] }
 0x1ab   :  { %v7051_v57 = vpop.f32.mrf.mxu1 }
 0x1ac   :  { %v7772_v58 = vadd.f32 %v7051_v57, %v6355_v56 }
 0x1ad   :  { %v992_v59 = vpop.f32.mrf.mxu1 }
 0x1ae   :  { %v993_v60 = vadd.f32 %v6355_v56, %v992_v59 }
 0x1b0   :  { %7063 = vmatpush3.msra.mxu1 %v993_v60 }
 0x25b   :  { %v497_v0 = vpop.f32.mrf.mxu0 }
 0x25c   :  { %v498_v2 = vadd.f32 %v497_v0, %v7775_v63 }
 0x25d   :  { %v7003_v3 = vpop.f32.mrf.mxu0 }
 0x25e   :  { %v577_v4 = vsel %vm424_vm5, %v498_v2, -inf }
 0x25f   :  { %578 = vmax.xlane.f32.xlu0 %v577_v4  ;;  %v573_v5 = vpop.f32.mrf.mxu0 }
 0x260   :  { %v574_v6 = vadd.f32 %v573_v5, %v7775_v63 }
 0x261   :  { %v7008_v7 = vpop.f32.mrf.mxu0 }
 0x262   :  { %v580_v8 = vsel %vm424_vm5, %v574_v6, -inf  ;;  %v6380_v7 = vld [vmem:[%s8819_s3 + $0x108] sm:$0xff] }
 0x263   :  { %581 = vmax.xlane.f32.xlu0 %v580_v8  ;;  %v6379_v8 = vld [vmem:[%s8819_s3 + $0x100] sm:$0xff] }
 0x2e8   :  { %v579_v9 = vpop.xlane.xlu0 %578 }
 0x2e9   :  { %v583_v10 = vsub.f32 %v498_v2, %v579_v9  ;;  %v6378_v9 = vld [vmem:[%s8819_s3 + $0xf8] sm:$0xff] }
 0x2eb   :  { %v585_v11 = vmul.f32 1.442695, %v583_v10  ;;  %v6377_v10 = vld [vmem:[%s8819_s3 + $0xf0] sm:$0xff] }
 0x2ec   :  { %v582_v12 = vpop.xlane.xlu0 %581 }
 0x2ed   :  { %7465 = vpow2.f32 %v585_v11  ;;  %v584_v13 = vsub.f32 %v574_v6, %v582_v12  ;;  %v6364_v11 = vld [vmem:[%s8820_s4 + $0x8] sm:$0xff] }
 0x2ee   :  { %7072 = vmatprep.subr.mxu1 %v6364_v11  ;;  %v6372_v12 = vld [vmem:[%s8819_s3 + $0x68] sm:$0xff] }
 0x2ef   :  { %v587_v14 = vmul.f32 1.442695, %v584_v13 }
 0x2f1   :  { %7467 = vpow2.f32 %v587_v14 }
 0x2fa   :  { %v7466_v15 = vpop.eup %7465 }
 0x2fb   :  { %v589_v16 = vsel %vm424_vm5, %v7466_v15, 0.0 }
 0x2fc   :  { %590 = vadd.xlane.f32.xlu1 %v589_v16  ;;  %v6371_v16 = vld [vmem:[%s8819_s3 + $0x60] sm:$0xff] }
 0x2fe   :  { %v7468_v17 = vpop.eup %7467 }
 0x2ff   :  { %v592_v19 = vsel %vm424_vm5, %v7468_v17, 0.0 }
 0x300   :  { %593 = vadd.xlane.f32.xlu1 %v592_v19  ;;  %v6370_v19 = vld [vmem:[%s8819_s3 + $0x58] sm:$0xff] }
 0x385   :  { %v591_v20 = vpop.xlane.xlu1 %590 }
 0x386   :  { %7469 = vrcp.f32 %v591_v20  ;;  %v6369_v20 = vld [vmem:[%s8819_s3 + $0x50] sm:$0xff] }
 0x389   :  { %v594_v21 = vpop.xlane.xlu1 %593 }
 0x38a   :  { %7471 = vrcp.f32 %v594_v21 }
 0x393   :  { %v7470_v22 = vpop.eup %7469 }
 0x394   :  { %v597_v23 = vmul.f32 %v7470_v22, %v7466_v15  ;;  %v6388_v22 = vld [vmem:[%s8819_s3 + $0x1a8] sm:$0xff] }
 0x396   :  { %7012 = vmatmul.mubr.msk.f32.vlgmr.msra.gmra.mxu0 %vm424_vm5, %v597_v23  ;;  %v6387_v23 = vld [vmem:[%s8819_s3 + $0x1a0] sm:$0xff] }
 0x397   :  { %v7472_v25 = vpop.eup %7471  ;;  %7015 = vmatpush3.msra.mxu0 %v421_v50  ;;  %7016 = vmatprep.mubr.msk.f32.mxu0 %vm7570_vm2, %v7569_v1 }
 0x398   :  { %7030 = vmatprep.subr.mxu0 %v6345_v24  ;;  %v598_v28 = vmul.f32 %v7472_v25, %v7468_v17  ;;  %v6382_v25 = vld [vmem:[%s8819_s3 + $0x110] ss:$0 sm:$0xff] }
 0x39a   :  { %7017 = vmatmul.mubr.msk.f32.vlgmr.msra.gmra.mxu0 %vm424_vm5, %v598_v28  ;;  %v6386_v28 = vld [vmem:[%s8819_s3 + $0x198] sm:$0xff] }
 0x39b   :  { %7031 = vmatpush3.msra.mxu0 %v6345_v24  ;;  %7038 = vmatprep.mubr.msk.f32.mxu0 %vm121_vm3, %v7683_v26 }
 0x39c   :  { %7032 = vmatprep.subr.mxu0 %v6344_v29 }
 0x39d   :  { %7033 = vmatpush3.msra.mxu0 %v6344_v29 }
 0x39e   :  { %7034 = vmatprep.subr.mxu0 %v6343_v30 }
 0x39f   :  { %7035 = vmatpush3.msra.mxu0 %v6343_v30  ;;  %v6385_v30 = vld [vmem:[%s8819_s3 + $0x190] sm:$0xff] }
 0x3a0   :  { %7036 = vmatprep.subr.mxu0 %v6342_v31 }
 0x3a1   :  { %7037 = vmatpush3.msra.mxu0 %v6342_v31 }
 0x3a2   :  { %7039 = vmatmul.mubr.msk.f32.vlgmr.msra.gmra.mxu0 %vm121_vm3, %v7689_v27  ;;  %7052 = vmatprep.subr.mxu0 %v7569_v1 }
 0x3a3   :  { %7054 = vmatprep.mubr.msk.f32.mxu0 %vm7570_vm2, %v7569_v1 }
 0x456   :  { %v668_v32 = vpop.f32.mrf.mxu0 }
 0x458   :  { %v7013_v33 = vpop.f32.mrf.mxu0 }
 0x45a   :  { %v741_v34 = vpop.f32.mrf.mxu0 }
 0x45c   :  { %v7018_v35 = vpop.f32.mrf.mxu0 }
 0x462   :  { %v7040_v36 = vpop.f32.mrf.mxu0 }
 0x463   :  { %v913_v42 = vadd.f32 %v7040_v36, %v6347_v37 }
 0x464   :  { %v907_v38 = vpop.f32.mrf.mxu0 }
 0x465   :  { %v908_v39 = vadd.f32 %v6347_v37, %v907_v38  ;;  %v6374_v37 = vld [vmem:[%s8819_s3 + $0x70] ss:$0 sm:$0xff] }
 0x467   :  { %7053 = vmatpush3.xpose.msk.msra.mxu0 %vm424_vm5, %v908_v39 }
 0x468   :  { %7057 = vmatprep.subr.mxu0 %v7569_v1 }
 0x46a   :  { %7055 = vmatmul.mubr.msk.f32.vlgmr.msra.gmra.mxu0 %vm424_vm5, %v823_v41 }
 0x46b   :  { %7058 = vmatpush3.xpose.msk.msra.mxu0 %vm424_vm5, %v913_v42  ;;  %7059 = vmatprep.mubr.msk.f32.mxu0 %vm7570_vm2, %v7569_v1 }
 0x46c   :  { %7067 = vmatprep.subr.mxu0 %v7569_v1 }
 0x46e   :  { %7060 = vmatmul.mubr.msk.f32.vlgmr.msra.gmra.mxu0 %vm424_vm5, %v828_v43 }
 0x46f   :  { %7068 = vmatpush3.msra.mxu0 %v7772_v58  ;;  %7069 = vmatprep.mubr.msk.f32.mxu0 %vm7570_vm2, %v7569_v1 }
 0x470   :  { %7077 = vmatprep.subr.mxu0 %v745_v62 }
 0x52a   :  { %v1073_v44 = vpop.f32.mrf.mxu0 }
 0x52b   :  { %v1074_v45 = vadd.f32 %v1073_v44, %v7775_v63 }
 0x52c   :  { %v7056_v46 = vpop.f32.mrf.mxu0 }
 0x52d   :  { %v1153_v47 = vsel %vm424_vm5, %v1074_v45, -inf }
 0x52e   :  { %1154 = vmax.xlane.f32.xlu0 %v1153_v47  ;;  %v1149_v48 = vpop.f32.mrf.mxu0 }
 0x52f   :  { %v1150_v49 = vadd.f32 %v1149_v48, %v7775_v63 }
 0x530   :  { %v7061_v50 = vpop.f32.mrf.mxu0 }
 0x531   :  { %v1156_v51 = vsel %vm424_vm5, %v1150_v49, -inf }
 0x532   :  { %1157 = vmax.xlane.f32.xlu1 %v1156_v51 }
 0x5b7   :  { %v1155_v52 = vpop.xlane.xlu0 %1154 }
 0x5b8   :  { %v1159_v53 = vsub.f32 %v1074_v45, %v1155_v52 }
 0x5ba   :  { %v1161_v54 = vmul.f32 1.442695, %v1159_v53 }
 0x5bb   :  { %v1158_v55 = vpop.xlane.xlu1 %1157 }
 0x5bc   :  { %7473 = vpow2.f32 %v1161_v54  ;;  %v1160_v56 = vsub.f32 %v1150_v49, %v1158_v55 }
 0x5be   :  { %v1163_v57 = vmul.f32 1.442695, %v1160_v56 }
 0x5c0   :  { %7475 = vpow2.f32 %v1163_v57 }
 0x5c9   :  { %v7474_v58 = vpop.eup %7473 }
 0x5ca   :  { %v1165_v59 = vsel %vm424_vm5, %v7474_v58, 0.0 }
 0x5cb   :  { %1166 = vadd.xlane.f32.xlu0 %v1165_v59 }
 0x5cd   :  { %v7476_v60 = vpop.eup %7475 }
 0x5ce   :  { %v1168_v61 = vsel %vm424_vm5, %v7476_v60, 0.0 }
 0x5cf   :  { %1169 = vadd.xlane.f32.xlu1 %v1168_v61 }
 0x654   :  { %v1167_v0 = vpop.xlane.xlu0 %1166 }
 0x655   :  { %7477 = vrcp.f32 %v1167_v0 }
 0x658   :  { %v1170_v2 = vpop.xlane.xlu1 %1169 }
 0x659   :  { %7479 = vrcp.f32 %v1170_v2  ;;  %v6405_v2 = vld [vmem:[%s8819_s3 + $0x90] sm:$0xff] }
 0x662   :  { %v7478_v3 = vpop.eup %7477 }
 0x663   :  { %v1173_v4 = vmul.f32 %v7478_v3, %v7474_v58 }
 0x665   :  { %7065 = vmatmul.mubr.msk.f32.vlgmr.msra.gmra.mxu1 %vm424_vm5, %v1173_v4 }
 0x666   :  { %v7480_v5 = vpop.eup %7479  ;;  %7073 = vmatpush3.msra.mxu1 %v6364_v11  ;;  %v6402_v11 = vld [vmem:[%s8819_s3 + $0x78] sm:$0xff] }
 0x667   :  { %v1174_v6 = vmul.f32 %v7480_v5, %v7476_v60  ;;  %7082 = vmatprep.subr.mxu1 %v6372_v12 }
 0x669   :  { %7070 = vmatmul.mubr.msk.f32.vlgmr.msra.gmra.mxu0 %vm424_vm5, %v1174_v6 }
 0x66a   :  { %7079 = vmatprep.mubr.msk.f32.mxu0 %vm424_vm5, %v668_v32  ;;  %7078 = vmatpush3.msra.mxu0 %v745_v62 }
 0x66b   :  { %7093 = vmatprep.subr.mxu0 %v6380_v7 }
 0x66d   :  { %7080 = vmatmul.mubr.msk.f32.vlgmr.msra.gmra.mxu0 %vm424_vm5, %v741_v34 }
 0x66e   :  { %7094 = vmatpush3.msra.mxu0 %v6380_v7  ;;  %7101 = vmatprep.mubr.msk.f32.mxu0 %vm121_vm3, %v7683_v26 }
 0x66f   :  { %7095 = vmatprep.subr.mxu0 %v6379_v8 }
 0x670   :  { %7096 = vmatpush3.msra.mxu0 %v6379_v8 }
 0x671   :  { %7097 = vmatprep.subr.mxu0 %v6378_v9 }
 0x672   :  { %7098 = vmatpush3.msra.mxu0 %v6378_v9  ;;  %v6404_v9 = vld [vmem:[%s8819_s3 + $0x88] sm:$0xff] }
 0x673   :  { %7099 = vmatprep.subr.mxu0 %v6377_v10 }
 0x674   :  { %7100 = vmatpush3.msra.mxu0 %v6377_v10  ;;  %v6403_v10 = vld [vmem:[%s8819_s3 + $0x80] sm:$0xff] }
 0x675   :  { %7102 = vmatmul.mubr.msk.f32.vlgmr.msra.gmra.mxu0 %vm121_vm3, %v7689_v27  ;;  %7115 = vmatprep.subr.mxu0 %v7569_v1 }
 0x676   :  { %7117 = vmatprep.mubr.msk.f32.mxu0 %vm7570_vm2, %v7569_v1 }
 0x725   :  { %v1244_v13 = vpop.f32.mrf.mxu1 }
 0x726   :  { %7074 = vmatprep.mubr.msk.f32.mxu1 %vm424_vm5, %v1244_v13  ;;  %v6420_v13 = vld [vmem:[%s8819_s3 + $0x1c8] sm:$0xff] }
 0x727   :  { %v7066_v14 = vpop.f32.mrf.mxu1 }
 0x728   :  { %v6419_v14 = vld [vmem:[%s8819_s3 + $0x1c0] sm:$0xff] }
 0x729   :  { %v1317_v15 = vpop.f32.mrf.mxu0 }
 0x72a   :  { %7075 = vmatmul.mubr.msk.f32.vlgmr.msra.gmra.mxu1 %vm424_vm5, %v1317_v15  ;;  %v6418_v15 = vld [vmem:[%s8819_s3 + $0x1b8] sm:$0xff] }
 0x72b   :  { %7083 = vmatpush3.msra.mxu1 %v6372_v12  ;;  %v7071_v17 = vpop.f32.mrf.mxu0  ;;  %7090 = vmatprep.mubr.msk.f32.mxu1 %vm121_vm3, %v7683_v26  ;;  %v6421_v12 = vld [vmem:[%s8819_s3 + $0x1d0] sm:$0xff] }
 0x72c   :  { %7084 = vmatprep.subr.mxu1 %v6371_v16  ;;  %v6413_v17 = vld [vmem:[%s8819_s3 + $0x130] sm:$0xff] }
 0x72d   :  { %7085 = vmatpush3.msra.mxu1 %v6371_v16  ;;  %v7876_v21 = vpop.f32.mrf.mxu0  ;;  %v6399_v16 = vld [vmem:[%s8820_s4 + $0x10] sm:$0xff] }
 0x72e   :  { %7086 = vmatprep.subr.mxu1 %v6370_v19 }
 0x72f   :  { %7087 = vmatpush3.msra.mxu1 %v6370_v19  ;;  %v7886_v24 = vpop.f32.mrf.mxu0 }
 0x730   :  { %7088 = vmatprep.subr.mxu1 %v6369_v20 }
 0x731   :  { %7089 = vmatpush3.msra.mxu1 %v6369_v20 }
 0x732   :  { %7091 = vmatmul.mubr.msk.f32.vlgmr.msra.gmra.mxu1 %vm121_vm3, %v7689_v27  ;;  %7104 = vmatprep.subr.mxu1 %v6388_v22 }
 0x733   :  { %7105 = vmatpush3.msra.mxu1 %v6388_v22  ;;  %7112 = vmatprep.mubr.msk.f32.mxu1 %vm121_vm3, %v7683_v26 }
 0x734   :  { %7106 = vmatprep.subr.mxu1 %v6387_v23 }
 0x735   :  { %v7103_v29 = vpop.f32.mrf.mxu0  ;;  %7107 = vmatpush3.msra.mxu1 %v6387_v23  ;;  %v6412_v23 = vld [vmem:[%s8819_s3 + $0x128] sm:$0xff] }
 0x736   :  { %v1652_v31 = vadd.f32 %v7103_v29, %v6382_v25  ;;  %7108 = vmatprep.subr.mxu1 %v6386_v28  ;;  %v6410_v29 = vld [vmem:[%s8819_s3 + $0x118] sm:$0xff] }
 0x737   :  { %v1646_v32 = vpop.f32.mrf.mxu0  ;;  %7109 = vmatpush3.msra.mxu1 %v6386_v28  ;;  %v6411_v28 = vld [vmem:[%s8819_s3 + $0x120] sm:$0xff] }
 0x738   :  { %v1647_v33 = vadd.f32 %v6382_v25, %v1646_v32  ;;  %7110 = vmatprep.subr.mxu1 %v6385_v30  ;;  %v6423_v32 = vld [vmem:[%s8819_s3 + $0x1d8] ss:$0 sm:$0xff] }
 0x739   :  { %7111 = vmatpush3.msra.mxu1 %v6385_v30 }
 0x73a   :  { %7113 = vmatmul.mubr.msk.f32.vlgmr.msra.gmra.mxu1 %vm121_vm3, %v7689_v27  ;;  %7116 = vmatpush3.xpose.msk.msra.mxu0 %vm424_vm5, %v1647_v33 }
 0x73b   :  { %7120 = vmatprep.subr.mxu0 %v7569_v1  ;;  %7125 = vmatprep.subr.mxu1 %v7569_v1 }
 0x73c   :  { %7127 = vmatprep.mubr.msk.f32.mxu1 %vm7570_vm2, %v7569_v1 }
 0x7ea   :  { %v7906_v34 = vpop.f32.mrf.mxu1 }
 0x7ec   :  { %v7908_v35 = vpop.f32.mrf.mxu1 }
 0x7f2   :  { %v7092_v36 = vpop.f32.mrf.mxu1 }
 0x7f3   :  { %v1567_v41 = vadd.f32 %v7092_v36, %v6374_v37 }
 0x7f4   :  { %v1561_v38 = vpop.f32.mrf.mxu1 }
 0x7f5   :  { %v1562_v39 = vadd.f32 %v6374_v37, %v1561_v38 }
 0x7f7   :  { %7118 = vmatmul.mubr.msk.f32.vlgmr.msra.gmra.mxu0 %vm424_vm5, %v1562_v39  ;;  %v1482_v39 = vadd.f32 %v7876_v21, %v7906_v34  ;;  %v6407_v21 = vld [vmem:[%s8819_s3 + $0x98] ss:$0 sm:$0xff] }
 0x7f8   :  { %7121 = vmatpush3.xpose.msk.msra.mxu0 %vm424_vm5, %v1652_v31  ;;  %7122 = vmatprep.mubr.msk.f32.mxu0 %vm7570_vm2, %v7569_v1 }
 0x7f9   :  { %7130 = vmatprep.subr.mxu0 %v7569_v1 }
 0x7fa   :  { %v7114_v42 = vpop.f32.mrf.mxu1 }
 0x7fb   :  { %v1737_v43 = vadd.f32 %v7114_v42, %v6390_v40  ;;  %7123 = vmatmul.mubr.msk.f32.vlgmr.msra.gmra.mxu0 %vm424_vm5, %v1567_v41  ;;  %v1477_v41 = vadd.f32 %v7886_v24, %v7908_v35 }
 0x7fc   :  { %v1731_v44 = vpop.f32.mrf.mxu1  ;;  %7132 = vmatprep.mubr.msk.f32.mxu0 %vm7570_vm2, %v7569_v1 }
 0x7fd   :  { %v1732_v45 = vadd.f32 %v6390_v40, %v1731_v44  ;;  %7131 = vmatpush3.msra.mxu0 %v1737_v43 }
 0x7fe   :  { %7140 = vmatprep.subr.mxu0 %v6405_v2 }
 0x7ff   :  { %7126 = vmatpush3.msra.mxu1 %v1732_v45 }
 0x800   :  { %7135 = vmatprep.subr.mxu1 %v6399_v16 }
 0x8b7   :  { %v1812_v46 = vpop.f32.mrf.mxu0 }
 0x8b8   :  { %v1813_v47 = vadd.f32 %v1812_v46, %v7775_v63  ;;  %v6415_v46 = vld [vmem:[%s8819_s3 + $0x138] ss:$0 sm:$0xff] }
 0x8b9   :  { %v7119_v48 = vpop.f32.mrf.mxu0 }
 0x8ba   :  { %v1892_v49 = vsel %vm424_vm5, %v1813_v47, -inf }
 0x8bb   :  { %1893 = vmax.xlane.f32.xlu0 %v1892_v49  ;;  %v1888_v50 = vpop.f32.mrf.mxu0 }
 0x8bc   :  { %v1889_v51 = vadd.f32 %v1888_v50, %v7775_v63 }
 0x8bd   :  { %v7124_v52 = vpop.f32.mrf.mxu0 }
 0x8be   :  { %v1895_v53 = vsel %vm424_vm5, %v1889_v51, -inf }
 0x8bf   :  { %1896 = vmax.xlane.f32.xlu1 %v1895_v53 }
 0x944   :  { %v1894_v54 = vpop.xlane.xlu0 %1893 }
 0x945   :  { %v1898_v55 = vsub.f32 %v1813_v47, %v1894_v54 }
 0x947   :  { %v1900_v56 = vmul.f32 1.442695, %v1898_v55 }
 0x948   :  { %v1897_v57 = vpop.xlane.xlu1 %1896 }
 0x949   :  { %7481 = vpow2.f32 %v1900_v56  ;;  %v1899_v58 = vsub.f32 %v1889_v51, %v1897_v57 }
 0x94b   :  { %v1902_v59 = vmul.f32 1.442695, %v1899_v58 }
 0x94d   :  { %7483 = vpow2.f32 %v1902_v59 }
 0x956   :  { %v7482_v60 = vpop.eup %7481 }
 0x957   :  { %v1904_v61 = vsel %vm424_vm5, %v7482_v60, 0.0 }
 0x958   :  { %1905 = vadd.xlane.f32.xlu0 %v1904_v61 }
 0x95a   :  { %v7484_v62 = vpop.eup %7483 }
 0x95b   :  { %v1907_v0 = vsel %vm424_vm5, %v7484_v62, 0.0 }
 0x95c   :  { %1908 = vadd.xlane.f32.xlu1 %v1907_v0 }
 0x9e1   :  { %v1906_v3 = vpop.xlane.xlu0 %1905 }
 0x9e2   :  { %7485 = vrcp.f32 %v1906_v3 }
 0x9e5   :  { %v1909_v4 = vpop.xlane.xlu1 %1908 }
 0x9e6   :  { %7487 = vrcp.f32 %v1909_v4 }
 0x9ef   :  { %v7486_v5 = vpop.eup %7485 }
 0x9f0   :  { %v1912_v6 = vmul.f32 %v7486_v5, %v7482_v60 }
 0x9f2   :  { %7128 = vmatmul.mubr.msk.f32.vlgmr.msra.gmra.mxu1 %vm424_vm5, %v1912_v6 }
 0x9f3   :  { %v7488_v7 = vpop.eup %7487  ;;  %7136 = vmatpush3.msra.mxu1 %v6399_v16  ;;  %v6435_v16 = vld [vmem:[%s8823_s7] ss:$0 sm:$0xff] }
 0x9f4   :  { %v1913_v8 = vmul.f32 %v7488_v7, %v7484_v62  ;;  %7151 = vmatprep.subr.mxu1 %v6413_v17 }
 0x9f6   :  { %7133 = vmatmul.mubr.msk.f32.vlgmr.msra.gmra.mxu0 %vm424_vm5, %v1913_v8 }
 0x9f7   :  { %7141 = vmatpush3.msra.mxu0 %v6405_v2  ;;  %7148 = vmatprep.mubr.msk.f32.mxu0 %vm121_vm3, %v7683_v26 }
 0x9f8   :  { %7142 = vmatprep.subr.mxu0 %v6404_v9 }
 0x9f9   :  { %7143 = vmatpush3.msra.mxu0 %v6404_v9 }
 0x9fa   :  { %7144 = vmatprep.subr.mxu0 %v6403_v10 }
 0x9fb   :  { %7145 = vmatpush3.msra.mxu0 %v6403_v10 }
 0x9fc   :  { %7146 = vmatprep.subr.mxu0 %v6402_v11 }
 0x9fd   :  { %7147 = vmatpush3.msra.mxu0 %v6402_v11  ;;  %v6432_v11 = vld [vmem:[%s8820_s4 + $0x18] sm:$0xff] }
 0x9fe   :  { %7149 = vmatmul.mubr.msk.f32.vlgmr.msra.gmra.mxu0 %vm121_vm3, %v7689_v27  ;;  %7162 = vmatprep.subr.mxu0 %v6421_v12 }
 0x9ff   :  { %7163 = vmatpush3.msra.mxu0 %v6421_v12  ;;  %7170 = vmatprep.mubr.msk.f32.mxu0 %vm121_vm3, %v7683_v26 }
 0xa00   :  { %7164 = vmatprep.subr.mxu0 %v6420_v13 }
 0xa01   :  { %7165 = vmatpush3.msra.mxu0 %v6420_v13 }
 0xa02   :  { %7166 = vmatprep.subr.mxu0 %v6419_v14 }
 0xa03   :  { %7167 = vmatpush3.msra.mxu0 %v6419_v14 }
 0xa04   :  { %7168 = vmatprep.subr.mxu0 %v6418_v15 }
 0xa05   :  { %7169 = vmatpush3.msra.mxu0 %v6418_v15 }
 0xa06   :  { %7171 = vmatmul.mubr.msk.f32.vlgmr.msra.gmra.mxu0 %vm121_vm3, %v7689_v27  ;;  %7183 = vmatprep.subr.mxu0 %v7569_v1 }
 0xa07   :  { %7185 = vmatprep.mubr.msk.f32.mxu0 %vm7570_vm2, %v7569_v1 }
 0xab2   :  { %v1983_v19 = vpop.f32.mrf.mxu1 }
 0xab3   :  { %7137 = vmatprep.mubr.msk.f32.mxu1 %vm424_vm5, %v1983_v19 }
 0xab4   :  { %v7129_v20 = vpop.f32.mrf.mxu1 }
 0xab6   :  { %v2056_v22 = vpop.f32.mrf.mxu0 }
 0xab7   :  { %7138 = vmatmul.mubr.msk.f32.vlgmr.msra.gmra.mxu1 %vm424_vm5, %v2056_v22 }
 0xab8   :  { %7152 = vmatpush3.msra.mxu1 %v6413_v17  ;;  %v7134_v25 = vpop.f32.mrf.mxu0  ;;  %7159 = vmatprep.mubr.msk.f32.mxu1 %vm121_vm3, %v7683_v26 }
 0xab9   :  { %7153 = vmatprep.subr.mxu1 %v6412_v23 }
 0xaba   :  { %7154 = vmatpush3.msra.mxu1 %v6412_v23 }
 0xabb   :  { %7155 = vmatprep.subr.mxu1 %v6411_v28 }
 0xabc   :  { %7156 = vmatpush3.msra.mxu1 %v6411_v28 }
 0xabd   :  { %7157 = vmatprep.subr.mxu1 %v6410_v29 }
 0xabe   :  { %7158 = vmatpush3.msra.mxu1 %v6410_v29  ;;  %v7150_v30 = vpop.f32.mrf.mxu0 }
 0xabf   :  { %7160 = vmatmul.mubr.msk.f32.vlgmr.msra.gmra.mxu1 %vm121_vm3, %v7689_v27  ;;  %7173 = vmatprep.subr.mxu1 %v7569_v1  ;;  %v2227_v35 = vadd.f32 %v7150_v30, %v6407_v21 }
 0xac0   :  { %7175 = vmatprep.mubr.msk.f32.mxu1 %vm7570_vm2, %v7569_v1  ;;  %v2221_v31 = vpop.f32.mrf.mxu0 }
 0xac1   :  { %v2222_v34 = vadd.f32 %v6407_v21, %v2221_v31  ;;  %v2852_v21 = vld [vmem:[%s8821_s5] sm:$0xff] }
 0xac6   :  { %v7172_v33 = vpop.f32.mrf.mxu0 }
 0xac7   :  { %v2397_v36 = vadd.f32 %v7172_v33, %v6423_v32 }
 0xac8   :  { %v2391_v37 = vpop.f32.mrf.mxu0 }
 0xac9   :  { %v2392_v38 = vadd.f32 %v6423_v32, %v2391_v37 }
 0xacb   :  { %7184 = vmatpush3.msra.mxu0 %v2392_v38 }
 0xacc   :  { %7193 = vmatprep.subr.mxu0 %v6432_v11 }
 0xb77   :  { %v7139_v40 = vpop.f32.mrf.mxu1 }
 0xb78   :  { %v7998_v42 = vadd.f32 %v7139_v40, %v1482_v39 }
 0xb79   :  { %v2134_v43 = vpop.f32.mrf.mxu1 }
 0xb7a   :  { %v8000_v44 = vadd.f32 %v2134_v43, %v1477_v41  ;;  %v2858_v43 = vld [vmem:[%s8821_s5 + $0x30] sm:$0xff] }
 0xb7f   :  { %v7161_v45 = vpop.f32.mrf.mxu1 }
 0xb80   :  { %v2312_v24 = vadd.f32 %v7161_v45, %v6415_v46  ;;  %v2856_v45 = vld [vmem:[%s8821_s5 + $0x20] sm:$0xff] }
 0xb81   :  { %v2306_v47 = vpop.f32.mrf.mxu1 }
 0xb82   :  { %v2307_v48 = vadd.f32 %v6415_v46, %v2306_v47  ;;  %v2855_v46 = vld [vmem:[%s8821_s5 + $0x18] sm:$0xff]  ;;  %v2854_v47 = vld [vmem:[%s8821_s5 + $0x10] sm:$0xff] }
 0xb84   :  { %7174 = vmatpush3.xpose.msk.msra.mxu1 %vm424_vm5, %v2307_v48  ;;  %v2853_v48 = vld [vmem:[%s8821_s5 + $0x8] sm:$0xff] }
 0xb85   :  { %7178 = vmatprep.subr.mxu1 %v7569_v1 }
 0xb87   :  { %7176 = vmatmul.mubr.msk.f32.vlgmr.msra.gmra.mxu1 %vm424_vm5, %v2222_v34  ;;  %v2991_v34 = vld [vmem:[%s8822_s6 + $0xf8] sm:$0xff] }
 0xb88   :  { %7179 = vmatpush3.xpose.msk.msra.mxu1 %vm424_vm5, %v2312_v24  ;;  %7180 = vmatprep.mubr.msk.f32.mxu1 %vm7570_vm2, %v7569_v1  ;;  %v2975_v24 = vld [vmem:[%s8822_s6 + $0x78] sm:$0xff] }
 0xb89   :  { %7188 = vmatprep.subr.mxu1 %v7569_v1 }
 0xb8b   :  { %7181 = vmatmul.mubr.msk.f32.vlgmr.msra.gmra.mxu1 %vm424_vm5, %v2227_v35  ;;  %v2990_v35 = vld [vmem:[%s8822_s6 + $0xf0] sm:$0xff] }
 0xb8c   :  { %7189 = vmatpush3.msra.mxu1 %v2397_v36  ;;  %7190 = vmatprep.mubr.msk.f32.mxu1 %vm7570_vm2, %v7569_v1 }
 0xc47   :  { %v2472_v49 = vpop.f32.mrf.mxu1 }
 0xc48   :  { %v2473_v50 = vadd.f32 %v2472_v49, %v7775_v63  ;;  %v2974_v49 = vld [vmem:[%s8822_s6 + $0x70] sm:$0xff] }
 0xc49   :  { %v7177_v51 = vpop.f32.mrf.mxu1 }
 0xc4a   :  { %v2552_v52 = vsel %vm424_vm5, %v2473_v50, -inf  ;;  %v2973_v51 = vld [vmem:[%s8822_s6 + $0x68] sm:$0xff] }
 0xc4b   :  { %2553 = vmax.xlane.f32.xlu0 %v2552_v52  ;;  %v2548_v53 = vpop.f32.mrf.mxu1  ;;  %v2988_v52 = vld [vmem:[%s8822_s6 + $0xe0] sm:$0xff] }
 0xc4c   :  { %v2549_v54 = vadd.f32 %v2548_v53, %v7775_v63  ;;  %v2972_v53 = vld [vmem:[%s8822_s6 + $0x60] sm:$0xff] }
 0xc4d   :  { %v7182_v55 = vpop.f32.mrf.mxu1 }
 0xc4e   :  { %v2555_v56 = vsel %vm424_vm5, %v2549_v54, -inf  ;;  %v2971_v55 = vld [vmem:[%s8822_s6 + $0x58] sm:$0xff] }
 0xc4f   :  { %2556 = vmax.xlane.f32.xlu1 %v2555_v56  ;;  %v2986_v56 = vld [vmem:[%s8822_s6 + $0xd0] sm:$0xff] }
 0xcd4   :  { %v2554_v57 = vpop.xlane.xlu0 %2553 }
 0xcd5   :  { %v2558_v58 = vsub.f32 %v2473_v50, %v2554_v57  ;;  %v2989_v50 = vld [vmem:[%s8822_s6 + $0xe8] sm:$0xff]  ;;  %v2970_v57 = vld [vmem:[%s8822_s6 + $0x50] sm:$0xff] }
 0xcd7   :  { %v2560_v59 = vmul.f32 1.442695, %v2558_v58  ;;  %v2985_v58 = vld [vmem:[%s8822_s6 + $0xc8] sm:$0xff] }
 0xcd8   :  { %v2557_v60 = vpop.xlane.xlu1 %2556 }
 0xcd9   :  { %7489 = vpow2.f32 %v2560_v59  ;;  %v2559_v61 = vsub.f32 %v2549_v54, %v2557_v60  ;;  %v2987_v54 = vld [vmem:[%s8822_s6 + $0xd8] sm:$0xff]  ;;  %v2969_v59 = vld [vmem:[%s8822_s6 + $0x48] sm:$0xff]  ;;  %v2984_v60 = vld [vmem:[%s8822_s6 + $0xc0] sm:$0xff] }
 0xcdb   :  { %v2562_v62 = vmul.f32 1.442695, %v2559_v61  ;;  %v2968_v61 = vld [vmem:[%s8822_s6 + $0x40] sm:$0xff] }
 0xcdd   :  { %7491 = vpow2.f32 %v2562_v62  ;;  %v2983_v62 = vld [vmem:[%s8822_s6 + $0xb8] sm:$0xff] }
 0xce6   :  { %v7490_v0 = vpop.eup %7489 }
 0xce7   :  { %v2564_v2 = vsel %vm424_vm5, %v7490_v0, 0.0 }
 0xce8   :  { %2565 = vadd.xlane.f32.xlu0 %v2564_v2  ;;  %v2982_v2 = vld [vmem:[%s8822_s6 + $0xb0] sm:$0xff] }
 0xcea   :  { %v7492_v3 = vpop.eup %7491 }
 0xceb   :  { %v2567_v4 = vsel %vm424_vm5, %v7492_v3, 0.0 }
 0xcec   :  { %2568 = vadd.xlane.f32.xlu1 %v2567_v4  ;;  %v2981_v4 = vld [vmem:[%s8822_s6 + $0xa8] sm:$0xff] }
 0xd71   :  { %v2566_v5 = vpop.xlane.xlu0 %2565 }
 0xd72   :  { %7493 = vrcp.f32 %v2566_v5  ;;  %v2965_v5 = vld [vmem:[%s8822_s6 + $0x28] sm:$0xff] }
 0xd75   :  { %v2569_v6 = vpop.xlane.xlu1 %2568 }
 0xd76   :  { %7495 = vrcp.f32 %v2569_v6  ;;  %v2980_v6 = vld [vmem:[%s8822_s6 + $0xa0] sm:$0xff] }
 0xd7f   :  { %v7494_v7 = vpop.eup %7493 }
 0xd80   :  { %v2572_v8 = vmul.f32 %v7494_v7, %v7490_v0  ;;  %v2967_v0 = vld [vmem:[%s8822_s6 + $0x38] sm:$0xff]  ;;  %v2964_v7 = vld [vmem:[%s8822_s6 + $0x20] sm:$0xff] }
 0xd82   :  { %7186 = vmatmul.mubr.msk.f32.vlgmr.msra.gmra.mxu0 %vm424_vm5, %v2572_v8 }
 0xd83   :  { %v7496_v9 = vpop.eup %7495  ;;  %7194 = vmatpush3.msra.mxu0 %v6432_v11 }
 0xd84   :  { %v2573_v10 = vmul.f32 %v7496_v9, %v7492_v3  ;;  %6755 = vmatprep.subr.mxu0 %v2991_v34  ;;  %v2966_v3 = vld [vmem:[%s8822_s6 + $0x30] sm:$0xff] }
 0xd86   :  { %7191 = vmatmul.mubr.msk.f32.vlgmr.msra.gmra.mxu1 %vm424_vm5, %v2573_v10 }
 0xd87   :  { %2943 = vmatprep.mubr.f32.mxu1 %v7569_v1 }
 0xe42   :  { %v2643_v12 = vpop.f32.mrf.mxu0 }
 0xe43   :  { %7195 = vmatprep.mubr.msk.f32.mxu0 %vm424_vm5, %v2643_v12 }
 0xe44   :  { %v7187_v13 = vpop.f32.mrf.mxu0 }
 0xe46   :  { %v2716_v14 = vpop.f32.mrf.mxu1 }
 0xe47   :  { %7196 = vmatmul.mubr.msk.f32.vlgmr.msra.gmra.mxu0 %vm424_vm5, %v2716_v14 }
 0xe48   :  { %v7192_v15 = vpop.f32.mrf.mxu1  ;;  %6756 = vmatpush3.msra.mxu0 %v2975_v24 }
 0xe49   :  { %6757 = vmatprep.subr.mxu0 %v2990_v35 }
 0xe4a   :  { %6758 = vmatpush3.msra.mxu0 %v2974_v49 }
 0xe4b   :  { %6759 = vmatprep.subr.mxu0 %v2989_v50 }
 0xe4c   :  { %6760 = vmatpush3.msra.mxu0 %v2973_v51  ;;  %v6441_v51 = vld [vmem:[%s8823_s7 + $0x3] ss:$0 sm:$0xff] }
 0xe4d   :  { %6761 = vmatprep.subr.mxu0 %v2988_v52 }
 0xe4e   :  { %6762 = vmatpush3.msra.mxu0 %v2972_v53 }
 0xe4f   :  { %6763 = vmatprep.subr.mxu0 %v2987_v54 }
 0xe50   :  { %6764 = vmatpush3.msra.mxu0 %v2971_v55 }
 0xe51   :  { %6765 = vmatprep.subr.mxu0 %v2986_v56 }
 0xe52   :  { %6766 = vmatpush3.msra.mxu0 %v2970_v57 }
 0xe53   :  { %6767 = vmatprep.subr.mxu0 %v2985_v58 }
 0xe54   :  { %6768 = vmatpush3.msra.mxu0 %v2969_v59 }
 0xe55   :  { %6769 = vmatprep.subr.mxu0 %v2984_v60 }
 0xe56   :  { %6770 = vmatpush3.msra.mxu0 %v2968_v61 }
 0xe57   :  { %6771 = vmatprep.subr.mxu0 %v2983_v62 }
 0xe58   :  { %6772 = vmatpush3.msra.mxu0 %v2967_v0 }
 0xe59   :  { %6773 = vmatprep.subr.mxu0 %v2982_v2 }
 0xe5a   :  { %6774 = vmatpush3.msra.mxu0 %v2966_v3 }
 0xe5b   :  { %6775 = vmatprep.subr.mxu0 %v2981_v4 }
 0xe5c   :  { %6776 = vmatpush3.msra.mxu0 %v2965_v5 }
 0xe5d   :  { %6777 = vmatprep.subr.mxu0 %v2980_v6 }
 0xe5e   :  { %6778 = vmatpush3.msra.mxu0 %v2964_v7 }
 0xf07   :  { %v7197_v17 = vpop.f32.mrf.mxu0 }
 0xf08   :  { %v2804_v19 = vadd.f32 %v7197_v17, %v7998_v42  ;;  %v2859_v42 = vld [vmem:[%s8821_s5 + $0x38] sm:$0xff] }
 0xf09   :  { %v2794_v20 = vpop.f32.mrf.mxu0  ;;  %2903 = vmatprep.subr.mxu1 %v2859_v42 }
 0xf0a   :  { %v2810_v22 = vadd.f32 %v6435_v16, %v2804_v19  ;;  %v2803_v23 = vadd.f32 %v2794_v20, %v8000_v44  ;;  %2904 = vmatpush1.msra.mxu1 %v2858_v43  ;;  %v2857_v44 = vld [vmem:[%s8821_s5 + $0x28] sm:$0xff]  ;;  %v6436_v19 = vld [vmem:[%s8823_s7 + $0x1] ss:$0 sm:$0xff] }
 0xf0b   :  { %2905 = vmatprep.subr.mxu1 %v2857_v44 }
 0xf0c   :  { %v2809_v25 = vadd.f32 %v6435_v16, %v2803_v23  ;;  %v2812_v28 = vadd.f32 %v2810_v22, %v7689_v27  ;;  %2906 = vmatpush1.msra.mxu1 %v2856_v45  ;;  %v6437_v22 = vld [vmem:[%s8823_s7 + $0x2] ss:$0 sm:$0xff] }
 0xf0d   :  { %2907 = vmatprep.subr.mxu1 %v2855_v46 }
 0xf0e   :  { %v2816_v29 = vsel %vm121_vm3, %v2812_v28, 0.0  ;;  %v2811_v30 = vadd.f32 %v2809_v25, %v7683_v26  ;;  %2908 = vmatpush1.msra.mxu1 %v2854_v47 }
 0xf0f   :  { %2817 = vadd.xlane.f32.xlu1 %v2816_v29  ;;  %2909 = vmatprep.subr.mxu1 %v2853_v48  ;;  %v2979_v29 = vld [vmem:[%s8822_s6 + $0x98] sm:$0xff] }
 0xf10   :  { %v2813_v31 = vsel %vm121_vm3, %v2811_v30, 0.0  ;;  %2910 = vmatpush1.msra.mxu1 %v2852_v21  ;;  %6779 = vmatprep.subr.mxu0 %v2979_v29 }
 0xf11   :  { %2814 = vadd.xlane.f32.xlu0 %v2813_v31  ;;  %v2978_v31 = vld [vmem:[%s8822_s6 + $0x90] sm:$0xff] }
 0xf98   :  { %v2818_v32 = vpop.xlane.xlu1 %2817 }
 0xf99   :  { %v2821_v33 = vmul.f32 0.03125, %v2818_v32  ;;  %v2962_v32 = vld [vmem:[%s8822_s6 + $0x10] sm:$0xff] }
 0xf9a   :  { %v2815_v36 = vpop.xlane.xlu0 %2814 }
 0xf9b   :  { %v8041_v37 = vsub.f32 %v2812_v28, %v2821_v33  ;;  %v2820_v38 = vmul.f32 0.03125, %v2815_v36  ;;  %v2977_v33 = vld [vmem:[%s8822_s6 + $0x88] sm:$0xff] }
 0xf9c   :  { %v2961_v36 = vld [vmem:[%s8822_s6 + $0x8] sm:$0xff] }
 0xf9d   :  { %v8043_v39 = vsub.f32 %v2811_v30, %v2820_v38  ;;  %v2825_v40 = vmul.f32 %v8041_v37, %v8041_v37  ;;  %v2963_v30 = vld [vmem:[%s8822_s6 + $0x18] sm:$0xff]  ;;  %v2960_v38 = vld [vmem:[%s8822_s6] sm:$0xff] }
 0xf9e   :  { %6780 = vmatpush3.msra.mxu0 %v2963_v30  ;;  %v6443_v30 = vld [vmem:[%s8823_s7 + $0x5] ss:$0 sm:$0xff] }
 0xf9f   :  { %v2829_v27 = vsel %vm121_vm3, %v2825_v40, 0.0  ;;  %v2824_v26 = vmul.f32 %v8043_v39, %v8043_v39  ;;  %6781 = vmatprep.subr.mxu0 %v2978_v31  ;;  %v6438_v40 = vld [vmem:[%s8821_s5 + $0x40] ss:$8 sm:$0x3] }
 0xfa0   :  { %2830 = vadd.xlane.f32.xlu1 %v2829_v27  ;;  %6782 = vmatpush3.msra.mxu0 %v2962_v32  ;;  %v2869_v27 = vsub.s32 1, %v7680_v18 }
 0xfa1   :  { %v2826_v41 = vsel %vm121_vm3, %v2824_v26, 0.0  ;;  %6783 = vmatprep.subr.mxu0 %v2977_v33 }
 0xfa2   :  { %2827 = vadd.xlane.f32.xlu0 %v2826_v41  ;;  %6784 = vmatpush3.msra.mxu0 %v2961_v36  ;;  %v2870_v41 = vrot.slane %v6438_v40, %v2869_v27 }
0x1029   :  { %v2831_v8 = vpop.xlane.xlu1 %2830 }
0x102a   :  { %v2833_v9 = vmul.f32 0.03125, %v2831_v8 }
0x102b   :  { %v2828_v10 = vpop.xlane.xlu0 %2827 }
0x102c   :  { %v2835_v11 = vadd.f32 1e-05, %v2833_v9  ;;  %v2832_v12 = vmul.f32 0.03125, %v2828_v10 }
0x102e   :  { %7497 = vrsqrt.f32 %v2835_v11  ;;  %v2834_v13 = vadd.f32 1e-05, %v2832_v12  ;;  %v6453_v11 = vld [vmem:[%s8819_s3 + $0x1f8] sm:$0xff]  ;;  %v6452_v12 = vld [vmem:[%s8819_s3 + $0x1f0] sm:$0xff] }
0x102f   :  { %7198 = vmatprep.subr.mxu1 %v6453_v11 }
0x1030   :  { %7499 = vrsqrt.f32 %v2834_v13  ;;  %v6451_v13 = vld [vmem:[%s8819_s3 + $0x1e8] sm:$0xff] }
0x103b   :  { %v7498_v14 = vpop.eup %7497 }
0x103c   :  { %v2839_v17 = vmul.f32 %v7498_v14, %v8041_v37  ;;  %v2976_v37 = vld [vmem:[%s8822_s6 + $0x80] sm:$0xff] }
0x103d   :  { %v7500_v15 = vpop.eup %7499  ;;  %6785 = vmatprep.subr.mxu0 %v2976_v37  ;;  %v6450_v14 = vld [vmem:[%s8819_s3 + $0x1e0] sm:$0xff] }
0x103e   :  { %v2838_v16 = vmul.f32 %v7500_v15, %v8043_v39  ;;  %v2845_v25 = vmul.f32 %v6436_v19, %v2839_v17  ;;  %6786 = vmatpush3.msra.mxu0 %v2960_v38  ;;  %v2865_v39 = vsub.s32 0, %v7680_v18  ;;  %v6461_v15 = vld [vmem:[%s8819_s3 + $0x298] sm:$0xff]  ;;  %v6628_v18 = vld [vmem:[%s8823_s7 + $0xb] ss:$0 sm:$0xff] }
0x103f   :  { %7241 = vmatprep.subr.mxu0 %v7569_v1 }
0x1040   :  { %v2844_v20 = vmul.f32 %v6436_v19, %v2838_v16  ;;  %v2851_v28 = vadd.f32 %v6437_v22, %v2845_v25  ;;  %v2866_v26 = vrot.slane %v6438_v40, %v2865_v39  ;;  %v6460_v40 = vld [vmem:[%s8819_s3 + $0x290] sm:$0xff] }
0x1042   :  { %v2850_v23 = vadd.f32 %v6437_v22, %v2844_v20 }
0x1044   :  { %6439 = vmatmul.mubr.msk.f32.vlgmr.msra.gmra.mxu1 %vm121_vm3, %v2850_v23 }
0x1045   :  { %2949 = vmatprep.mubr.f32.mxu1 %v7569_v1  ;;  %7199 = vmatpush3.msra.mxu1 %v6453_v11 }
0x1046   :  { %7200 = vmatprep.subr.mxu1 %v6452_v12 }
0x1047   :  { %7201 = vmatpush3.msra.mxu1 %v6452_v12 }
0x1048   :  { %6440 = vmatmul.mubr.msk.f32.gmra.mxu1 %vm121_vm3, %v2851_v28  ;;  %7202 = vmatprep.subr.mxu1 %v6451_v13 }
0x1049   :  { %7203 = vmatpush3.msra.mxu1 %v6451_v13  ;;  %v6484_v13 = vld [vmem:[%s8819_s3 + $0x220] sm:$0xff] }
0x104a   :  { %7204 = vmatprep.subr.mxu1 %v6450_v14 }
0x104b   :  { %7205 = vmatpush3.msra.mxu1 %v6450_v14  ;;  %v6492_v14 = vld [vmem:[%s8819_s3 + $0x2c0] sm:$0xff] }
0x104c   :  { %7209 = vmatprep.subr.mxu1 %v6461_v15 }
0x1104   :  { %v2945_v42 = vpop.f32.mrf.mxu1 }
0x1105   :  { %v2946_v43 = vadd.f32 %v2945_v42, %v2866_v26  ;;  %v6469_v42 = vld [vmem:[%s8819_s3 + $0x338] sm:$0xff] }
0x1106   :  { %v2947_v44 = vpop.f32.mrf.mxu1 }
0x1107   :  { %v2948_v45 = vadd.f32 %v2947_v44, %v2870_v41  ;;  %v2956_v48 = vmax.f32 %v2946_v43, 0.0  ;;  %v6468_v43 = vld [vmem:[%s8819_s3 + $0x330] sm:$0xff]  ;;  %v6467_v44 = vld [vmem:[%s8819_s3 + $0x328] sm:$0xff] }
0x1108   :  { %v2951_v46 = vpop.f32.mrf.mxu1 }
0x1109   :  { %v2957_v47 = vmax.f32 %v2948_v45, 0.0  ;;  %v2952_v21 = vadd.f32 %v2951_v46, %v2866_v26  ;;  %v6459_v26 = vld [vmem:[%s8819_s3 + $0x288] sm:$0xff]  ;;  %v6466_v45 = vld [vmem:[%s8819_s3 + $0x320] sm:$0xff] }
0x110a   :  { %v2953_v34 = vpop.f32.mrf.mxu1 }
0x110b   :  { %v2954_v24 = vadd.f32 %v2953_v34, %v2870_v41  ;;  %3060 = vmatprep.mubr.f32.mxu0 %v2957_v47  ;;  %v2958_v49 = vmax.f32 %v2952_v21, 0.0  ;;  %v6458_v41 = vld [vmem:[%s8819_s3 + $0x280] sm:$0xff] }
0x110c   :  { %3061 = vmatmul.mubr.f32.vlgmr.msra.gmra.mxu0 %v2956_v48  ;;  %v6463_v21 = vld [vmem:[%s8819_s3 + $0x2a0] ss:$0 sm:$0xff] }
0x110d   :  { %v2959_v35 = vmax.f32 %v2954_v24, 0.0 }
0x110f   :  { %3065 = vmatprep.mubr.f32.mxu0 %v2959_v35  ;;  %v6455_v35 = vld [vmem:[%s8819_s3 + $0x200] ss:$0 sm:$0xff] }
0x1110   :  { %3066 = vmatmul.mubr.f32.gmra.mxu0 %v2958_v49 }
0x1111   :  { %7243 = vmatprep.mubr.msk.f32.mxu0 %vm7570_vm2, %v7569_v1 }
0x11cc   :  { %v6787_v50 = vpop.f32.mrf.mxu0 }
0x11ce   :  { %v6788_v52 = vpop.f32.mrf.mxu0 }
0x11cf   :  { %v6789_v53 = vadd.f32 %v6788_v52, %v6787_v50  ;;  %v6471_v52 = vld [vmem:[%s8819_s3 + $0x340] ss:$0 sm:$0xff] }
0x11d0   :  { %v6790_v54 = vpop.f32.mrf.mxu0 }
0x11d1   :  { %v3063_v55 = vadd.f32 %v6789_v53, %v6441_v51 }
0x11d2   :  { %v6791_v56 = vpop.f32.mrf.mxu0 }
0x11d3   :  { %v6792_v57 = vadd.f32 %v6791_v56, %v6790_v54  ;;  %v3071_v58 = vadd.f32 %v3063_v55, %v2850_v23 }
0x11d5   :  { %v3068_v59 = vadd.f32 %v6792_v57, %v6441_v51  ;;  %v3073_v60 = vsel %vm121_vm3, %v3071_v58, 0.0 }
0x11d6   :  { %3074 = vadd.xlane.f32.xlu0 %v3073_v60 }
0x11d7   :  { %v3072_v61 = vadd.f32 %v3068_v59, %v2851_v28  ;;  %v6442_v28 = vld [vmem:[%s8823_s7 + $0x4] ss:$0 sm:$0xff] }
0x11d9   :  { %v3076_v62 = vsel %vm121_vm3, %v3072_v61, 0.0 }
0x11da   :  { %3077 = vadd.xlane.f32.xlu1 %v3076_v62 }
0x125f   :  { %v3075_v0 = vpop.xlane.xlu0 %3074 }
0x1260   :  { %v3079_v2 = vmul.f32 0.03125, %v3075_v0 }
0x1262   :  { %v3081_v3 = vsub.f32 %v3071_v58, %v3079_v2 }
0x1263   :  { %v3078_v4 = vpop.xlane.xlu1 %3077 }
0x1264   :  { %v3080_v5 = vmul.f32 0.03125, %v3078_v4  ;;  %v3083_v6 = vmul.f32 %v3081_v3, %v3081_v3 }
0x1266   :  { %v3082_v7 = vsub.f32 %v3072_v61, %v3080_v5  ;;  %v3085_v8 = vsel %vm121_vm3, %v3083_v6, 0.0 }
0x1267   :  { %3086 = vadd.xlane.f32.xlu0 %v3085_v8 }
0x1268   :  { %v3084_v9 = vmul.f32 %v3082_v7, %v3082_v7 }
0x126a   :  { %v3088_v10 = vsel %vm121_vm3, %v3084_v9, 0.0 }
0x126b   :  { %3089 = vadd.xlane.f32.xlu1 %v3088_v10 }
0x12f0   :  { %v3087_v16 = vpop.xlane.xlu0 %3086 }
0x12f1   :  { %v3091_v17 = vmul.f32 0.03125, %v3087_v16 }
0x12f3   :  { %v3093_v19 = vadd.f32 1e-05, %v3091_v17 }
0x12f4   :  { %v3090_v20 = vpop.xlane.xlu1 %3089 }
0x12f5   :  { %7501 = vrsqrt.f32 %v3093_v19  ;;  %v3092_v22 = vmul.f32 0.03125, %v3090_v20  ;;  %v6483_v20 = vld [vmem:[%s8819_s3 + $0x218] sm:$0xff] }
0x12f7   :  { %v3094_v23 = vadd.f32 1e-05, %v3092_v22 }
0x12f9   :  { %7503 = vrsqrt.f32 %v3094_v23  ;;  %v6482_v23 = vld [vmem:[%s8819_s3 + $0x210] sm:$0xff] }
0x1302   :  { %v7502_v25 = vpop.eup %7501 }
0x1303   :  { %v3097_v29 = vmul.f32 %v7502_v25, %v3081_v3 }
0x1305   :  { %v3103_v31 = vmul.f32 %v6442_v28, %v3097_v29  ;;  %v6491_v29 = vld [vmem:[%s8819_s3 + $0x2b8] sm:$0xff] }
0x1306   :  { %v7504_v32 = vpop.eup %7503 }
0x1307   :  { %v8222_v33 = vadd.f32 %v6443_v30, %v3103_v31  ;;  %v3098_v36 = vmul.f32 %v7504_v32, %v3082_v7  ;;  %v6500_v31 = vld [vmem:[%s8819_s3 + $0x360] sm:$0xff]  ;;  %v6489_v32 = vld [vmem:[%s8819_s3 + $0x2a8] sm:$0xff] }
0x1309   :  { %v3104_v37 = vmul.f32 %v6442_v28, %v3098_v36  ;;  %7206 = vmatprep.mubr.msk.f32.mxu1 %vm121_vm3, %v8222_v33  ;;  %v6481_v28 = vld [vmem:[%s8819_s3 + $0x208] sm:$0xff]  ;;  %v6499_v36 = vld [vmem:[%s8819_s3 + $0x358] sm:$0xff] }
0x130b   :  { %v8226_v38 = vadd.f32 %v6443_v30, %v3104_v37  ;;  %v6490_v30 = vld [vmem:[%s8819_s3 + $0x2b0] sm:$0xff] }
0x130c   :  { %v6498_v37 = vld [vmem:[%s8819_s3 + $0x350] sm:$0xff] }
0x130d   :  { %7207 = vmatmul.mubr.msk.f32.vlgmr.msra.gmra.mxu1 %vm121_vm3, %v8226_v38 }
0x130e   :  { %7210 = vmatpush3.msra.mxu1 %v6461_v15  ;;  %7217 = vmatprep.mubr.msk.f32.mxu1 %vm121_vm3, %v8222_v33 }
0x130f   :  { %7211 = vmatprep.subr.mxu1 %v6460_v40 }
0x1310   :  { %7212 = vmatpush3.msra.mxu1 %v6460_v40  ;;  %v6497_v40 = vld [vmem:[%s8819_s3 + $0x348] sm:$0xff] }
0x1311   :  { %7213 = vmatprep.subr.mxu1 %v6459_v26 }
0x1312   :  { %7214 = vmatpush3.msra.mxu1 %v6459_v26 }
0x1313   :  { %7215 = vmatprep.subr.mxu1 %v6458_v41 }
0x1314   :  { %7216 = vmatpush3.msra.mxu1 %v6458_v41 }
0x1315   :  { %7218 = vmatmul.mubr.msk.f32.vlgmr.msra.gmra.mxu1 %vm121_vm3, %v8226_v38  ;;  %7220 = vmatprep.subr.mxu1 %v6469_v42 }
0x1316   :  { %7221 = vmatpush3.msra.mxu1 %v6469_v42  ;;  %7228 = vmatprep.mubr.msk.f32.mxu1 %vm121_vm3, %v8222_v33 }
0x1317   :  { %7222 = vmatprep.subr.mxu1 %v6468_v43 }
0x1318   :  { %7223 = vmatpush3.msra.mxu1 %v6468_v43 }
0x1319   :  { %7224 = vmatprep.subr.mxu1 %v6467_v44 }
0x131a   :  { %7225 = vmatpush3.msra.mxu1 %v6467_v44 }
0x131b   :  { %7226 = vmatprep.subr.mxu1 %v6466_v45 }
0x131c   :  { %7227 = vmatpush3.msra.mxu1 %v6466_v45 }
0x131d   :  { %7229 = vmatmul.mubr.msk.f32.vlgmr.msra.gmra.mxu1 %vm121_vm3, %v8226_v38  ;;  %7231 = vmatprep.subr.mxu1 %v7569_v1 }
0x131e   :  { %7233 = vmatprep.mubr.msk.f32.mxu1 %vm7570_vm2, %v7569_v1 }
0x13cd   :  { %v7208_v46 = vpop.f32.mrf.mxu1 }
0x13ce   :  { %v3206_v53 = vadd.f32 %v7208_v46, %v6455_v35  ;;  %v6494_v46 = vld [vmem:[%s8819_s3 + $0x2c8] ss:$0 sm:$0xff] }
0x13cf   :  { %v3200_v47 = vpop.f32.mrf.mxu1 }
0x13d0   :  { %v3201_v49 = vadd.f32 %v6455_v35, %v3200_v47 }
0x13d5   :  { %v7219_v48 = vpop.f32.mrf.mxu1 }
0x13d6   :  { %v3291_v50 = vadd.f32 %v7219_v48, %v6463_v21 }
0x13d7   :  { %v3285_v34 = vpop.f32.mrf.mxu1 }
0x13d8   :  { %v3286_v24 = vadd.f32 %v6463_v21, %v3285_v34  ;;  %v6486_v34 = vld [vmem:[%s8819_s3 + $0x228] ss:$0 sm:$0xff] }
0x13da   :  { %7232 = vmatpush3.xpose.msk.msra.mxu1 %vm424_vm5, %v3286_v24 }
0x13db   :  { %7236 = vmatprep.subr.mxu1 %v7569_v1 }
0x13dd   :  { %v7230_v51 = vpop.f32.mrf.mxu1  ;;  %7234 = vmatmul.mubr.msk.f32.vlgmr.msra.gmra.mxu1 %vm424_vm5, %v3201_v49 }
0x13de   :  { %7237 = vmatpush3.xpose.msk.msra.mxu1 %vm424_vm5, %v3291_v50  ;;  %7238 = vmatprep.mubr.msk.f32.mxu1 %vm7570_vm2, %v7569_v1  ;;  %v3376_v55 = vadd.f32 %v7230_v51, %v6471_v52  ;;  %v6502_v50 = vld [vmem:[%s8819_s3 + $0x368] ss:$0 sm:$0xff] }
0x13df   :  { %v3370_v54 = vpop.f32.mrf.mxu1  ;;  %7246 = vmatprep.subr.mxu1 %v7569_v1 }
0x13e0   :  { %v3371_v56 = vadd.f32 %v6471_v52, %v3370_v54 }
0x13e1   :  { %7239 = vmatmul.mubr.msk.f32.vlgmr.msra.gmra.mxu1 %vm424_vm5, %v3206_v53 }
0x13e2   :  { %7242 = vmatpush3.msra.mxu0 %v3371_v56  ;;  %7247 = vmatpush3.msra.mxu1 %v3376_v55 }
0x13e3   :  { %7248 = vmatprep.mubr.msk.f32.mxu1 %vm7570_vm2, %v7569_v1  ;;  %7251 = vmatprep.subr.mxu0 %v6484_v13 }
0x13e4   :  { %7262 = vmatprep.subr.mxu1 %v6492_v14 }
0x149d   :  { %v3451_v57 = vpop.f32.mrf.mxu1 }
0x149e   :  { %v3452_v58 = vadd.f32 %v3451_v57, %v7775_v63 }
0x149f   :  { %v7235_v59 = vpop.f32.mrf.mxu1 }
0x14a0   :  { %v3531_v60 = vsel %vm424_vm5, %v3452_v58, -inf }
0x14a1   :  { %3532 = vmax.xlane.f32.xlu1 %v3531_v60  ;;  %v3527_v61 = vpop.f32.mrf.mxu1 }
0x14a2   :  { %v3528_v62 = vadd.f32 %v3527_v61, %v7775_v63 }
0x14a3   :  { %v7240_v0 = vpop.f32.mrf.mxu1 }
0x14a4   :  { %v3534_v2 = vsel %vm424_vm5, %v3528_v62, -inf }
0x14a5   :  { %3535 = vmax.xlane.f32.xlu0 %v3534_v2 }
0x152a   :  { %v3533_v3 = vpop.xlane.xlu1 %3532 }
0x152b   :  { %v3537_v4 = vsub.f32 %v3452_v58, %v3533_v3 }
0x152d   :  { %v3539_v5 = vmul.f32 1.442695, %v3537_v4 }
0x152e   :  { %v3536_v6 = vpop.xlane.xlu0 %3535 }
0x152f   :  { %7505 = vpow2.f32 %v3539_v5  ;;  %v3538_v7 = vsub.f32 %v3528_v62, %v3536_v6 }
0x1531   :  { %v3541_v8 = vmul.f32 1.442695, %v3538_v7 }
0x1533   :  { %7507 = vpow2.f32 %v3541_v8 }
0x153c   :  { %v7506_v9 = vpop.eup %7505 }
0x153d   :  { %v3543_v10 = vsel %vm424_vm5, %v7506_v9, 0.0 }
0x153e   :  { %3544 = vadd.xlane.f32.xlu1 %v3543_v10 }
0x1540   :  { %v7508_v11 = vpop.eup %7507 }
0x1541   :  { %v3546_v12 = vsel %vm424_vm5, %v7508_v11, 0.0 }
0x1542   :  { %3547 = vadd.xlane.f32.xlu0 %v3546_v12 }
0x15c7   :  { %v3545_v15 = vpop.xlane.xlu1 %3544 }
0x15c8   :  { %7509 = vrcp.f32 %v3545_v15 }
0x15cb   :  { %v3548_v16 = vpop.xlane.xlu0 %3547 }
0x15cc   :  { %7511 = vrcp.f32 %v3548_v16 }
0x15d5   :  { %v7510_v17 = vpop.eup %7509 }
0x15d6   :  { %v3551_v19 = vmul.f32 %v7510_v17, %v7506_v9 }
0x15d8   :  { %7244 = vmatmul.mubr.msk.f32.vlgmr.msra.gmra.mxu0 %vm424_vm5, %v3551_v19  ;;  %v6527_v19 = vld [vmem:[%s8819_s3 + $0x2e8] sm:$0xff] }
0x15d9   :  { %v7512_v22 = vpop.eup %7511  ;;  %7252 = vmatpush3.msra.mxu0 %v6484_v13  ;;  %7259 = vmatprep.mubr.msk.f32.mxu0 %vm121_vm3, %v8222_v33 }
0x15da   :  { %7253 = vmatprep.subr.mxu0 %v6483_v20  ;;  %v3552_v25 = vmul.f32 %v7512_v22, %v7508_v11  ;;  %v6480_v11 = vld [vmem:[%s8820_s4 + $0x20] sm:$0xff]  ;;  %v6525_v22 = vld [vmem:[%s8819_s3 + $0x2d8] sm:$0xff] }
0x15db   :  { %7254 = vmatpush3.msra.mxu0 %v6483_v20  ;;  %v6526_v20 = vld [vmem:[%s8819_s3 + $0x2e0] sm:$0xff] }
0x15dc   :  { %7255 = vmatprep.subr.mxu0 %v6482_v23  ;;  %7249 = vmatmul.mubr.msk.f32.vlgmr.msra.gmra.mxu1 %vm424_vm5, %v3552_v25  ;;  %v6511_v25 = vld [vmem:[%s8820_s4 + $0x28] sm:$0xff] }
0x15dd   :  { %7256 = vmatpush3.msra.mxu0 %v6482_v23  ;;  %7263 = vmatpush3.msra.mxu1 %v6492_v14  ;;  %v6524_v23 = vld [vmem:[%s8819_s3 + $0x2d0] sm:$0xff] }
0x15de   :  { %7257 = vmatprep.subr.mxu0 %v6481_v28  ;;  %7264 = vmatprep.subr.mxu1 %v6491_v29 }
0x15df   :  { %7270 = vmatprep.mubr.msk.f32.mxu1 %vm121_vm3, %v8222_v33  ;;  %7258 = vmatpush3.msra.mxu0 %v6481_v28  ;;  %v6519_v28 = vld [vmem:[%s8819_s3 + $0x248] sm:$0xff] }
0x15e0   :  { %7265 = vmatpush3.msra.mxu1 %v6491_v29  ;;  %7260 = vmatmul.mubr.msk.f32.vlgmr.msra.gmra.mxu0 %vm121_vm3, %v8226_v38 }
0x15e1   :  { %7266 = vmatprep.subr.mxu1 %v6490_v30  ;;  %7273 = vmatprep.subr.mxu0 %v6500_v31 }
0x15e2   :  { %7267 = vmatpush3.msra.mxu1 %v6490_v30  ;;  %7274 = vmatpush3.msra.mxu0 %v6500_v31 }
0x15e3   :  { %7281 = vmatprep.mubr.msk.f32.mxu0 %vm121_vm3, %v8222_v33  ;;  %7268 = vmatprep.subr.mxu1 %v6489_v32 }
0x15e4   :  { %7275 = vmatprep.subr.mxu0 %v6499_v36  ;;  %7269 = vmatpush3.msra.mxu1 %v6489_v32  ;;  %v6518_v32 = vld [vmem:[%s8819_s3 + $0x240] sm:$0xff] }
0x15e5   :  { %7276 = vmatpush3.msra.mxu0 %v6499_v36  ;;  %7271 = vmatmul.mubr.msk.f32.vlgmr.msra.gmra.mxu1 %vm121_vm3, %v8226_v38 }
0x15e6   :  { %7277 = vmatprep.subr.mxu0 %v6498_v37  ;;  %7284 = vmatprep.subr.mxu1 %v7569_v1 }
0x15e7   :  { %7278 = vmatpush3.msra.mxu0 %v6498_v37  ;;  %7286 = vmatprep.mubr.msk.f32.mxu1 %vm7570_vm2, %v7569_v1  ;;  %v6517_v37 = vld [vmem:[%s8819_s3 + $0x238] sm:$0xff] }
0x15e8   :  { %7279 = vmatprep.subr.mxu0 %v6497_v40 }
0x15e9   :  { %7280 = vmatpush3.msra.mxu0 %v6497_v40  ;;  %v6516_v40 = vld [vmem:[%s8819_s3 + $0x230] sm:$0xff] }
0x15ea   :  { %7282 = vmatmul.mubr.msk.f32.vlgmr.msra.gmra.mxu0 %vm121_vm3, %v8226_v38  ;;  %7294 = vmatprep.subr.mxu0 %v7569_v1 }
0x15eb   :  { %7296 = vmatprep.mubr.msk.f32.mxu0 %vm7570_vm2, %v7569_v1 }
0x1698   :  { %v8343_v26 = vpop.f32.mrf.mxu0 }
0x169a   :  { %v7245_v41 = vpop.f32.mrf.mxu0 }
0x169b   :  { %v6535_v41 = vld [vmem:[%s8819_s3 + $0x388] sm:$0xff] }
0x169c   :  { %v8345_v42 = vpop.f32.mrf.mxu1 }
0x169e   :  { %v7250_v43 = vpop.f32.mrf.mxu1 }
0x16a0   :  { %v7261_v44 = vpop.f32.mrf.mxu0 }
0x16a1   :  { %v3783_v53 = vadd.f32 %v7261_v44, %v6486_v34  ;;  %v6529_v44 = vld [vmem:[%s8819_s3 + $0x2f0] ss:$0 sm:$0xff] }
0x16a2   :  { %v3777_v48 = vpop.f32.mrf.mxu0 }
0x16a3   :  { %v3778_v35 = vadd.f32 %v6486_v34, %v3777_v48 }
0x16a5   :  { %v7272_v45 = vpop.f32.mrf.mxu1 }
0x16a6   :  { %v3868_v49 = vadd.f32 %v7272_v45, %v6494_v46  ;;  %v6533_v45 = vld [vmem:[%s8819_s3 + $0x378] sm:$0xff] }
0x16a7   :  { %v3862_v47 = vpop.f32.mrf.mxu1 }
0x16a8   :  { %v3863_v21 = vadd.f32 %v6494_v46, %v3862_v47  ;;  %v6532_v47 = vld [vmem:[%s8819_s3 + $0x370] sm:$0xff] }
0x16aa   :  { %v7283_v24 = vpop.f32.mrf.mxu0  ;;  %7285 = vmatpush3.xpose.msk.msra.mxu1 %vm424_vm5, %v3863_v21 }
0x16ab   :  { %7289 = vmatprep.subr.mxu1 %v7569_v1  ;;  %v3953_v54 = vadd.f32 %v7283_v24, %v6502_v50 }
0x16ac   :  { %v3947_v51 = vpop.f32.mrf.mxu0 }
0x16ad   :  { %v3948_v52 = vadd.f32 %v6502_v50, %v3947_v51  ;;  %7287 = vmatmul.mubr.msk.f32.vlgmr.msra.gmra.mxu1 %vm424_vm5, %v3778_v35  ;;  %v6521_v50 = vld [vmem:[%s8819_s3 + $0x250] ss:$0 sm:$0xff] }
0x16ae   :  { %7290 = vmatpush3.xpose.msk.msra.mxu1 %vm424_vm5, %v3868_v49  ;;  %7291 = vmatprep.mubr.msk.f32.mxu1 %vm7570_vm2, %v7569_v1 }
0x16af   :  { %7295 = vmatpush3.msra.mxu0 %v3948_v52  ;;  %7299 = vmatprep.subr.mxu1 %v7569_v1 }
0x16b0   :  { %7304 = vmatprep.subr.mxu0 %v6511_v25 }
0x16b1   :  { %7292 = vmatmul.mubr.msk.f32.vlgmr.msra.gmra.mxu1 %vm424_vm5, %v3783_v53  ;;  %v6537_v53 = vld [vmem:[%s8819_s3 + $0x390] ss:$0 sm:$0xff] }
0x16b2   :  { %7300 = vmatpush3.msra.mxu1 %v3953_v54  ;;  %7301 = vmatprep.mubr.msk.f32.mxu1 %vm7570_vm2, %v7569_v1 }
0x16b3   :  { %7309 = vmatprep.subr.mxu1 %v6480_v11 }
0x176d   :  { %v4028_v55 = vpop.f32.mrf.mxu1 }
0x176e   :  { %v4029_v56 = vadd.f32 %v4028_v55, %v7775_v63 }
0x176f   :  { %v7288_v57 = vpop.f32.mrf.mxu1 }
0x1770   :  { %v4108_v58 = vsel %vm424_vm5, %v4029_v56, -inf }
0x1771   :  { %4109 = vmax.xlane.f32.xlu0 %v4108_v58  ;;  %v4104_v59 = vpop.f32.mrf.mxu1 }
0x1772   :  { %v4105_v60 = vadd.f32 %v4104_v59, %v7775_v63 }
0x1773   :  { %v7293_v61 = vpop.f32.mrf.mxu1 }
0x1774   :  { %v4111_v62 = vsel %vm424_vm5, %v4105_v60, -inf }
0x1775   :  { %4112 = vmax.xlane.f32.xlu1 %v4111_v62 }
0x17fa   :  { %v4110_v0 = vpop.xlane.xlu0 %4109 }
0x17fb   :  { %v4114_v2 = vsub.f32 %v4029_v56, %v4110_v0 }
0x17fd   :  { %v4116_v3 = vmul.f32 1.442695, %v4114_v2 }
0x17fe   :  { %v4113_v4 = vpop.xlane.xlu1 %4112 }
0x17ff   :  { %7513 = vpow2.f32 %v4116_v3  ;;  %v4115_v5 = vsub.f32 %v4105_v60, %v4113_v4 }
0x1801   :  { %v4118_v6 = vmul.f32 1.442695, %v4115_v5 }
0x1803   :  { %7515 = vpow2.f32 %v4118_v6 }
0x180c   :  { %v7514_v7 = vpop.eup %7513 }
0x180d   :  { %v4120_v8 = vsel %vm424_vm5, %v7514_v7, 0.0 }
0x180e   :  { %4121 = vadd.xlane.f32.xlu0 %v4120_v8 }
0x1810   :  { %v7516_v9 = vpop.eup %7515 }
0x1811   :  { %v4123_v10 = vsel %vm424_vm5, %v7516_v9, 0.0 }
0x1812   :  { %4124 = vadd.xlane.f32.xlu1 %v4123_v10 }
0x1897   :  { %v4122_v12 = vpop.xlane.xlu0 %4121 }
0x1898   :  { %7517 = vrcp.f32 %v4122_v12 }
0x189b   :  { %v4125_v13 = vpop.xlane.xlu1 %4124 }
0x189c   :  { %7519 = vrcp.f32 %v4125_v13 }
0x18a5   :  { %v7518_v14 = vpop.eup %7517 }
0x18a6   :  { %v4128_v15 = vmul.f32 %v7518_v14, %v7514_v7 }
0x18a8   :  { %7297 = vmatmul.mubr.msk.f32.vlgmr.msra.gmra.mxu0 %vm424_vm5, %v4128_v15  ;;  %v6552_v15 = vld [vmem:[%s8819_s3 + $0x270] sm:$0xff] }
0x18a9   :  { %v7520_v16 = vpop.eup %7519  ;;  %7305 = vmatpush3.msra.mxu0 %v6511_v25  ;;  %v6551_v25 = vld [vmem:[%s8819_s3 + $0x268] sm:$0xff] }
0x18aa   :  { %v4129_v17 = vmul.f32 %v7520_v16, %v7516_v9  ;;  %7314 = vmatprep.subr.mxu0 %v6519_v28 }
0x18ac   :  { %7302 = vmatmul.mubr.msk.f32.vlgmr.msra.gmra.mxu1 %vm424_vm5, %v4129_v17 }
0x18ad   :  { %7311 = vmatprep.mubr.msk.f32.mxu1 %vm424_vm5, %v8343_v26  ;;  %7310 = vmatpush3.msra.mxu1 %v6480_v11 }
0x18ae   :  { %7325 = vmatprep.subr.mxu1 %v6527_v19 }
0x18b0   :  { %7312 = vmatmul.mubr.msk.f32.vlgmr.msra.gmra.mxu1 %vm424_vm5, %v8345_v42  ;;  %v6534_v42 = vld [vmem:[%s8819_s3 + $0x380] sm:$0xff] }
0x18b1   :  { %7326 = vmatpush3.msra.mxu1 %v6527_v19  ;;  %7333 = vmatprep.mubr.msk.f32.mxu1 %vm121_vm3, %v8222_v33 }
0x18b2   :  { %7327 = vmatprep.subr.mxu1 %v6526_v20 }
0x18b3   :  { %7328 = vmatpush3.msra.mxu1 %v6526_v20 }
0x18b4   :  { %7329 = vmatprep.subr.mxu1 %v6525_v22 }
0x18b5   :  { %7330 = vmatpush3.msra.mxu1 %v6525_v22 }
0x18b6   :  { %7331 = vmatprep.subr.mxu1 %v6524_v23 }
0x18b7   :  { %7332 = vmatpush3.msra.mxu1 %v6524_v23 }
0x18b8   :  { %7334 = vmatmul.mubr.msk.f32.vlgmr.msra.gmra.mxu1 %vm121_vm3, %v8226_v38  ;;  %7347 = vmatprep.subr.mxu1 %v7569_v1 }
0x18b9   :  { %7349 = vmatprep.mubr.msk.f32.mxu1 %vm7570_vm2, %v7569_v1 }
0x1968   :  { %v4199_v29 = vpop.f32.mrf.mxu0 }
0x1969   :  { %7306 = vmatprep.mubr.msk.f32.mxu0 %vm424_vm5, %v4199_v29  ;;  %v6549_v29 = vld [vmem:[%s8819_s3 + $0x258] sm:$0xff] }
0x196a   :  { %v7298_v30 = vpop.f32.mrf.mxu0 }
0x196b   :  { %v6568_v30 = vld [vmem:[%s8819_s3 + $0x3b0] sm:$0xff] }
0x196c   :  { %v4272_v31 = vpop.f32.mrf.mxu1 }
0x196d   :  { %7307 = vmatmul.mubr.msk.f32.vlgmr.msra.gmra.mxu0 %vm424_vm5, %v4272_v31  ;;  %v6567_v31 = vld [vmem:[%s8819_s3 + $0x3a8] sm:$0xff] }
0x196e   :  { %7315 = vmatpush3.msra.mxu0 %v6519_v28  ;;  %v7303_v36 = vpop.f32.mrf.mxu1  ;;  %7322 = vmatprep.mubr.msk.f32.mxu0 %vm121_vm3, %v8222_v33  ;;  %v6550_v28 = vld [vmem:[%s8819_s3 + $0x260] sm:$0xff] }
0x196f   :  { %7316 = vmatprep.subr.mxu0 %v6518_v32  ;;  %v6565_v36 = vld [vmem:[%s8819_s3 + $0x398] sm:$0xff] }
0x1970   :  { %7317 = vmatpush3.msra.mxu0 %v6518_v32  ;;  %v8419_v26 = vpop.f32.mrf.mxu1  ;;  %v6566_v32 = vld [vmem:[%s8819_s3 + $0x3a0] sm:$0xff] }
0x1971   :  { %7318 = vmatprep.subr.mxu0 %v6517_v37 }
0x1972   :  { %7319 = vmatpush3.msra.mxu0 %v6517_v37  ;;  %v8429_v43 = vpop.f32.mrf.mxu1  ;;  %v6546_v37 = vld [vmem:[%s8820_s4 + $0x30] sm:$0xff] }
0x1973   :  { %7320 = vmatprep.subr.mxu0 %v6516_v40 }
0x1974   :  { %7321 = vmatpush3.msra.mxu0 %v6516_v40  ;;  %v6560_v40 = vld [vmem:[%s8819_s3 + $0x310] sm:$0xff] }
0x1975   :  { %7323 = vmatmul.mubr.msk.f32.vlgmr.msra.gmra.mxu0 %vm121_vm3, %v8226_v38  ;;  %7336 = vmatprep.subr.mxu0 %v6535_v41 }
0x1976   :  { %7337 = vmatpush3.msra.mxu0 %v6535_v41  ;;  %7344 = vmatprep.mubr.msk.f32.mxu0 %vm121_vm3, %v8222_v33 }
0x1977   :  { %7338 = vmatprep.subr.mxu0 %v6534_v42 }
0x1978   :  { %v7335_v46 = vpop.f32.mrf.mxu1  ;;  %7339 = vmatpush3.msra.mxu0 %v6534_v42 }
0x1979   :  { %v4607_v48 = vadd.f32 %v7335_v46, %v6529_v44  ;;  %7340 = vmatprep.subr.mxu0 %v6533_v45 }
0x197a   :  { %v4601_v21 = vpop.f32.mrf.mxu1  ;;  %7341 = vmatpush3.msra.mxu0 %v6533_v45  ;;  %v6559_v45 = vld [vmem:[%s8819_s3 + $0x308] sm:$0xff] }
0x197b   :  { %v4602_v34 = vadd.f32 %v6529_v44, %v4601_v21  ;;  %7342 = vmatprep.subr.mxu0 %v6532_v47 }
0x197c   :  { %7343 = vmatpush3.msra.mxu0 %v6532_v47  ;;  %v6558_v47 = vld [vmem:[%s8819_s3 + $0x300] sm:$0xff] }
0x197d   :  { %7345 = vmatmul.mubr.msk.f32.vlgmr.msra.gmra.mxu0 %vm121_vm3, %v8226_v38  ;;  %7348 = vmatpush3.xpose.msk.msra.mxu1 %vm424_vm5, %v4602_v34 }
0x197e   :  { %7352 = vmatprep.subr.mxu1 %v7569_v1  ;;  %7357 = vmatprep.subr.mxu0 %v7569_v1 }
0x197f   :  { %7359 = vmatprep.mubr.msk.f32.mxu0 %vm7570_vm2, %v7569_v1 }
0x1a2d   :  { %v8449_v24 = vpop.f32.mrf.mxu0 }
0x1a2f   :  { %v8451_v35 = vpop.f32.mrf.mxu0 }
0x1a35   :  { %v7324_v49 = vpop.f32.mrf.mxu0 }
0x1a36   :  { %v4522_v54 = vadd.f32 %v7324_v49, %v6521_v50  ;;  %v6570_v49 = vld [vmem:[%s8819_s3 + $0x3b8] ss:$0 sm:$0xff] }
0x1a37   :  { %v4516_v51 = vpop.f32.mrf.mxu0 }
0x1a38   :  { %v4517_v52 = vadd.f32 %v6521_v50, %v4516_v51 }
0x1a3a   :  { %7350 = vmatmul.mubr.msk.f32.vlgmr.msra.gmra.mxu1 %vm424_vm5, %v4517_v52 }
0x1a3b   :  { %7353 = vmatpush3.xpose.msk.msra.mxu1 %vm424_vm5, %v4607_v48  ;;  %7354 = vmatprep.mubr.msk.f32.mxu1 %vm7570_vm2, %v7569_v1  ;;  %v6557_v48 = vld [vmem:[%s8819_s3 + $0x2f8] sm:$0xff] }
0x1a3c   :  { %7362 = vmatprep.subr.mxu1 %v7569_v1 }
0x1a3d   :  { %v7346_v55 = vpop.f32.mrf.mxu0 }
0x1a3e   :  { %v4692_v56 = vadd.f32 %v7346_v55, %v6537_v53  ;;  %7355 = vmatmul.mubr.msk.f32.vlgmr.msra.gmra.mxu1 %vm424_vm5, %v4522_v54  ;;  %v4437_v54 = vadd.f32 %v8419_v26, %v8449_v24  ;;  %v6554_v26 = vld [vmem:[%s8819_s3 + $0x278] ss:$0 sm:$0xff] }
0x1a3f   :  { %v4686_v57 = vpop.f32.mrf.mxu0  ;;  %7364 = vmatprep.mubr.msk.f32.mxu1 %vm7570_vm2, %v7569_v1 }
0x1a40   :  { %v4687_v58 = vadd.f32 %v6537_v53, %v4686_v57  ;;  %7363 = vmatpush3.msra.mxu1 %v4692_v56  ;;  %v4432_v56 = vadd.f32 %v8429_v43, %v8451_v35 }
0x1a41   :  { %7372 = vmatprep.subr.mxu1 %v6552_v15 }
0x1a42   :  { %7358 = vmatpush3.msra.mxu0 %v4687_v58 }
0x1a43   :  { %7367 = vmatprep.subr.mxu0 %v6546_v37 }
0x1afa   :  { %v4767_v59 = vpop.f32.mrf.mxu1 }
0x1afb   :  { %v4768_v60 = vadd.f32 %v4767_v59, %v7775_v63 }
0x1afc   :  { %v7351_v61 = vpop.f32.mrf.mxu1 }
0x1afd   :  { %v4847_v62 = vsel %vm424_vm5, %v4768_v60, -inf  ;;  %v6562_v61 = vld [vmem:[%s8819_s3 + $0x318] ss:$0 sm:$0xff] }
0x1afe   :  { %4848 = vmax.xlane.f32.xlu0 %v4847_v62  ;;  %v4843_v0 = vpop.f32.mrf.mxu1 }
0x1aff   :  { %v4844_v2 = vadd.f32 %v4843_v0, %v7775_v63 }
0x1b00   :  { %v7356_v3 = vpop.f32.mrf.mxu1 }
0x1b01   :  { %v4850_v4 = vsel %vm424_vm5, %v4844_v2, -inf }
0x1b02   :  { %4851 = vmax.xlane.f32.xlu1 %v4850_v4 }
0x1b87   :  { %v4849_v5 = vpop.xlane.xlu0 %4848 }
0x1b88   :  { %v4853_v6 = vsub.f32 %v4768_v60, %v4849_v5 }
0x1b8a   :  { %v4855_v7 = vmul.f32 1.442695, %v4853_v6 }
0x1b8b   :  { %v4852_v8 = vpop.xlane.xlu1 %4851 }
0x1b8c   :  { %7521 = vpow2.f32 %v4855_v7  ;;  %v4854_v9 = vsub.f32 %v4844_v2, %v4852_v8 }
0x1b8e   :  { %v4857_v10 = vmul.f32 1.442695, %v4854_v9 }
0x1b90   :  { %7523 = vpow2.f32 %v4857_v10 }
0x1b99   :  { %v7522_v11 = vpop.eup %7521 }
0x1b9a   :  { %v4859_v12 = vsel %vm424_vm5, %v7522_v11, 0.0 }
0x1b9b   :  { %4860 = vadd.xlane.f32.xlu0 %v4859_v12 }
0x1b9d   :  { %v7524_v13 = vpop.eup %7523 }
0x1b9e   :  { %v4862_v14 = vsel %vm424_vm5, %v7524_v13, 0.0 }
0x1b9f   :  { %4863 = vadd.xlane.f32.xlu1 %v4862_v14 }
0x1c24   :  { %v4861_v16 = vpop.xlane.xlu0 %4860 }
0x1c25   :  { %7525 = vrcp.f32 %v4861_v16 }
0x1c28   :  { %v4864_v17 = vpop.xlane.xlu1 %4863 }
0x1c29   :  { %7527 = vrcp.f32 %v4864_v17 }
0x1c32   :  { %v7526_v19 = vpop.eup %7525 }
0x1c33   :  { %v4867_v20 = vmul.f32 %v7526_v19, %v7522_v11 }
0x1c35   :  { %7360 = vmatmul.mubr.msk.f32.vlgmr.msra.gmra.mxu0 %vm424_vm5, %v4867_v20 }
0x1c36   :  { %v7528_v22 = vpop.eup %7527  ;;  %7368 = vmatpush3.msra.mxu0 %v6546_v37 }
0x1c37   :  { %v4868_v23 = vmul.f32 %v7528_v22, %v7524_v13  ;;  %7383 = vmatprep.subr.mxu0 %v6560_v40 }
0x1c39   :  { %7365 = vmatmul.mubr.msk.f32.vlgmr.msra.gmra.mxu1 %vm424_vm5, %v4868_v23 }
0x1c3a   :  { %7373 = vmatpush3.msra.mxu1 %v6552_v15  ;;  %7380 = vmatprep.mubr.msk.f32.mxu1 %vm121_vm3, %v8222_v33 }
0x1c3b   :  { %7374 = vmatprep.subr.mxu1 %v6551_v25 }
0x1c3c   :  { %7375 = vmatpush3.msra.mxu1 %v6551_v25 }
0x1c3d   :  { %7376 = vmatprep.subr.mxu1 %v6550_v28 }
0x1c3e   :  { %7377 = vmatpush3.msra.mxu1 %v6550_v28 }
0x1c3f   :  { %7378 = vmatprep.subr.mxu1 %v6549_v29 }
0x1c40   :  { %7379 = vmatpush3.msra.mxu1 %v6549_v29 }
0x1c41   :  { %7381 = vmatmul.mubr.msk.f32.vlgmr.msra.gmra.mxu1 %vm121_vm3, %v8226_v38  ;;  %7394 = vmatprep.subr.mxu1 %v6568_v30 }
0x1c42   :  { %7395 = vmatpush3.msra.mxu1 %v6568_v30  ;;  %7402 = vmatprep.mubr.msk.f32.mxu1 %vm121_vm3, %v8222_v33  ;;  %v6579_v30 = vld [vmem:[%s8820_s4 + $0x38] sm:$0xff] }
0x1c43   :  { %7396 = vmatprep.subr.mxu1 %v6567_v31 }
0x1c44   :  { %7397 = vmatpush3.msra.mxu1 %v6567_v31 }
0x1c45   :  { %7398 = vmatprep.subr.mxu1 %v6566_v32 }
0x1c46   :  { %7399 = vmatpush3.msra.mxu1 %v6566_v32 }
0x1c47   :  { %7400 = vmatprep.subr.mxu1 %v6565_v36 }
0x1c48   :  { %7401 = vmatpush3.msra.mxu1 %v6565_v36 }
0x1c49   :  { %7403 = vmatmul.mubr.msk.f32.vlgmr.msra.gmra.mxu1 %vm121_vm3, %v8226_v38  ;;  %7415 = vmatprep.subr.mxu1 %v7569_v1 }
0x1c4a   :  { %7417 = vmatprep.mubr.msk.f32.mxu1 %vm7570_vm2, %v7569_v1 }
0x1cf5   :  { %v4938_v41 = vpop.f32.mrf.mxu0 }
0x1cf6   :  { %7369 = vmatprep.mubr.msk.f32.mxu0 %vm424_vm5, %v4938_v41 }
0x1cf7   :  { %v7361_v42 = vpop.f32.mrf.mxu0 }
0x1cf9   :  { %v5011_v44 = vpop.f32.mrf.mxu1 }
0x1cfa   :  { %7370 = vmatmul.mubr.msk.f32.vlgmr.msra.gmra.mxu0 %vm424_vm5, %v5011_v44 }
0x1cfb   :  { %7384 = vmatpush3.msra.mxu0 %v6560_v40  ;;  %v7366_v46 = vpop.f32.mrf.mxu1  ;;  %7391 = vmatprep.mubr.msk.f32.mxu0 %vm121_vm3, %v8222_v33  ;;  %v6582_v40 = vld [vmem:[%s8823_s7 + $0x8] ss:$0 sm:$0xff] }
0x1cfc   :  { %7385 = vmatprep.subr.mxu0 %v6559_v45 }
0x1cfd   :  { %7386 = vmatpush3.msra.mxu0 %v6559_v45 }
0x1cfe   :  { %7387 = vmatprep.subr.mxu0 %v6558_v47 }
0x1cff   :  { %7388 = vmatpush3.msra.mxu0 %v6558_v47 }
0x1d00   :  { %7389 = vmatprep.subr.mxu0 %v6557_v48 }
0x1d01   :  { %7390 = vmatpush3.msra.mxu0 %v6557_v48  ;;  %v7382_v21 = vpop.f32.mrf.mxu1 }
0x1d02   :  { %7392 = vmatmul.mubr.msk.f32.vlgmr.msra.gmra.mxu0 %vm121_vm3, %v8226_v38  ;;  %7405 = vmatprep.subr.mxu0 %v7569_v1  ;;  %v5182_v35 = vadd.f32 %v7382_v21, %v6554_v26 }
0x1d03   :  { %7407 = vmatprep.mubr.msk.f32.mxu0 %vm7570_vm2, %v7569_v1  ;;  %v5176_v34 = vpop.f32.mrf.mxu1 }
0x1d04   :  { %v5177_v24 = vadd.f32 %v6554_v26, %v5176_v34  ;;  %v6586_v26 = vld [vmem:[%s8821_s5 + $0x58] sm:$0xff] }
0x1d09   :  { %v7404_v50 = vpop.f32.mrf.mxu1 }
0x1d0a   :  { %v5352_v51 = vadd.f32 %v7404_v50, %v6570_v49 }
0x1d0b   :  { %v5346_v52 = vpop.f32.mrf.mxu1 }
0x1d0c   :  { %v5347_v53 = vadd.f32 %v6570_v49, %v5346_v52 }
0x1d0e   :  { %7416 = vmatpush3.msra.mxu1 %v5347_v53 }
0x1d0f   :  { %7425 = vmatprep.subr.mxu1 %v6579_v30 }
0x1dba   :  { %v7371_v55 = vpop.f32.mrf.mxu0 }
0x1dbb   :  { %v8541_v57 = vadd.f32 %v7371_v55, %v4437_v54 }
0x1dbc   :  { %v5089_v58 = vpop.f32.mrf.mxu0 }
0x1dbd   :  { %v8543_v59 = vadd.f32 %v5089_v58, %v4432_v56  ;;  %v6592_v58 = vld [vmem:[%s8821_s5 + $0x88] sm:$0xff] }
0x1dc2   :  { %v7393_v60 = vpop.f32.mrf.mxu0 }
0x1dc3   :  { %v5267_v43 = vadd.f32 %v7393_v60, %v6562_v61  ;;  %v6590_v60 = vld [vmem:[%s8821_s5 + $0x78] sm:$0xff] }
0x1dc4   :  { %v5261_v62 = vpop.f32.mrf.mxu0 }
0x1dc5   :  { %v5262_v0 = vadd.f32 %v6562_v61, %v5261_v62  ;;  %v6589_v61 = vld [vmem:[%s8821_s5 + $0x70] sm:$0xff]  ;;  %v6588_v62 = vld [vmem:[%s8821_s5 + $0x68] sm:$0xff] }
0x1dc7   :  { %7406 = vmatpush3.xpose.msk.msra.mxu0 %vm424_vm5, %v5262_v0  ;;  %v6587_v0 = vld [vmem:[%s8821_s5 + $0x60] sm:$0xff] }
0x1dc8   :  { %7410 = vmatprep.subr.mxu0 %v7569_v1 }
0x1dca   :  { %7408 = vmatmul.mubr.msk.f32.vlgmr.msra.gmra.mxu0 %vm424_vm5, %v5177_v24  ;;  %v6585_v24 = vld [vmem:[%s8821_s5 + $0x50] sm:$0xff] }
0x1dcb   :  { %7411 = vmatpush3.xpose.msk.msra.mxu0 %vm424_vm5, %v5267_v43  ;;  %7412 = vmatprep.mubr.msk.f32.mxu0 %vm7570_vm2, %v7569_v1  ;;  %v6627_v43 = vld [vmem:[%s8822_s6 + $0x1f8] sm:$0xff] }
0x1dcc   :  { %7420 = vmatprep.subr.mxu0 %v7569_v1 }
0x1dce   :  { %7413 = vmatmul.mubr.msk.f32.vlgmr.msra.gmra.mxu0 %vm424_vm5, %v5182_v35  ;;  %v6611_v35 = vld [vmem:[%s8822_s6 + $0x178] sm:$0xff] }
0x1dcf   :  { %7421 = vmatpush3.msra.mxu0 %v5352_v51  ;;  %7422 = vmatprep.mubr.msk.f32.mxu0 %vm7570_vm2, %v7569_v1 }
0x1dd0   :  { %5858 = vmatprep.subr.mxu0 %v6592_v58 }
0x1e8a   :  { %v5427_v2 = vpop.f32.mrf.mxu0 }
0x1e8b   :  { %v5428_v3 = vadd.f32 %v5427_v2, %v7775_v63  ;;  %v6626_v2 = vld [vmem:[%s8822_s6 + $0x1f0] sm:$0xff] }
0x1e8c   :  { %v7409_v4 = vpop.f32.mrf.mxu0 }
0x1e8d   :  { %v5507_v5 = vsel %vm424_vm5, %v5428_v3, -inf  ;;  %v6625_v4 = vld [vmem:[%s8822_s6 + $0x1e8] sm:$0xff] }
0x1e8e   :  { %5508 = vmax.xlane.f32.xlu0 %v5507_v5  ;;  %v5503_v6 = vpop.f32.mrf.mxu0  ;;  %v6609_v5 = vld [vmem:[%s8822_s6 + $0x168] sm:$0xff] }
0x1e8f   :  { %v5504_v7 = vadd.f32 %v5503_v6, %v7775_v63  ;;  %v6624_v6 = vld [vmem:[%s8822_s6 + $0x1e0] sm:$0xff] }
0x1e90   :  { %v7414_v8 = vpop.f32.mrf.mxu0 }
0x1e91   :  { %v5510_v9 = vsel %vm424_vm5, %v5504_v7, -inf  ;;  %v6623_v8 = vld [vmem:[%s8822_s6 + $0x1d8] sm:$0xff] }
0x1e92   :  { %5511 = vmax.xlane.f32.xlu1 %v5510_v9  ;;  %v6607_v9 = vld [vmem:[%s8822_s6 + $0x158] sm:$0xff] }
0x1f17   :  { %v5509_v10 = vpop.xlane.xlu0 %5508 }
0x1f18   :  { %v5513_v11 = vsub.f32 %v5428_v3, %v5509_v10  ;;  %v6610_v3 = vld [vmem:[%s8822_s6 + $0x170] sm:$0xff] }
0x1f19   :  { %v6622_v10 = vld [vmem:[%s8822_s6 + $0x1d0] sm:$0xff] }
0x1f1a   :  { %v5515_v12 = vmul.f32 1.442695, %v5513_v11  ;;  %v6606_v11 = vld [vmem:[%s8822_s6 + $0x150] sm:$0xff] }
0x1f1b   :  { %v5512_v13 = vpop.xlane.xlu1 %5511 }
0x1f1c   :  { %7529 = vpow2.f32 %v5515_v12  ;;  %v5514_v14 = vsub.f32 %v5504_v7, %v5512_v13  ;;  %v6608_v7 = vld [vmem:[%s8822_s6 + $0x160] sm:$0xff]  ;;  %v6621_v12 = vld [vmem:[%s8822_s6 + $0x1c8] sm:$0xff] }
0x1f1d   :  { %v6605_v13 = vld [vmem:[%s8822_s6 + $0x148] sm:$0xff] }
0x1f1e   :  { %v5517_v15 = vmul.f32 1.442695, %v5514_v14  ;;  %v6620_v14 = vld [vmem:[%s8822_s6 + $0x1c0] sm:$0xff] }
0x1f20   :  { %7531 = vpow2.f32 %v5517_v15  ;;  %v6604_v15 = vld [vmem:[%s8822_s6 + $0x140] sm:$0xff] }
0x1f29   :  { %v7530_v16 = vpop.eup %7529 }
0x1f2a   :  { %v5519_v17 = vsel %vm424_vm5, %v7530_v16, 0.0 }
0x1f2b   :  { %5520 = vadd.xlane.f32.xlu0 %v5519_v17  ;;  %v6603_v17 = vld [vmem:[%s8822_s6 + $0x138] sm:$0xff] }
0x1f2d   :  { %v7532_v19 = vpop.eup %7531 }
0x1f2e   :  { %v5522_v20 = vsel %vm424_vm5, %v7532_v19, 0.0 }
0x1f2f   :  { %5523 = vadd.xlane.f32.xlu1 %v5522_v20  ;;  %v6602_v20 = vld [vmem:[%s8822_s6 + $0x130] sm:$0xff] }
0x1fb4   :  { %v5521_v63 = vpop.xlane.xlu0 %5520 }
0x1fb5   :  { %7533 = vrcp.f32 %v5521_v63  ;;  %v6617_v63 = vld [vmem:[%s8822_s6 + $0x1a8] sm:$0xff] }
0x1fb8   :  { %v5524_v22 = vpop.xlane.xlu1 %5523 }
0x1fb9   :  { %7535 = vrcp.f32 %v5524_v22  ;;  %v6601_v22 = vld [vmem:[%s8822_s6 + $0x128] sm:$0xff] }
0x1fc2   :  { %v7534_v23 = vpop.eup %7533 }
0x1fc3   :  { %v5527_v25 = vmul.f32 %v7534_v23, %v7530_v16  ;;  %v6619_v16 = vld [vmem:[%s8822_s6 + $0x1b8] sm:$0xff]  ;;  %v6616_v23 = vld [vmem:[%s8822_s6 + $0x1a0] sm:$0xff] }
0x1fc5   :  { %7418 = vmatmul.mubr.msk.f32.vlgmr.msra.gmra.mxu1 %vm424_vm5, %v5527_v25  ;;  %v6600_v25 = vld [vmem:[%s8822_s6 + $0x120] sm:$0xff] }
0x1fc6   :  { %v7536_v28 = vpop.eup %7535  ;;  %7426 = vmatpush3.msra.mxu1 %v6579_v30 }
0x1fc7   :  { %v5528_v29 = vmul.f32 %v7536_v28, %v7532_v19  ;;  %6909 = vmatprep.subr.mxu1 %v6627_v43  ;;  %v6618_v19 = vld [vmem:[%s8822_s6 + $0x1b0] sm:$0xff] }
0x1fc9   :  { %7423 = vmatmul.mubr.msk.f32.vlgmr.msra.gmra.mxu0 %vm424_vm5, %v5528_v29 }
0x1fca   :  { %5898 = vmatprep.mubr.f32.mxu0 %v7569_v1 }
0x2085   :  { %v5598_v31 = vpop.f32.mrf.mxu1 }
0x2086   :  { %7427 = vmatprep.mubr.msk.f32.mxu1 %vm424_vm5, %v5598_v31 }
0x2087   :  { %v7419_v32 = vpop.f32.mrf.mxu1 }
0x2089   :  { %v5671_v36 = vpop.f32.mrf.mxu0 }
0x208a   :  { %7428 = vmatmul.mubr.msk.f32.vlgmr.msra.gmra.mxu1 %vm424_vm5, %v5671_v36 }
0x208b   :  { %v7424_v37 = vpop.f32.mrf.mxu0  ;;  %6910 = vmatpush3.msra.mxu1 %v6611_v35 }
0x208c   :  { %6911 = vmatprep.subr.mxu1 %v6626_v2 }
0x208d   :  { %6912 = vmatpush3.msra.mxu1 %v6610_v3 }
0x208e   :  { %6913 = vmatprep.subr.mxu1 %v6625_v4 }
0x208f   :  { %6914 = vmatpush3.msra.mxu1 %v6609_v5 }
0x2090   :  { %6915 = vmatprep.subr.mxu1 %v6624_v6 }
0x2091   :  { %6916 = vmatpush3.msra.mxu1 %v6608_v7 }
0x2092   :  { %6917 = vmatprep.subr.mxu1 %v6623_v8 }
0x2093   :  { %6918 = vmatpush3.msra.mxu1 %v6607_v9 }
0x2094   :  { %6919 = vmatprep.subr.mxu1 %v6622_v10 }
0x2095   :  { %6920 = vmatpush3.msra.mxu1 %v6606_v11 }
0x2096   :  { %6921 = vmatprep.subr.mxu1 %v6621_v12 }
0x2097   :  { %6922 = vmatpush3.msra.mxu1 %v6605_v13 }
0x2098   :  { %6923 = vmatprep.subr.mxu1 %v6620_v14 }
0x2099   :  { %6924 = vmatpush3.msra.mxu1 %v6604_v15 }
0x209a   :  { %6925 = vmatprep.subr.mxu1 %v6619_v16 }
0x209b   :  { %6926 = vmatpush3.msra.mxu1 %v6603_v17 }
0x209c   :  { %6927 = vmatprep.subr.mxu1 %v6618_v19 }
0x209d   :  { %6928 = vmatpush3.msra.mxu1 %v6602_v20 }
0x209e   :  { %6929 = vmatprep.subr.mxu1 %v6617_v63 }
0x209f   :  { %6930 = vmatpush3.msra.mxu1 %v6601_v22 }
0x20a0   :  { %6931 = vmatprep.subr.mxu1 %v6616_v23 }
0x20a1   :  { %6932 = vmatpush3.msra.mxu1 %v6600_v25 }
0x214a   :  { %v7429_v41 = vpop.f32.mrf.mxu1 }
0x214b   :  { %v5759_v42 = vadd.f32 %v7429_v41, %v8541_v57 }
0x214c   :  { %v5749_v44 = vpop.f32.mrf.mxu1 }
0x214d   :  { %v5765_v45 = vadd.f32 %v6582_v40, %v5759_v42  ;;  %v5758_v46 = vadd.f32 %v5749_v44, %v8543_v59  ;;  %v6591_v59 = vld [vmem:[%s8821_s5 + $0x80] sm:$0xff]  ;;  %v6583_v44 = vld [vmem:[%s8823_s7 + $0x9] ss:$0 sm:$0xff] }
0x214e   :  { %5859 = vmatpush1.msra.mxu0 %v6591_v59 }
0x214f   :  { %v5764_v47 = vadd.f32 %v6582_v40, %v5758_v46  ;;  %v5767_v48 = vadd.f32 %v5765_v45, %v8226_v38  ;;  %5860 = vmatprep.subr.mxu0 %v6590_v60  ;;  %v6584_v46 = vld [vmem:[%s8823_s7 + $0xa] ss:$0 sm:$0xff] }
0x2150   :  { %5861 = vmatpush1.msra.mxu0 %v6589_v61 }
0x2151   :  { %v5771_v21 = vsel %vm121_vm3, %v5767_v48, 0.0  ;;  %v5766_v34 = vadd.f32 %v5764_v47, %v8222_v33  ;;  %5862 = vmatprep.subr.mxu0 %v6588_v62 }
0x2152   :  { %5772 = vadd.xlane.f32.xlu1 %v5771_v21  ;;  %5863 = vmatpush1.msra.mxu0 %v6587_v0 }
0x2153   :  { %v5768_v49 = vsel %vm121_vm3, %v5766_v34, 0.0  ;;  %5864 = vmatprep.subr.mxu0 %v6586_v26 }
0x2154   :  { %5769 = vadd.xlane.f32.xlu0 %v5768_v49  ;;  %5865 = vmatpush1.msra.mxu0 %v6585_v24  ;;  %v6599_v49 = vld [vmem:[%s8822_s6 + $0x118] sm:$0xff] }
0x2155   :  { %7430 = vmatprep.subr.mxu0 %v7569_v1 }
0x21db   :  { %v5773_v50 = vpop.xlane.xlu1 %5772 }
0x21dc   :  { %v5775_v51 = vmul.f32 0.03125, %v5773_v50  ;;  %v6614_v50 = vld [vmem:[%s8822_s6 + $0x190] sm:$0xff] }
0x21dd   :  { %v5770_v52 = vpop.xlane.xlu0 %5769 }
0x21de   :  { %v8584_v53 = vsub.f32 %v5767_v48, %v5775_v51  ;;  %v5774_v54 = vmul.f32 0.03125, %v5770_v52  ;;  %v6598_v51 = vld [vmem:[%s8822_s6 + $0x110] sm:$0xff]  ;;  %v6613_v52 = vld [vmem:[%s8822_s6 + $0x188] sm:$0xff] }
0x21e0   :  { %v8586_v55 = vsub.f32 %v5766_v34, %v5774_v54  ;;  %v5779_v56 = vmul.f32 %v8584_v53, %v8584_v53  ;;  %v6615_v34 = vld [vmem:[%s8822_s6 + $0x198] sm:$0xff]  ;;  %v6612_v54 = vld [vmem:[%s8822_s6 + $0x180] sm:$0xff] }
0x21e1   :  { %6933 = vmatprep.subr.mxu1 %v6615_v34 }
0x21e2   :  { %v5783_v38 = vsel %vm121_vm3, %v5779_v56, 0.0  ;;  %v5778_v33 = vmul.f32 %v8586_v55, %v8586_v55  ;;  %6934 = vmatpush3.msra.mxu1 %v6599_v49  ;;  %v6593_v56 = vld [vmem:[%s8821_s5 + $0x90] ss:$8 sm:$0x3] }
0x21e3   :  { %5784 = vadd.xlane.f32.xlu1 %v5783_v38  ;;  %6935 = vmatprep.subr.mxu1 %v6614_v50  ;;  %v5821_v38 = vrot.slane %v6593_v56, %v2865_v39 }
0x21e4   :  { %v5780_v57 = vsel %vm121_vm3, %v5778_v33, 0.0  ;;  %6936 = vmatpush3.msra.mxu1 %v6598_v51  ;;  %v5825_v33 = vrot.slane %v6593_v56, %v2869_v27 }
0x21e5   :  { %5781 = vadd.xlane.f32.xlu0 %v5780_v57  ;;  %6937 = vmatprep.subr.mxu1 %v6613_v52 }
0x226c   :  { %v5785_v28 = vpop.xlane.xlu1 %5784 }
0x226d   :  { %v5787_v29 = vmul.f32 0.03125, %v5785_v28 }
0x226e   :  { %v5782_v30 = vpop.xlane.xlu0 %5781 }
0x226f   :  { %v5789_v31 = vadd.f32 1e-05, %v5787_v29  ;;  %v5786_v32 = vmul.f32 0.03125, %v5782_v30 }
0x2271   :  { %7537 = vrsqrt.f32 %v5789_v31  ;;  %v5788_v36 = vadd.f32 1e-05, %v5786_v32 }
0x2273   :  { %7539 = vrsqrt.f32 %v5788_v36 }
0x227e   :  { %v7538_v37 = vpop.eup %7537 }
0x227f   :  { %v5793_v42 = vmul.f32 %v7538_v37, %v8584_v53  ;;  %v6597_v53 = vld [vmem:[%s8822_s6 + $0x108] sm:$0xff] }
0x2280   :  { %v7540_v40 = vpop.eup %7539  ;;  %6938 = vmatpush3.msra.mxu1 %v6597_v53 }
0x2281   :  { %v5792_v41 = vmul.f32 %v7540_v40, %v8586_v55  ;;  %v5799_v48 = vmul.f32 %v6583_v44, %v5793_v42  ;;  %6939 = vmatprep.subr.mxu1 %v6612_v54  ;;  %v6596_v55 = vld [vmem:[%s8822_s6 + $0x100] sm:$0xff] }
0x2282   :  { %6940 = vmatpush3.msra.mxu1 %v6596_v55 }
0x2283   :  { %v5798_v45 = vmul.f32 %v6583_v44, %v5792_v41  ;;  %v5805_v21 = vadd.f32 %v6584_v46, %v5799_v48  ;;  %v6629_v41 = vld [vmem:[%s8823_s7 + $0xc] ss:$0 sm:$0xff] }
0x2285   :  { %v5804_v47 = vadd.f32 %v6584_v46, %v5798_v45  ;;  %v6630_v46 = vld [vmem:[%s8823_s7 + $0xd] ss:$0 sm:$0xff] }
0x2287   :  { %6594 = vmatmul.mubr.msk.f32.vlgmr.msra.gmra.mxu0 %vm121_vm3, %v5804_v47 }
0x2288   :  { %5904 = vmatprep.mubr.f32.mxu0 %v7569_v1 }
0x228b   :  { %6595 = vmatmul.mubr.msk.f32.gmra.mxu0 %vm121_vm3, %v5805_v21 }
0x228c   :  { %7438 = vmatprep.mubr.msk.f32.mxu0 %vm7570_vm2, %v7569_v1 }
0x2347   :  { %v5900_v57 = vpop.f32.mrf.mxu0 }
0x2348   :  { %v5901_v58 = vadd.f32 %v5900_v57, %v5821_v38 }
0x2349   :  { %v5902_v59 = vpop.f32.mrf.mxu0 }
0x234a   :  { %v5903_v60 = vadd.f32 %v5902_v59, %v5825_v33  ;;  %v5911_v0 = vmax.f32 %v5901_v58, 0.0  ;;  %v6120_v58 = vld [vmem:[%s8825_s9 + $0x18] sm:$0xff]  ;;  %v6119_v59 = vld [vmem:[%s8825_s9 + $0x10] sm:$0xff] }
0x234b   :  { %v5906_v61 = vpop.f32.mrf.mxu0  ;;  %7431 = vmatpush3.msra.mxu0 %v6120_v58 }
0x234c   :  { %v5912_v62 = vmax.f32 %v5903_v60, 0.0  ;;  %v5907_v26 = vadd.f32 %v5906_v61, %v5821_v38  ;;  %7432 = vmatprep.subr.mxu0 %v7569_v1  ;;  %v6118_v60 = vld [vmem:[%s8825_s9 + $0x8] sm:$0xff]  ;;  %v6117_v61 = vld [vmem:[%s8825_s9] sm:$0xff] }
0x234d   :  { %v5908_v24 = vpop.f32.mrf.mxu0  ;;  %7433 = vmatpush3.msra.mxu0 %v6119_v59 }
0x234e   :  { %v5909_v43 = vadd.f32 %v5908_v24, %v5825_v33  ;;  %6016 = vmatprep.mubr.f32.mxu1 %v5912_v62  ;;  %v5913_v2 = vmax.f32 %v5907_v26, 0.0  ;;  %7434 = vmatprep.subr.mxu0 %v7569_v1 }
0x234f   :  { %6017 = vmatmul.mubr.f32.vlgmr.msra.gmra.mxu1 %v5911_v0  ;;  %7435 = vmatpush3.msra.mxu0 %v6118_v60 }
0x2350   :  { %v5914_v35 = vmax.f32 %v5909_v43, 0.0  ;;  %7436 = vmatprep.subr.mxu0 %v7569_v1 }
0x2351   :  { %7437 = vmatpush3.msra.mxu0 %v6117_v61 }
0x2352   :  { %6021 = vmatprep.mubr.f32.mxu1 %v5914_v35  ;;  %7441 = vmatprep.subr.mxu0 %v7569_v1 }
0x2353   :  { %6022 = vmatmul.mubr.f32.gmra.mxu1 %v5913_v2  ;;  %v6631_v2 = vld [vmem:[%s8824_s8] ss:$0 sm:$0xff] }
0x240f   :  { %v6941_v39 = vpop.f32.mrf.mxu1 }
0x2411   :  { %v6942_v27 = vpop.f32.mrf.mxu1 }
0x2412   :  { %v6943_v3 = vadd.f32 %v6942_v27, %v6941_v39 }
0x2413   :  { %v6944_v4 = vpop.f32.mrf.mxu1 }
0x2414   :  { %v6019_v5 = vadd.f32 %v6943_v3, %v6628_v18  ;;  %v6632_v3 = vld [vmem:[%s8824_s8 + $0x1] ss:$0 sm:$0xff] }
0x2415   :  { %v6945_v6 = vpop.f32.mrf.mxu1 }
0x2416   :  { %v6946_v7 = vadd.f32 %v6945_v6, %v6944_v4  ;;  %v6027_v8 = vadd.f32 %v6019_v5, %v5804_v47 }
0x2418   :  { %v6024_v9 = vadd.f32 %v6946_v7, %v6628_v18  ;;  %v6029_v10 = vsel %vm121_vm3, %v6027_v8, 0.0  ;;  %v6210_v7 = vld [vmem:[%s8826_s10 + $0x38] sm:$0xff] }
0x2419   :  { %6030 = vadd.xlane.f32.xlu1 %v6029_v10  ;;  %v6208_v10 = vld [vmem:[%s8826_s10 + $0x28] sm:$0xff] }
0x241a   :  { %v6028_v11 = vadd.f32 %v6024_v9, %v5805_v21  ;;  %v6209_v9 = vld [vmem:[%s8826_s10 + $0x30] sm:$0xff] }
0x241c   :  { %v6032_v12 = vsel %vm121_vm3, %v6028_v11, 0.0 }
0x241d   :  { %6033 = vadd.xlane.f32.xlu0 %v6032_v12  ;;  %v6206_v12 = vld [vmem:[%s8826_s10 + $0x18] sm:$0xff] }
0x24a2   :  { %v6031_v13 = vpop.xlane.xlu1 %6030 }
0x24a3   :  { %v6035_v14 = vmul.f32 0.03125, %v6031_v13  ;;  %v6205_v13 = vld [vmem:[%s8826_s10 + $0x10] sm:$0xff] }
0x24a5   :  { %v6037_v15 = vsub.f32 %v6027_v8, %v6035_v14  ;;  %v6204_v14 = vld [vmem:[%s8826_s10 + $0x8] sm:$0xff] }
0x24a6   :  { %v6034_v16 = vpop.xlane.xlu0 %6033 }
0x24a7   :  { %v6036_v17 = vmul.f32 0.03125, %v6034_v16  ;;  %v6039_v19 = vmul.f32 %v6037_v15, %v6037_v15  ;;  %v6633_v16 = vld [vmem:[%s8825_s9 + $0x20] ss:$0 sm:$0xff] }
0x24a9   :  { %v6038_v20 = vsub.f32 %v6028_v11, %v6036_v17  ;;  %v6041_v63 = vsel %vm121_vm3, %v6039_v19, 0.0  ;;  %v6207_v11 = vld [vmem:[%s8826_s10 + $0x20] sm:$0xff] }
0x24aa   :  { %6042 = vadd.xlane.f32.xlu1 %v6041_v63 }
0x24ab   :  { %v6040_v22 = vmul.f32 %v6038_v20, %v6038_v20 }
0x24ad   :  { %v6044_v23 = vsel %vm121_vm3, %v6040_v22, 0.0  ;;  %v6635_v22 = vld [vmem:[%s8826_s10 + $0x40] ss:$0 sm:$0xff] }
0x24ae   :  { %6045 = vadd.xlane.f32.xlu0 %v6044_v23 }
0x2533   :  { %v6043_v25 = vpop.xlane.xlu1 %6042 }
0x2534   :  { %v6047_v28 = vmul.f32 0.03125, %v6043_v25 }
0x2536   :  { %v6049_v29 = vadd.f32 1e-05, %v6047_v28 }
0x2537   :  { %v6046_v30 = vpop.xlane.xlu0 %6045 }
0x2538   :  { %7541 = vrsqrt.f32 %v6049_v29  ;;  %v6048_v31 = vmul.f32 0.03125, %v6046_v30 }
0x253a   :  { %v6050_v32 = vadd.f32 1e-05, %v6048_v31 }
0x253c   :  { %7543 = vrsqrt.f32 %v6050_v32 }
0x2545   :  { %v7542_v36 = vpop.eup %7541 }
0x2546   :  { %v6053_v37 = vmul.f32 %v7542_v36, %v6037_v15  ;;  %v6203_v15 = vld [vmem:[%s8826_s10] sm:$0xff] }
0x2548   :  { %v6059_v44 = vmul.f32 %v6629_v41, %v6053_v37 }
0x2549   :  { %v7544_v40 = vpop.eup %7543 }
0x254a   :  { %v6054_v42 = vmul.f32 %v7544_v40, %v6038_v20  ;;  %v6065_v48 = vadd.f32 %v6630_v46, %v6059_v44 }
0x254c   :  { %v6060_v45 = vmul.f32 %v6629_v41, %v6054_v42 }
0x254e   :  { %v6066_v47 = vadd.f32 %v6630_v46, %v6060_v45 }
0x2550   :  { %v6071_v21 = vrot.slane %v6066_v47, 7 }
0x2552   :  { %v6073_v34 = vsel %vm6072_vm7, %v6071_v21, %v6065_v48 }
0x2553   :  { %v6076_v49 = vsel %vm6075_vm8, %v6073_v34, 0.0 }
0x2554   :  { %6077 = vadd.xlane.f32.xlu0 %v6076_v49 }
0x25dd   :  { %v6078_v50 = vpop.xlane.xlu0 %6077 }
0x25de   :  { %v6079_v51 = vmul.f32 0.03125, %v6078_v50 }
0x25e0   :  { %v6081_v52 = vrot.slane %v6079_v51, 1  ;;  %v6084_v53 = vsub.f32 %v6065_v48, %v6079_v51 }
0x25e2   :  { %v6085_v54 = vsub.f32 %v6066_v47, %v6081_v52  ;;  %v6086_v56 = vmul.f32 %v6084_v53, %v6084_v53 }
0x25e4   :  { %v6087_v55 = vmul.f32 %v6085_v54, %v6085_v54 }
0x25e6   :  { %v6090_v38 = vrot.slane %v6087_v55, 7 }
0x25e8   :  { %v6091_v33 = vsel %vm6072_vm7, %v6090_v38, %v6086_v56 }
0x25e9   :  { %v6093_v57 = vsel %vm6075_vm8, %v6091_v33, 0.0 }
0x25ea   :  { %6094 = vadd.xlane.f32.xlu1 %v6093_v57 }
0x2673   :  { %v6095_v62 = vpop.xlane.xlu1 %6094 }
0x2674   :  { %v6096_v0 = vmul.f32 0.03125, %v6095_v62 }
0x2676   :  { %v6097_v26 = vadd.f32 1e-05, %v6096_v0 }
0x2678   :  { %7545 = vrsqrt.f32 %v6097_v26 }
0x2685   :  { %v7546_v24 = vpop.eup %7545 }
0x2686   :  { %v6100_v43 = vrot.slane %v7546_v24, 1  ;;  %v6103_v35 = vmul.f32 %v7546_v24, %v6084_v53 }
0x2688   :  { %v6104_v39 = vmul.f32 %v6100_v43, %v6085_v54  ;;  %v6109_v18 = vmul.f32 %v6631_v2, %v6103_v35 }
0x268a   :  { %v6110_v27 = vmul.f32 %v6631_v2, %v6104_v39  ;;  %v6115_v5 = vadd.f32 %v6632_v3, %v6109_v18 }
0x268c   :  { %v6116_v4 = vadd.f32 %v6632_v3, %v6110_v27 }
0x268e   :  { %v6128_v6 = vrot.slane %v6116_v4, 7 }
0x2690   :  { %v6129_v8 = vsel %vm6072_vm7, %v6128_v6, %v6115_v5 }
0x2691   :  { %7439 = vmatmul.mubr.msk.f32.vlgmr.msra.gmra.mxu0 %vm121_vm3, %v6129_v8 }
0x2692   :  { %7442 = vmatpush3.msra.mxu0 %v6210_v7  ;;  %7457 = vmatprep.mubr.msk.f32.mxu0 %vm7570_vm2, %v7569_v1 }
0x2693   :  { %7443 = vmatprep.subr.mxu0 %v7569_v1 }
0x2694   :  { %7444 = vmatpush3.msra.mxu0 %v6209_v9 }
0x2695   :  { %7445 = vmatprep.subr.mxu0 %v7569_v1 }
0x2696   :  { %7446 = vmatpush3.msra.mxu0 %v6208_v10 }
0x2697   :  { %7447 = vmatprep.subr.mxu0 %v7569_v1 }
0x2698   :  { %7448 = vmatpush3.msra.mxu0 %v6207_v11 }
0x2699   :  { %7449 = vmatprep.subr.mxu0 %v7569_v1 }
0x269a   :  { %7450 = vmatpush3.msra.mxu0 %v6206_v12 }
0x269b   :  { %7451 = vmatprep.subr.mxu0 %v7569_v1 }
0x269c   :  { %7452 = vmatpush3.msra.mxu0 %v6205_v13 }
0x269d   :  { %7453 = vmatprep.subr.mxu0 %v7569_v1 }
0x269e   :  { %7454 = vmatpush3.msra.mxu0 %v6204_v14 }
0x269f   :  { %7455 = vmatprep.subr.mxu0 %v7569_v1 }
0x26a0   :  { %7456 = vmatpush3.msra.mxu0 %v6203_v15 }
0x2751   :  { %v6198_v17 = vpop.f32.mrf.mxu0 }
0x2752   :  { %v6199_v19 = vadd.f32 %v6633_v16, %v6198_v17 }
0x2753   :  { %v7440_v20 = vpop.f32.mrf.mxu0 }
0x2754   :  { %v6202_v63 = vmax.f32 %v6199_v19, 0.0 }
0x2756   :  { %7458 = vmatmul.mubr.msk.f32.vlgmr.msra.gmra.mxu0 %vm6216_vm9, %v6202_v63 }
0x2816   :  { %v6286_v1 = vpop.f32.mrf.mxu0 }
0x2817   :  { %v6287_v23 = vadd.f32 %v6635_v22, %v6286_v1 }
0x2818   :  { %v7459_v25 = vpop.f32.mrf.mxu0 }
0x2819   :  { %6291 = vst.msk [vmem:[#allocation3] sm:$0x3] %vm6290_vm10, %v6287_v23 }
0x281a   :  { %7558 = shalt.err (!%p7555_p4)
}
0x281b   :  { %6301 = dma.vmem_to_hbm [thread:$0]  %s6299_s22, 32, %s8827_s11, [#allocation4]  }
0x281c   :  { %7567 = dma.done.wait [#allocation4], 32  }
0x281d   :  { %7568 = vsyncadd [#allocation4], 4294967264 }
0x281e   :  { %6305 = vsyncpa [#allocation4], 1 }

</bundles_post_ra>
